<compile_context>
chip_gen: v5e
topology: v5e:2x2
jax: 0.10.0
libtpu: 0.0.40
codegen_flags: <defaults>
</compile_context>

<pallas_src>
import functools

import jax
import jax.numpy as jnp
from jax.experimental import pallas as pl
from jax.experimental.pallas import tpu as pltpu

BN_EPS = 1e-5
PAD_LANES = 128  # lane-dense output width


def _bn_relu(h, gamma, beta):
    """Training-mode BatchNorm1d folded to one scale/shift FMA, then ReLU (f32)."""
    mean = jnp.mean(h, axis=0, keepdims=True)          # [1, N] sublane reduce
    mean_sq = jnp.mean(h * h, axis=0, keepdims=True)   # [1, N]
    var = mean_sq - mean * mean                        # biased batch variance
    scale = gamma * jax.lax.rsqrt(var + BN_EPS)        # EUP rsqrt (free slot)
    shift = beta - mean * scale
    return jnp.maximum(h * scale + shift, 0.0)


def dense_net_kernel(
    x_ref,
    w1_ref, g1_ref, be1_ref,
    w2_ref, g2_ref, be2_ref,
    w3_ref, g3_ref, be3_ref,
    w4_ref, b4_ref,
    o_ref,
):
    # Layer 1: Linear (bias dropped - BN cancels it) + folded BN + ReLU
    h = jnp.dot(x_ref[...].astype(jnp.bfloat16), w1_ref[...],
                preferred_element_type=jnp.float32)
    h = _bn_relu(h, g1_ref[...], be1_ref[...])

    # Layer 2
    h = jnp.dot(h.astype(jnp.bfloat16), w2_ref[...],
                preferred_element_type=jnp.float32)
    h = _bn_relu(h, g2_ref[...], be2_ref[...])

    # Layer 3
    h = jnp.dot(h.astype(jnp.bfloat16), w3_ref[...],
                preferred_element_type=jnp.float32)
    h = _bn_relu(h, g3_ref[...], be3_ref[...])

    # Output layer: Linear with bias, lane-dense padded width (logits)
    o_ref[...] = (
        jnp.dot(h.astype(jnp.bfloat16), w4_ref[...],
                preferred_element_type=jnp.float32) + b4_ref[...]
    ).astype(o_ref.dtype)


def _pad_cols(a, target):
    pad = target - a.shape[-1]
    if pad <= 0:
        return a
    return jnp.pad(a, [(0, 0)] * (a.ndim - 1) + [(0, pad)])


def prepare_kernel_params(params):
    """PyTorch-style params -> kernel layout: drop b1/b2/b3, cast weights to
       bf16, row-shape the per-feature vectors, zero-pad the output layer to a
       lane-dense width."""
    (w1, b1, g1, be1, w2, b2, g2, be2, w3, b3, g3, be3, w4, b4) = params
    del b1, b2, b3  # exactly cancelled by training-mode BatchNorm
    row = lambda v: v.reshape(1, -1).astype(jnp.float32)
    padded_out = pl.cdiv(w4.shape[1], PAD_LANES) * PAD_LANES
    kernel_params = (
        w1.astype(jnp.bfloat16), row(g1), row(be1),
        w2.astype(jnp.bfloat16), row(g2), row(be2),
        w3.astype(jnp.bfloat16), row(g3), row(be3),
        _pad_cols(w4, padded_out).astype(jnp.bfloat16),
        _pad_cols(row(b4), padded_out),
    )
    return kernel_params, int(padded_out)


@functools.partial(jax.jit, static_argnames=("output_size", "padded_out"))
def simple_dense_net_forward(x, kernel_params, output_size, padded_out):
    batch, in_features = x.shape
    h1 = kernel_params[0].shape[1]
    h2 = kernel_params[3].shape[1]
    h3 = kernel_params[6].shape[1]

    flops = 2 * batch * (in_features * h1 + h1 * h2 + h2 * h3 + h3 * padded_out)
    bytes_accessed = (
        x.size * x.dtype.itemsize
        + sum(int(p.size) * p.dtype.itemsize for p in kernel_params)
        + batch * padded_out * 4
    )

    vmem = pl.BlockSpec(memory_space=pltpu.MemorySpace.VMEM)
    out_padded = pl.pallas_call(
        dense_net_kernel,
        out_shape=jax.ShapeDtypeStruct((batch, padded_out), jnp.float32),
        in_specs=[vmem] * (1 + len(kernel_params)),
        out_specs=vmem,
        compiler_params=pltpu.CompilerParams(vmem_limit_bytes=32 * 1024 * 1024),
        cost_estimate=pl.CostEstimate(
            flops=int(flops),
            transcendentals=int(h1 + h2 + h3),  # one rsqrt per feature per BN
            bytes_accessed=int(bytes_accessed),
        ),
    )(x, *kernel_params)
    return out_padded[:, :output_size]


def make_params(key, input_size, lin1, lin2, lin3, output_size):
    """PyTorch-style synthetic init. Linear weights already transposed to
       [in, out]; biases/gamma/beta as 1-D vectors. BatchNorm gamma=1, beta=0."""
    dims = [(input_size, lin1), (lin1, lin2), (lin2, lin3), (lin3, output_size)]
    params = []
    keys = jax.random.split(key, 2 * len(dims))
    for i, (fan_in, fan_out) in enumerate(dims):
        bound = 1.0 / (fan_in ** 0.5)
        w = jax.random.uniform(keys[2 * i], (fan_in, fan_out), jnp.float32, -bound, bound)
        b = jax.random.uniform(keys[2 * i + 1], (fan_out,), jnp.float32, -bound, bound)
        params.append(w)
        params.append(b)
        if i < 3:  # BatchNorm after the first three linears
            params.append(jnp.ones((fan_out,), jnp.float32))   # gamma
            params.append(jnp.zeros((fan_out,), jnp.float32))  # beta
    return tuple(params)


def reference_forward(x, params):
    """Original PyTorch formulation: biases kept, centered variance, un-fused BN
       affine. Matmuls mirror the kernel's MXU policy (bf16 operands, f32 acc)."""
    (w1, b1, g1, be1, w2, b2, g2, be2, w3, b3, g3, be3, w4, b4) = params

    def mxu_dot(a, w):
        return jnp.dot(a.astype(jnp.bfloat16), w.astype(jnp.bfloat16),
                       preferred_element_type=jnp.float32)

    def bn_relu(h, g, be):
        m = jnp.mean(h, axis=0, keepdims=True)
        v = jnp.mean((h - m) ** 2, axis=0, keepdims=True)
        return jnp.maximum((h - m) / jnp.sqrt(v + BN_EPS) * g + be, 0.0)

    h = bn_relu(mxu_dot(x, w1) + b1, g1, be1)
    h = bn_relu(mxu_dot(h, w2) + b2, g2, be2)
    h = bn_relu(mxu_dot(h, w3) + b3, g3, be3)
    return mxu_dot(h, w4) + b4


if __name__ == "__main__":
    # Module-default feature sizes; batch kept small but MXU-row friendly
    # (BatchNorm in training mode needs batch > 1 anyway).
    batch = 128
    input_size, lin1, lin2, lin3, output_size = 784, 256, 256, 256, 10

    key = jax.random.PRNGKey(0)
    kx, kp = jax.random.split(key)
    x = jax.random.normal(kx, (batch, input_size), jnp.float32)
    params = make_params(kp, input_size, lin1, lin2, lin3, output_size)

    kernel_params, padded_out = prepare_kernel_params(params)
    logits = simple_dense_net_forward(x, kernel_params, output_size, padded_out)
    logits = jax.block_until_ready(logits)

    ref = reference_forward(x, params)
    assert logits.shape == (batch, output_size)
    # Tolerance covers bf16 re-rounding of intermediate activations between the
    # algebraically-equivalent kernel formulation and the PyTorch-form reference.
    assert jnp.allclose(logits, ref, atol=5e-3, rtol=5e-3), "mismatch vs JAX reference"

    print("KERNEL_OK")
</pallas_src>

<mosaic_0001>
module attributes {stable_mosaic.version = 11 : i64} {
  func.func @dense_net_kernel(%arg0: memref<128x784xf32, #tpu.memory_space<vmem>>, %arg1: memref<784x256xbf16, #tpu.memory_space<vmem>>, %arg2: memref<1x256xf32, #tpu.memory_space<vmem>>, %arg3: memref<1x256xf32, #tpu.memory_space<vmem>>, %arg4: memref<256x256xbf16, #tpu.memory_space<vmem>>, %arg5: memref<1x256xf32, #tpu.memory_space<vmem>>, %arg6: memref<1x256xf32, #tpu.memory_space<vmem>>, %arg7: memref<256x256xbf16, #tpu.memory_space<vmem>>, %arg8: memref<1x256xf32, #tpu.memory_space<vmem>>, %arg9: memref<1x256xf32, #tpu.memory_space<vmem>>, %arg10: memref<256x128xbf16, #tpu.memory_space<vmem>>, %arg11: memref<1x128xf32, #tpu.memory_space<vmem>>, %arg12: memref<128x128xf32, #tpu.memory_space<vmem>>) attributes {dimension_semantics = [], scalar_prefetch = 0 : i64, scratch_operands = 0 : i64, tpu.core_type = #tpu.core_type<tc>} {
    %c0 = arith.constant 0 : index
    %c0_0 = arith.constant 0 : index
    %0 = vector.load %arg0[%c0, %c0_0] : memref<128x784xf32, #tpu.memory_space<vmem>>, vector<128x784xf32>
    %1 = arith.truncf %0 : vector<128x784xf32> to vector<128x784xbf16>
    %c0_1 = arith.constant 0 : index
    %c0_2 = arith.constant 0 : index
    %2 = vector.load %arg1[%c0_1, %c0_2] : memref<784x256xbf16, #tpu.memory_space<vmem>>, vector<784x256xbf16>
    %cst = arith.constant dense<0.000000e+00> : vector<128x256xf32>
    %3 = tpu.matmul %1, %2, %cst {dimension_numbers = #tpu.dot_dimension_numbers<[1], [0], [0], [1], [0, 0, 1, 1], [], []>} : vector<128x784xbf16>, vector<784x256xbf16>, vector<128x256xf32> -> vector<128x256xf32>
    %c0_3 = arith.constant 0 : index
    %c0_4 = arith.constant 0 : index
    %4 = vector.load %arg2[%c0_3, %c0_4] : memref<1x256xf32, #tpu.memory_space<vmem>>, vector<1x256xf32>
    %c0_5 = arith.constant 0 : index
    %c0_6 = arith.constant 0 : index
    %5 = vector.load %arg3[%c0_5, %c0_6] : memref<1x256xf32, #tpu.memory_space<vmem>>, vector<1x256xf32>
    %cst_7 = arith.constant dense<0.000000e+00> : vector<256xf32>
    %6 = vector.multi_reduction <add>, %3, %cst_7 [0] : vector<128x256xf32> to vector<256xf32>
    %7 = vector.shape_cast %6 : vector<256xf32> to vector<1x256xf32>
    %cst_8 = arith.constant 1.280000e+02 : f32
    %8 = vector.broadcast %cst_8 : f32 to vector<1x256xf32>
    %9 = arith.divf %7, %8 : vector<1x256xf32>
    %10 = arith.mulf %3, %3 : vector<128x256xf32>
    %cst_9 = arith.constant dense<0.000000e+00> : vector<256xf32>
    %11 = vector.multi_reduction <add>, %10, %cst_9 [0] : vector<128x256xf32> to vector<256xf32>
    %12 = vector.shape_cast %11 : vector<256xf32> to vector<1x256xf32>
    %cst_10 = arith.constant 1.280000e+02 : f32
    %13 = vector.broadcast %cst_10 : f32 to vector<1x256xf32>
    %14 = arith.divf %12, %13 : vector<1x256xf32>
    %15 = arith.mulf %9, %9 : vector<1x256xf32>
    %16 = arith.subf %14, %15 : vector<1x256xf32>
    %cst_11 = arith.constant 9.99999974E-6 : f32
    %17 = vector.broadcast %cst_11 : f32 to vector<1x256xf32>
    %18 = arith.addf %16, %17 : vector<1x256xf32>
    %19 = math.rsqrt %18 : vector<1x256xf32>
    %20 = arith.mulf %4, %19 : vector<1x256xf32>
    %21 = arith.mulf %9, %20 : vector<1x256xf32>
    %22 = arith.subf %5, %21 : vector<1x256xf32>
    %23 = vector.broadcast %20 : vector<1x256xf32> to vector<128x256xf32>
    %24 = arith.mulf %3, %23 : vector<128x256xf32>
    %25 = vector.broadcast %22 : vector<1x256xf32> to vector<128x256xf32>
    %26 = arith.addf %24, %25 : vector<128x256xf32>
    %cst_12 = arith.constant 0.000000e+00 : f32
    %27 = vector.broadcast %cst_12 : f32 to vector<128x256xf32>
    %28 = arith.maximumf %26, %27 : vector<128x256xf32>
    %29 = arith.truncf %28 : vector<128x256xf32> to vector<128x256xbf16>
    %c0_13 = arith.constant 0 : index
    %c0_14 = arith.constant 0 : index
    %30 = vector.load %arg4[%c0_13, %c0_14] : memref<256x256xbf16, #tpu.memory_space<vmem>>, vector<256x256xbf16>
    %cst_15 = arith.constant dense<0.000000e+00> : vector<128x256xf32>
    %31 = tpu.matmul %29, %30, %cst_15 {dimension_numbers = #tpu.dot_dimension_numbers<[1], [0], [0], [1], [0, 0, 1, 1], [], []>} : vector<128x256xbf16>, vector<256x256xbf16>, vector<128x256xf32> -> vector<128x256xf32>
    %c0_16 = arith.constant 0 : index
    %c0_17 = arith.constant 0 : index
    %32 = vector.load %arg5[%c0_16, %c0_17] : memref<1x256xf32, #tpu.memory_space<vmem>>, vector<1x256xf32>
    %c0_18 = arith.constant 0 : index
    %c0_19 = arith.constant 0 : index
    %33 = vector.load %arg6[%c0_18, %c0_19] : memref<1x256xf32, #tpu.memory_space<vmem>>, vector<1x256xf32>
    %cst_20 = arith.constant dense<0.000000e+00> : vector<256xf32>
    %34 = vector.multi_reduction <add>, %31, %cst_20 [0] : vector<128x256xf32> to vector<256xf32>
    %35 = vector.shape_cast %34 : vector<256xf32> to vector<1x256xf32>
    %cst_21 = arith.constant 1.280000e+02 : f32
    %36 = vector.broadcast %cst_21 : f32 to vector<1x256xf32>
    %37 = arith.divf %35, %36 : vector<1x256xf32>
    %38 = arith.mulf %31, %31 : vector<128x256xf32>
    %cst_22 = arith.constant dense<0.000000e+00> : vector<256xf32>
    %39 = vector.multi_reduction <add>, %38, %cst_22 [0] : vector<128x256xf32> to vector<256xf32>
    %40 = vector.shape_cast %39 : vector<256xf32> to vector<1x256xf32>
    %cst_23 = arith.constant 1.280000e+02 : f32
    %41 = vector.broadcast %cst_23 : f32 to vector<1x256xf32>
    %42 = arith.divf %40, %41 : vector<1x256xf32>
    %43 = arith.mulf %37, %37 : vector<1x256xf32>
    %44 = arith.subf %42, %43 : vector<1x256xf32>
    %cst_24 = arith.constant 9.99999974E-6 : f32
    %45 = vector.broadcast %cst_24 : f32 to vector<1x256xf32>
    %46 = arith.addf %44, %45 : vector<1x256xf32>
    %47 = math.rsqrt %46 : vector<1x256xf32>
    %48 = arith.mulf %32, %47 : vector<1x256xf32>
    %49 = arith.mulf %37, %48 : vector<1x256xf32>
    %50 = arith.subf %33, %49 : vector<1x256xf32>
    %51 = vector.broadcast %48 : vector<1x256xf32> to vector<128x256xf32>
    %52 = arith.mulf %31, %51 : vector<128x256xf32>
    %53 = vector.broadcast %50 : vector<1x256xf32> to vector<128x256xf32>
    %54 = arith.addf %52, %53 : vector<128x256xf32>
    %cst_25 = arith.constant 0.000000e+00 : f32
    %55 = vector.broadcast %cst_25 : f32 to vector<128x256xf32>
    %56 = arith.maximumf %54, %55 : vector<128x256xf32>
    %57 = arith.truncf %56 : vector<128x256xf32> to vector<128x256xbf16>
    %c0_26 = arith.constant 0 : index
    %c0_27 = arith.constant 0 : index
    %58 = vector.load %arg7[%c0_26, %c0_27] : memref<256x256xbf16, #tpu.memory_space<vmem>>, vector<256x256xbf16>
    %cst_28 = arith.constant dense<0.000000e+00> : vector<128x256xf32>
    %59 = tpu.matmul %57, %58, %cst_28 {dimension_numbers = #tpu.dot_dimension_numbers<[1], [0], [0], [1], [0, 0, 1, 1], [], []>} : vector<128x256xbf16>, vector<256x256xbf16>, vector<128x256xf32> -> vector<128x256xf32>
    %c0_29 = arith.constant 0 : index
    %c0_30 = arith.constant 0 : index
    %60 = vector.load %arg8[%c0_29, %c0_30] : memref<1x256xf32, #tpu.memory_space<vmem>>, vector<1x256xf32>
    %c0_31 = arith.constant 0 : index
    %c0_32 = arith.constant 0 : index
    %61 = vector.load %arg9[%c0_31, %c0_32] : memref<1x256xf32, #tpu.memory_space<vmem>>, vector<1x256xf32>
    %cst_33 = arith.constant dense<0.000000e+00> : vector<256xf32>
    %62 = vector.multi_reduction <add>, %59, %cst_33 [0] : vector<128x256xf32> to vector<256xf32>
    %63 = vector.shape_cast %62 : vector<256xf32> to vector<1x256xf32>
    %cst_34 = arith.constant 1.280000e+02 : f32
    %64 = vector.broadcast %cst_34 : f32 to vector<1x256xf32>
    %65 = arith.divf %63, %64 : vector<1x256xf32>
    %66 = arith.mulf %59, %59 : vector<128x256xf32>
    %cst_35 = arith.constant dense<0.000000e+00> : vector<256xf32>
    %67 = vector.multi_reduction <add>, %66, %cst_35 [0] : vector<128x256xf32> to vector<256xf32>
    %68 = vector.shape_cast %67 : vector<256xf32> to vector<1x256xf32>
    %cst_36 = arith.constant 1.280000e+02 : f32
    %69 = vector.broadcast %cst_36 : f32 to vector<1x256xf32>
    %70 = arith.divf %68, %69 : vector<1x256xf32>
    %71 = arith.mulf %65, %65 : vector<1x256xf32>
    %72 = arith.subf %70, %71 : vector<1x256xf32>
    %cst_37 = arith.constant 9.99999974E-6 : f32
    %73 = vector.broadcast %cst_37 : f32 to vector<1x256xf32>
    %74 = arith.addf %72, %73 : vector<1x256xf32>
    %75 = math.rsqrt %74 : vector<1x256xf32>
    %76 = arith.mulf %60, %75 : vector<1x256xf32>
    %77 = arith.mulf %65, %76 : vector<1x256xf32>
    %78 = arith.subf %61, %77 : vector<1x256xf32>
    %79 = vector.broadcast %76 : vector<1x256xf32> to vector<128x256xf32>
    %80 = arith.mulf %59, %79 : vector<128x256xf32>
    %81 = vector.broadcast %78 : vector<1x256xf32> to vector<128x256xf32>
    %82 = arith.addf %80, %81 : vector<128x256xf32>
    %cst_38 = arith.constant 0.000000e+00 : f32
    %83 = vector.broadcast %cst_38 : f32 to vector<128x256xf32>
    %84 = arith.maximumf %82, %83 : vector<128x256xf32>
    %85 = arith.truncf %84 : vector<128x256xf32> to vector<128x256xbf16>
    %c0_39 = arith.constant 0 : index
    %c0_40 = arith.constant 0 : index
    %86 = vector.load %arg10[%c0_39, %c0_40] : memref<256x128xbf16, #tpu.memory_space<vmem>>, vector<256x128xbf16>
    %cst_41 = arith.constant dense<0.000000e+00> : vector<128x128xf32>
    %87 = tpu.matmul %85, %86, %cst_41 {dimension_numbers = #tpu.dot_dimension_numbers<[1], [0], [0], [1], [0, 0, 1, 1], [], []>} : vector<128x256xbf16>, vector<256x128xbf16>, vector<128x128xf32> -> vector<128x128xf32>
    %c0_42 = arith.constant 0 : index
    %c0_43 = arith.constant 0 : index
    %88 = vector.load %arg11[%c0_42, %c0_43] : memref<1x128xf32, #tpu.memory_space<vmem>>, vector<1x128xf32>
    %89 = vector.broadcast %88 : vector<1x128xf32> to vector<128x128xf32>
    %90 = arith.addf %87, %89 : vector<128x128xf32>
    %c0_44 = arith.constant 0 : index
    %c0_45 = arith.constant 0 : index
    %91 = vector.load %arg12[%c0_44, %c0_45] : memref<128x128xf32, #tpu.memory_space<vmem>>, vector<128x128xf32>
    tpu.vector_store %arg12[%c0_44, %c0_45], %90 {strides = array<i32>} : memref<128x128xf32, #tpu.memory_space<vmem>>, vector<128x128xf32>,
    return
  }
}

</mosaic_0001>

<bundles_post_ra>
// kernel: simple_dense_net_forward.1
= control target key start
LH: loop header
LB: loop body
LE: loop exit
PB: predicated region body
PF: predicated region fallthrough
CT: control target
= control target key end

     0   :  { %vm798_vm0 = vcmask 130048   ;;  %vm1667_vm7 = vcmask 1040384   ;;  %s7478_s1 = inlined_call_operand.vmem [shape: bf16[784,256], index: 1, kind: input, shape index: {}]   ;;  %s7479_s0 = inlined_call_operand.vmem [shape: f32[128,784], index: 0, kind: input, shape index: {}]   ;;  %s7480_s4 = inlined_call_operand.vmem [shape: bf16[256,256], index: 4, kind: input, shape index: {}]   ;;  %s7481_s2 = inlined_call_operand.vmem [shape: f32[1,256], index: 2, kind: input, shape index: {}]   ;;  %s7482_s3 = inlined_call_operand.vmem [shape: f32[1,256], index: 3, kind: input, shape index: {}]   ;;  %s7483_s7 = inlined_call_operand.vmem [shape: bf16[256,256], index: 7, kind: input, shape index: {}]   ;;  %s7484_s5 = inlined_call_operand.vmem [shape: f32[1,256], index: 5, kind: input, shape index: {}]   ;;  %s7485_s6 = inlined_call_operand.vmem [shape: f32[1,256], index: 6, kind: input, shape index: {}]   ;;  %s7486_s10 = inlined_call_operand.vmem [shape: bf16[256,128], index: 10, kind: input, shape index: {}]   ;;  %s7487_s8 = inlined_call_operand.vmem [shape: f32[1,256], index: 8, kind: input, shape index: {}]   ;;  %s7488_s9 = inlined_call_operand.vmem [shape: f32[1,256], index: 9, kind: input, shape index: {}]   ;;  %s7489_s11 = inlined_call_operand.vmem [shape: f32[1,128], index: 11, kind: input, shape index: {}]   ;;  %s7490_s12 = inlined_call_operand.vmem [shape: f32[128,128], index: 12, kind: output, shape index: {}]  }
   0x1   :  { %v3453_v0 = vld [vmem:[%s7478_s1 + $0x70] sm:$0xf]  ;;  %v4138_v1 = vld [vmem:[%s7478_s1 + $0x74] sm:$0xf0]  ;;  %v3445_v11 = vld [vmem:[%s7478_s1 + $0x60] sm:$0xf] }
   0x2   :  { %v3517_v2 = vld [vmem:[%s7478_s1 + $0xf0] sm:$0xf]  ;;  %v3454_v3 = vor.u32 %v4138_v1, %v3453_v0  ;;  %v4154_v4 = vld [vmem:[%s7478_s1 + $0xf4] sm:$0xf0]  ;;  %v4136_v13 = vld [vmem:[%s7478_s1 + $0x64] sm:$0xf0] }
   0x3   :  { %v3581_v5 = vld [vmem:[%s7478_s1 + $0x170] sm:$0xf]  ;;  %v4170_v6 = vld [vmem:[%s7478_s1 + $0x174] sm:$0xf0]  ;;  %v3518_v7 = vor.u32 %v4154_v4, %v3517_v2  ;;  %v3509_v14 = vld [vmem:[%s7478_s1 + $0xe0] sm:$0xf]  ;;  %v3446_v16 = vor.u32 %v4136_v13, %v3445_v11 }
   0x4   :  { %v3582_v8 = vor.u32 %v4170_v6, %v3581_v5  ;;  %v3645_v9 = vld [vmem:[%s7478_s1 + $0x1f0] sm:$0xf]  ;;  %v4186_v10 = vld [vmem:[%s7478_s1 + $0x1f4] sm:$0xf0]  ;;  %823 = vmatpush.bf16.msra.mxu0 %v3454_v3  ;;  %v4152_v15 = vld [vmem:[%s7478_s1 + $0xe4] sm:$0xf0] }
   0x5   :  { %v3646_v12 = vor.u32 %v4186_v10, %v3645_v9  ;;  %872 = vmatpush.bf16.msra.mxu1 %v3518_v7  ;;  %v3510_v17 = vor.u32 %v4152_v15, %v3509_v14  ;;  %v3573_v18 = vld [vmem:[%s7478_s1 + $0x160] sm:$0xf]  ;;  %v4168_v19 = vld [vmem:[%s7478_s1 + $0x164] sm:$0xf0]  ;;  %v3437_v23 = vld [vmem:[%s7478_s1 + $0x50] sm:$0xf] }
   0x6   :  { %921 = vmatpush.bf16.msra.mxu2 %v3582_v8  ;;  %v3637_v20 = vld [vmem:[%s7478_s1 + $0x1e0] sm:$0xf]  ;;  %v3574_v21 = vor.u32 %v4168_v19, %v3573_v18  ;;  %v4184_v22 = vld [vmem:[%s7478_s1 + $0x1e4] sm:$0xf0]  ;;  %v4134_v24 = vld [vmem:[%s7478_s1 + $0x54] sm:$0xf0] }
   0x7   :  { %970 = vmatpush.bf16.msra.mxu3 %v3646_v12  ;;  %v3638_v25 = vor.u32 %v4184_v22, %v3637_v20  ;;  %v3501_v26 = vld [vmem:[%s7478_s1 + $0xd0] sm:$0xf]  ;;  %v4150_v27 = vld [vmem:[%s7478_s1 + $0xd4] sm:$0xf0]  ;;  %v3438_v29 = vor.u32 %v4134_v24, %v3437_v23  ;;  %v3429_v35 = vld [vmem:[%s7478_s1 + $0x40] sm:$0xf] }
   0x8   :  { %v3565_v28 = vld [vmem:[%s7478_s1 + $0x150] sm:$0xf]  ;;  %824 = vmatpush.bf16.msra.mxu0 %v3446_v16  ;;  %v4166_v30 = vld [vmem:[%s7478_s1 + $0x154] sm:$0xf0]  ;;  %v3502_v33 = vor.u32 %v4150_v27, %v3501_v26  ;;  %v4132_v36 = vld [vmem:[%s7478_s1 + $0x44] sm:$0xf0] }
   0x9   :  { %v3629_v31 = vld [vmem:[%s7478_s1 + $0x1d0] sm:$0xf]  ;;  %v4182_v32 = vld [vmem:[%s7478_s1 + $0x1d4] sm:$0xf0]  ;;  %873 = vmatpush.bf16.msra.mxu1 %v3510_v17  ;;  %v3566_v34 = vor.u32 %v4166_v30, %v3565_v28  ;;  %v3493_v37 = vld [vmem:[%s7478_s1 + $0xc0] sm:$0xf]  ;;  %v3430_v44 = vor.u32 %v4132_v36, %v3429_v35 }
   0xa   :  { %922 = vmatpush.bf16.msra.mxu2 %v3574_v21  ;;  %v3630_v38 = vor.u32 %v4182_v32, %v3629_v31  ;;  %v4148_v39 = vld [vmem:[%s7478_s1 + $0xc4] sm:$0xf0]  ;;  %v3557_v40 = vld [vmem:[%s7478_s1 + $0x140] sm:$0xf]  ;;  %v3421_v47 = vld [vmem:[%s7478_s1 + $0x30] sm:$0xf] }
   0xb   :  { %971 = vmatpush.bf16.msra.mxu3 %v3638_v25  ;;  %v4164_v41 = vld [vmem:[%s7478_s1 + $0x144] sm:$0xf0]  ;;  %v3621_v42 = vld [vmem:[%s7478_s1 + $0x1c0] sm:$0xf]  ;;  %v3494_v45 = vor.u32 %v4148_v39, %v3493_v37  ;;  %v4130_v48 = vld [vmem:[%s7478_s1 + $0x34] sm:$0xf0] }
   0xc   :  { %v4180_v43 = vld [vmem:[%s7478_s1 + $0x1c4] sm:$0xf0]  ;;  %825 = vmatpush.bf16.msra.mxu0 %v3438_v29  ;;  %v3558_v46 = vor.u32 %v4164_v41, %v3557_v40  ;;  %v3485_v49 = vld [vmem:[%s7478_s1 + $0xb0] sm:$0xf]  ;;  %v4146_v51 = vld [vmem:[%s7478_s1 + $0xb4] sm:$0xf0]  ;;  %v3422_v56 = vor.u32 %v4130_v48, %v3421_v47 }
   0xd   :  { %874 = vmatpush.bf16.msra.mxu1 %v3502_v33  ;;  %v3622_v50 = vor.u32 %v4180_v43, %v3621_v42  ;;  %v3549_v52 = vld [vmem:[%s7478_s1 + $0x130] sm:$0xf]  ;;  %v4162_v53 = vld [vmem:[%s7478_s1 + $0x134] sm:$0xf0]  ;;  %v3486_v57 = vor.u32 %v4146_v51, %v3485_v49  ;;  %v3413_v59 = vld [vmem:[%s7478_s1 + $0x20] sm:$0xf] }
   0xe   :  { %923 = vmatpush.bf16.msra.mxu2 %v3566_v34  ;;  %v3613_v54 = vld [vmem:[%s7478_s1 + $0x1b0] sm:$0xf]  ;;  %v4178_v55 = vld [vmem:[%s7478_s1 + $0x1b4] sm:$0xf0]  ;;  %v3550_v58 = vor.u32 %v4162_v53, %v3549_v52  ;;  %v4128_v60 = vld [vmem:[%s7478_s1 + $0x24] sm:$0xf0] }
   0xf   :  { %972 = vmatpush.bf16.msra.mxu3 %v3630_v38  ;;  %v3477_v61 = vld [vmem:[%s7478_s1 + $0xa0] sm:$0xf]  ;;  %v3614_v62 = vor.u32 %v4178_v55, %v3613_v54  ;;  %v4144_v63 = vld [vmem:[%s7478_s1 + $0xa4] sm:$0xf0]  ;;  %v3414_v4 = vor.u32 %v4128_v60, %v3413_v59  ;;  %v3405_v7 = vld [vmem:[%s7478_s1 + $0x10] sm:$0xf] }
  0x10   :  { %826 = vmatpush.bf16.msra.mxu0 %v3430_v44  ;;  %v3541_v0 = vld [vmem:[%s7478_s1 + $0x120] sm:$0xf]  ;;  %v4160_v1 = vld [vmem:[%s7478_s1 + $0x124] sm:$0xf0]  ;;  %v3478_v5 = vor.u32 %v4144_v63, %v3477_v61  ;;  %v4126_v8 = vld [vmem:[%s7478_s1 + $0x14] sm:$0xf0] }
  0x11   :  { %875 = vmatpush.bf16.msra.mxu1 %v3494_v45  ;;  %v3605_v2 = vld [vmem:[%s7478_s1 + $0x1a0] sm:$0xf]  ;;  %v4176_v3 = vld [vmem:[%s7478_s1 + $0x1a4] sm:$0xf0]  ;;  %v3542_v6 = vor.u32 %v4160_v1, %v3541_v0  ;;  %v3469_v9 = vld [vmem:[%s7478_s1 + $0x90] sm:$0xf]  ;;  %v3406_v16 = vor.u32 %v4126_v8, %v3405_v7 }
  0x12   :  { %924 = vmatpush.bf16.msra.mxu2 %v3558_v46  ;;  %v3606_v10 = vor.u32 %v4176_v3, %v3605_v2  ;;  %v4142_v11 = vld [vmem:[%s7478_s1 + $0x94] sm:$0xf0]  ;;  %v3533_v12 = vld [vmem:[%s7478_s1 + $0x110] sm:$0xf]  ;;  %v3397_v17 = vld [vmem:[%s7478_s1] sm:$0xf] }
  0x13   :  { %973 = vmatpush.bf16.msra.mxu3 %v3622_v50  ;;  %v4158_v13 = vld [vmem:[%s7478_s1 + $0x114] sm:$0xf0]  ;;  %v3597_v14 = vld [vmem:[%s7478_s1 + $0x190] sm:$0xf]  ;;  %v4124_v18 = vld [vmem:[%s7478_s1 + $0x4] sm:$0xf0]  ;;  %v3470_v20 = vor.u32 %v4142_v11, %v3469_v9 }
  0x14   :  { %827 = vmatpush.bf16.msra.mxu0 %v3422_v56  ;;  %v4174_v15 = vld [vmem:[%s7478_s1 + $0x194] sm:$0xf0]  ;;  %v3461_v19 = vld [vmem:[%s7478_s1 + $0x80] sm:$0xf]  ;;  %v3534_v21 = vor.u32 %v4158_v13, %v3533_v12  ;;  %v4140_v22 = vld [vmem:[%s7478_s1 + $0x84] sm:$0xf0]  ;;  %v3398_v32 = vor.u32 %v4124_v18, %v3397_v17 }
  0x15   :  { %876 = vmatpush.bf16.msra.mxu1 %v3486_v57  ;;  %v3525_v23 = vld [vmem:[%s7478_s1 + $0x100] sm:$0xf]  ;;  %v4156_v24 = vld [vmem:[%s7478_s1 + $0x104] sm:$0xf0]  ;;  %v3598_v25 = vor.u32 %v4174_v15, %v3597_v14  ;;  %v49_v29 = vld [vmem:[%s7479_s0 + $0x38] sm:$0xff]  ;;  %v3462_v36 = vor.u32 %v4140_v22, %v3461_v19 }
  0x16   :  { %925 = vmatpush.bf16.msra.mxu2 %v3550_v58  ;;  %v3589_v26 = vld [vmem:[%s7478_s1 + $0x180] sm:$0xf]  ;;  %v4172_v27 = vld [vmem:[%s7478_s1 + $0x184] sm:$0xf0]  ;;  %v3709_v30 = vld [vmem:[%s7478_s1 + $0x270] sm:$0xf]  ;;  %v3526_v37 = vor.u32 %v4156_v24, %v3525_v23 }
  0x17   :  { %974 = vmatpush.bf16.msra.mxu3 %v3614_v62  ;;  %v42_v28 = vld [vmem:[%s7479_s0] sm:$0xff]  ;;  %v4202_v31 = vld [vmem:[%s7478_s1 + $0x274] sm:$0xf0]  ;;  %v43_v33 = vld [vmem:[%s7479_s0 + $0x8] sm:$0xff]  ;;  %v3590_v41 = vor.u32 %v4172_v27, %v3589_v26 }
  0x18   :  { %828 = vmatpush.bf16.msra.mxu0 %v3414_v4  ;;  %v3773_v34 = vld [vmem:[%s7478_s1 + $0x2f0] sm:$0xf]  ;;  %v4218_v35 = vld [vmem:[%s7478_s1 + $0x2f4] sm:$0xf0]  ;;  %v50_v38 = vld [vmem:[%s7479_s0 + $0x40] sm:$0xff]  ;;  %v3710_v42 = vor.u32 %v4202_v31, %v3709_v30  ;;  %v4611_v45 = vpack.c.bf16 %v49_v29, %v42_v28 }
  0x19   :  { %877 = vmatpush.bf16.msra.mxu1 %v3478_v5  ;;  %v44_v39 = vld [vmem:[%s7479_s0 + $0x10] sm:$0xff]  ;;  %v51_v40 = vld [vmem:[%s7479_s0 + $0x48] sm:$0xff]  ;;  %v45_v43 = vld [vmem:[%s7479_s0 + $0x18] sm:$0xff]  ;;  %v3774_v46 = vor.u32 %v4218_v35, %v3773_v34  ;;  %v4619_v49 = vpack.c.bf16 %v50_v38, %v43_v33 }
  0x1a   :  { %926 = vmatpush.bf16.msra.mxu2 %v3542_v6  ;;  %v52_v44 = vld [vmem:[%s7479_s0 + $0x50] sm:$0xff]  ;;  %v3701_v47 = vld [vmem:[%s7478_s1 + $0x260] sm:$0xf]  ;;  %v4200_v48 = vld [vmem:[%s7478_s1 + $0x264] sm:$0xf0]  ;;  %v4621_v50 = vpack.c.bf16 %v51_v40, %v44_v39 }
  0x1b   :  { %975 = vmatpush.bf16.msra.mxu3 %v3606_v10  ;;  %v3765_v51 = vld [vmem:[%s7478_s1 + $0x2e0] sm:$0xf]  ;;  %v4216_v52 = vld [vmem:[%s7478_s1 + $0x2e4] sm:$0xf0]  ;;  %v4629_v53 = vpack.c.bf16 %v52_v44, %v45_v43  ;;  %v3702_v54 = vor.u32 %v4200_v48, %v3701_v47  ;;  %v3693_v56 = vld [vmem:[%s7478_s1 + $0x250] sm:$0xf] }
  0x1c   :  { %829 = vmatpush.bf16.msra.mxu0 %v3406_v16  ;;  %v3766_v55 = vor.u32 %v4216_v52, %v3765_v51  ;;  %v4198_v57 = vld [vmem:[%s7478_s1 + $0x254] sm:$0xf0]  ;;  %v3757_v58 = vld [vmem:[%s7478_s1 + $0x2d0] sm:$0xf]  ;;  %v63_v63 = vld [vmem:[%s7479_s0 + $0xa8] sm:$0xff] }
  0x1d   :  { %878 = vmatpush.bf16.msra.mxu1 %v3470_v20  ;;  %v4214_v59 = vld [vmem:[%s7478_s1 + $0x2d4] sm:$0xf0]  ;;  %v3694_v60 = vor.u32 %v4198_v57, %v3693_v56  ;;  %v56_v62 = vld [vmem:[%s7479_s0 + $0x70] sm:$0xff]  ;;  %v58_v2 = vld [vmem:[%s7479_s0 + $0x80] sm:$0xff] }
  0x1e   :  { %927 = vmatpush.bf16.msra.mxu2 %v3534_v21  ;;  %v3758_v61 = vor.u32 %v4214_v59, %v3757_v58  ;;  %v57_v0 = vld [vmem:[%s7479_s0 + $0x78] sm:$0xff]  ;;  %v64_v1 = vld [vmem:[%s7479_s0 + $0xb0] sm:$0xff]  ;;  %v59_v4 = vld [vmem:[%s7479_s0 + $0x88] sm:$0xff]  ;;  %v4671_v6 = vpack.c.bf16 %v63_v63, %v56_v62 }
  0x1f   :  { %976 = vmatpush.bf16.msra.mxu3 %v3598_v25  ;;  %v65_v3 = vld [vmem:[%s7479_s0 + $0xb8] sm:$0xff]  ;;  %v66_v5 = vld [vmem:[%s7479_s0 + $0xc0] sm:$0xff]  ;;  %v4673_v7 = vpack.c.bf16 %v64_v1, %v57_v0  ;;  %v4196_v11 = vld [vmem:[%s7478_s1 + $0x244] sm:$0xf0] }
  0x20   :  { %830 = vmatpush.bf16.msra.mxu0 %v3398_v32  ;;  %v4675_v8 = vpack.c.bf16 %v65_v3, %v58_v2  ;;  %v4677_v9 = vpack.c.bf16 %v66_v5, %v59_v4  ;;  %v3685_v10 = vld [vmem:[%s7478_s1 + $0x240] sm:$0xf]  ;;  %v4212_v14 = vld [vmem:[%s7478_s1 + $0x2c4] sm:$0xf0]  ;;  %v77_v17 = vld [vmem:[%s7479_s0 + $0x118] sm:$0xff] }
  0x21   :  { %879 = vmatpush.bf16.msra.mxu1 %v3462_v36  ;;  %v3686_v12 = vor.u32 %v4196_v11, %v3685_v10  ;;  %v3749_v13 = vld [vmem:[%s7478_s1 + $0x2c0] sm:$0xf]  ;;  %v71_v18 = vld [vmem:[%s7479_s0 + $0xe8] sm:$0xff]  ;;  %v72_v20 = vld [vmem:[%s7479_s0 + $0xf0] sm:$0xff] }
  0x22   :  { %928 = vmatpush.bf16.msra.mxu2 %v3526_v37  ;;  %v3750_v15 = vor.u32 %v4212_v14, %v3749_v13  ;;  %v70_v16 = vld [vmem:[%s7479_s0 + $0xe0] sm:$0xff]  ;;  %v79_v21 = vld [vmem:[%s7479_s0 + $0x128] sm:$0xff]  ;;  %v73_v22 = vld [vmem:[%s7479_s0 + $0xf8] sm:$0xff] }
  0x23   :  { %977 = vmatpush.bf16.msra.mxu3 %v3590_v41  ;;  %831 = vmatmul.bf16.vlgmr.msra.gmra.mxu0 %v4611_v45  ;;  %v78_v19 = vld [vmem:[%s7479_s0 + $0x120] sm:$0xff]  ;;  %v80_v23 = vld [vmem:[%s7479_s0 + $0x130] sm:$0xff]  ;;  %v4719_v24 = vpack.c.bf16 %v77_v17, %v70_v16  ;;  %v4723_v26 = vpack.c.bf16 %v79_v21, %v72_v20  ;;  %v4194_v29 = vld [vmem:[%s7478_s1 + $0x234] sm:$0xf0] }
  0x24   :  { %1019 = vmatpush.bf16.msrb.mxu0 %v3710_v42  ;;  %880 = vmatmul.bf16.vlgmr.msra.gmra.mxu1 %v4619_v49  ;;  %v4721_v25 = vpack.c.bf16 %v78_v19, %v71_v18  ;;  %v4725_v27 = vpack.c.bf16 %v80_v23, %v73_v22  ;;  %v3677_v28 = vld [vmem:[%s7478_s1 + $0x230] sm:$0xf]  ;;  %v4210_v32 = vld [vmem:[%s7478_s1 + $0x2b4] sm:$0xf0]  ;;  %v91_v35 = vld [vmem:[%s7479_s0 + $0x188] sm:$0xff] }
  0x25   :  { %1068 = vmatpush.bf16.msrb.mxu1 %v3774_v46  ;;  %929 = vmatmul.bf16.vlgmr.msra.gmra.mxu2 %v4621_v50  ;;  %v3678_v30 = vor.u32 %v4194_v29, %v3677_v28  ;;  %v3741_v31 = vld [vmem:[%s7478_s1 + $0x2b0] sm:$0xf]  ;;  %v85_v36 = vld [vmem:[%s7479_s0 + $0x158] sm:$0xff]  ;;  %v86_v38 = vld [vmem:[%s7479_s0 + $0x160] sm:$0xff] }
  0x26   :  { %978 = vmatmul.bf16.vlgmr.msra.gmra.mxu3 %v4629_v53  ;;  %v3742_v33 = vor.u32 %v4210_v32, %v3741_v31  ;;  %v84_v34 = vld [vmem:[%s7479_s0 + $0x150] sm:$0xff]  ;;  %v93_v39 = vld [vmem:[%s7479_s0 + $0x198] sm:$0xff]  ;;  %v87_v40 = vld [vmem:[%s7479_s0 + $0x168] sm:$0xff] }
  0x27   :  { %v92_v37 = vld [vmem:[%s7479_s0 + $0x190] sm:$0xff]  ;;  %v94_v41 = vld [vmem:[%s7479_s0 + $0x1a0] sm:$0xff]  ;;  %v4767_v42 = vpack.c.bf16 %v91_v35, %v84_v34  ;;  %v4771_v44 = vpack.c.bf16 %v93_v39, %v86_v38  ;;  %v4192_v48 = vld [vmem:[%s7478_s1 + $0x224] sm:$0xf0] }
  0x28   :  { %1020 = vmatpush.bf16.msrb.mxu0 %v3702_v54  ;;  %v4769_v43 = vpack.c.bf16 %v92_v37, %v85_v36  ;;  %v4773_v46 = vpack.c.bf16 %v94_v41, %v87_v40  ;;  %v3669_v47 = vld [vmem:[%s7478_s1 + $0x220] sm:$0xf]  ;;  %v4208_v54 = vld [vmem:[%s7478_s1 + $0x2a4] sm:$0xf0]  ;;  %v105_v57 = vld [vmem:[%s7479_s0 + $0x1f8] sm:$0xff] }
  0x29   :  { %1069 = vmatpush.bf16.msrb.mxu1 %v3766_v55  ;;  %v3670_v51 = vor.u32 %v4192_v48, %v3669_v47  ;;  %v3733_v52 = vld [vmem:[%s7478_s1 + $0x2a0] sm:$0xf]  ;;  %v99_v58 = vld [vmem:[%s7479_s0 + $0x1c8] sm:$0xff]  ;;  %v101_v62 = vld [vmem:[%s7479_s0 + $0x1d8] sm:$0xff] }
  0x2a   :  { %v3734_v55 = vor.u32 %v4208_v54, %v3733_v52  ;;  %v98_v56 = vld [vmem:[%s7479_s0 + $0x1c0] sm:$0xff]  ;;  %v108_v63 = vld [vmem:[%s7479_s0 + $0x210] sm:$0xff]  ;;  %v4190_v5 = vld [vmem:[%s7478_s1 + $0x214] sm:$0xf0] }
  0x2b   :  { %v106_v59 = vld [vmem:[%s7479_s0 + $0x200] sm:$0xff]  ;;  %v4815_v0 = vpack.c.bf16 %v105_v57, %v98_v56  ;;  %v4821_v3 = vpack.c.bf16 %v108_v63, %v101_v62  ;;  %v3661_v4 = vld [vmem:[%s7478_s1 + $0x210] sm:$0xf]  ;;  %v4137_v10 = vld [vmem:[%s7478_s1 + $0x74] sm:$0xf] }
  0x2c   :  { %1021 = vmatpush.bf16.msrb.mxu0 %v3694_v60  ;;  %v100_v60 = vld [vmem:[%s7479_s0 + $0x1d0] sm:$0xff]  ;;  %v4817_v1 = vpack.c.bf16 %v106_v59, %v99_v58  ;;  %v3662_v11 = vor.u32 %v4190_v5, %v3661_v4  ;;  %v4206_v13 = vld [vmem:[%s7478_s1 + $0x294] sm:$0xf0]  ;;  %v3455_v14 = vld [vmem:[%s7478_s1 + $0x78] sm:$0xf0] }
  0x2d   :  { %1070 = vmatpush.bf16.msrb.mxu1 %v3758_v61  ;;  %v107_v61 = vld [vmem:[%s7479_s0 + $0x208] sm:$0xff]  ;;  %v3458_v16 = vor.u32 %v4137_v10, %v3455_v14  ;;  %v4135_v17 = vld [vmem:[%s7478_s1 + $0x64] sm:$0xf]  ;;  %v4133_v20 = vld [vmem:[%s7478_s1 + $0x54] sm:$0xf] }
  0x2e   :  { %v4819_v2 = vpack.c.bf16 %v107_v61, %v100_v60  ;;  %v3447_v18 = vld [vmem:[%s7478_s1 + $0x68] sm:$0xf0]  ;;  %v3439_v21 = vld [vmem:[%s7478_s1 + $0x58] sm:$0xf0]  ;;  %v112_v22 = vld [vmem:[%s7479_s0 + $0x230] sm:$0xff] }
  0x2f   :  { %1166 = vmatpush.bf16.msrb.mxu3 %v3458_v16  ;;  %v3450_v19 = vor.u32 %v4135_v17, %v3447_v18  ;;  %v119_v23 = vld [vmem:[%s7479_s0 + $0x268] sm:$0xff]  ;;  %v113_v28 = vld [vmem:[%s7479_s0 + $0x238] sm:$0xff]  ;;  %v3442_v29 = vor.u32 %v4133_v20, %v3439_v21  ;;  %v114_v31 = vld [vmem:[%s7479_s0 + $0x240] sm:$0xff] }
  0x30   :  { %1022 = vmatpush.bf16.msrb.mxu0 %v3686_v12  ;;  %v3725_v12 = vld [vmem:[%s7478_s1 + $0x290] sm:$0xf]  ;;  %v121_v32 = vld [vmem:[%s7479_s0 + $0x278] sm:$0xff]  ;;  %v122_v34 = vld [vmem:[%s7479_s0 + $0x280] sm:$0xff]  ;;  %v4881_v35 = vpack.c.bf16 %v119_v23, %v112_v22 }
  0x31   :  { %1071 = vmatpush.bf16.msrb.mxu1 %v3750_v15  ;;  %v3726_v15 = vor.u32 %v4206_v13, %v3725_v12  ;;  %v4131_v36 = vld [vmem:[%s7478_s1 + $0x44] sm:$0xf]  ;;  %v3431_v37 = vld [vmem:[%s7478_s1 + $0x48] sm:$0xf0]  ;;  %v4891_v39 = vpack.c.bf16 %v121_v32, %v114_v31  ;;  %v3653_v47 = vld [vmem:[%s7478_s1 + $0x200] sm:$0xf] }
  0x32   :  { %v3434_v41 = vor.u32 %v4131_v36, %v3431_v37  ;;  %v4188_v48 = vld [vmem:[%s7478_s1 + $0x204] sm:$0xf0]  ;;  %v3717_v54 = vld [vmem:[%s7478_s1 + $0x280] sm:$0xf]  ;;  %v3423_v56 = vld [vmem:[%s7478_s1 + $0x38] sm:$0xf0] }
  0x33   :  { %836 = vmatmul.bf16.gmra.mxu0 %v4671_v6  ;;  %1167 = vmatpush.bf16.msrb.mxu3 %v3450_v19  ;;  %v3654_v52 = vor.u32 %v4188_v48, %v3653_v47  ;;  %v3781_v59 = vld [vmem:[%s7478_s1 + $0x300] sm:$0xf]  ;;  %v4220_v60 = vld [vmem:[%s7478_s1 + $0x304] sm:$0xf0]  ;;  %v4127_v62 = vld [vmem:[%s7478_s1 + $0x24] sm:$0xf] }
  0x34   :  { %885 = vmatmul.bf16.gmra.mxu1 %v4673_v7  ;;  %1023 = vmatpush.bf16.msrb.mxu0 %v3678_v30  ;;  %v120_v30 = vld [vmem:[%s7479_s0 + $0x270] sm:$0xff]  ;;  %v3782_v61 = vor.u32 %v4220_v60, %v3781_v59  ;;  %v3415_v63 = vld [vmem:[%s7478_s1 + $0x28] sm:$0xf0]  ;;  %v3407_v10 = vld [vmem:[%s7478_s1 + $0x18] sm:$0xf0] }
  0x35   :  { %934 = vmatmul.bf16.gmra.mxu2 %v4675_v8  ;;  %1072 = vmatpush.bf16.msrb.mxu1 %v3742_v33  ;;  %v115_v33 = vld [vmem:[%s7479_s0 + $0x248] sm:$0xff]  ;;  %v4889_v38 = vpack.c.bf16 %v120_v30, %v113_v28  ;;  %v3418_v4 = vor.u32 %v4127_v62, %v3415_v63  ;;  %v4125_v5 = vld [vmem:[%s7478_s1 + $0x14] sm:$0xf]  ;;  %v133_v12 = vld [vmem:[%s7479_s0 + $0x2d8] sm:$0xff] }
  0x36   :  { %983 = vmatmul.bf16.gmra.mxu3 %v4677_v9  ;;  %v4893_v40 = vpack.c.bf16 %v122_v34, %v115_v33  ;;  %1124 = vmatpush.bf16.msrb.mxu2 %v3782_v61  ;;  %v127_v13 = vld [vmem:[%s7479_s0 + $0x2a8] sm:$0xff]  ;;  %v134_v14 = vld [vmem:[%s7479_s0 + $0x2e0] sm:$0xff]  ;;  %v129_v17 = vld [vmem:[%s7479_s0 + $0x2b8] sm:$0xff]  ;;  %v3410_v19 = vor.u32 %v4125_v5, %v3407_v10 }
  0x37   :  { %1168 = vmatpush.bf16.msrb.mxu3 %v3442_v29  ;;  %v135_v16 = vld [vmem:[%s7479_s0 + $0x2e8] sm:$0xff]  ;;  %v136_v18 = vld [vmem:[%s7479_s0 + $0x2f0] sm:$0xff]  ;;  %v4961_v21 = vpack.c.bf16 %v134_v14, %v127_v13  ;;  %v4123_v23 = vld [vmem:[%s7478_s1 + $0x4] sm:$0xf] }
  0x38   :  { %1024 = vmatpush.bf16.msrb.mxu0 %v3670_v51  ;;  %v4129_v51 = vld [vmem:[%s7478_s1 + $0x34] sm:$0xf]  ;;  %v3399_v28 = vld [vmem:[%s7478_s1 + $0x8] sm:$0xf0]  ;;  %v4971_v29 = vpack.c.bf16 %v136_v18, %v129_v17  ;;  %v3519_v32 = vld [vmem:[%s7478_s1 + $0xf8] sm:$0xf0] }
  0x39   :  { %1073 = vmatpush.bf16.msrb.mxu1 %v3734_v55  ;;  %v4204_v55 = vld [vmem:[%s7478_s1 + $0x284] sm:$0xf0]  ;;  %v3426_v58 = vor.u32 %v4129_v51, %v3423_v56  ;;  %v3402_v30 = vor.u32 %v4123_v23, %v3399_v28  ;;  %v4153_v31 = vld [vmem:[%s7478_s1 + $0xf4] sm:$0xf]  ;;  %v3583_v36 = vld [vmem:[%s7478_s1 + $0x178] sm:$0xf0] }
  0x3a   :  { %v3718_v57 = vor.u32 %v4204_v55, %v3717_v54  ;;  %v3522_v33 = vor.u32 %v4153_v31, %v3519_v32  ;;  %v4169_v34 = vld [vmem:[%s7478_s1 + $0x174] sm:$0xf]  ;;  %v147_v47 = vld [vmem:[%s7479_s0 + $0x348] sm:$0xff]  ;;  %v141_v48 = vld [vmem:[%s7479_s0 + $0x318] sm:$0xff] }
  0x3b   :  { %1169 = vmatpush.bf16.msrb.mxu3 %v3434_v41  ;;  %v3586_v37 = vor.u32 %v4169_v34, %v3583_v36  ;;  %v140_v41 = vld [vmem:[%s7479_s0 + $0x310] sm:$0xff]  ;;  %v149_v54 = vld [vmem:[%s7479_s0 + $0x358] sm:$0xff]  ;;  %v143_v55 = vld [vmem:[%s7479_s0 + $0x328] sm:$0xff] }
  0x3c   :  { %1025 = vmatpush.bf16.msrb.mxu0 %v3662_v11  ;;  %v126_v11 = vld [vmem:[%s7479_s0 + $0x2a0] sm:$0xff]  ;;  %v148_v51 = vld [vmem:[%s7479_s0 + $0x350] sm:$0xff]  ;;  %v3511_v62 = vld [vmem:[%s7478_s1 + $0xe8] sm:$0xf0] }
  0x3d   :  { %1074 = vmatpush.bf16.msrb.mxu1 %v3726_v15  ;;  %v128_v15 = vld [vmem:[%s7479_s0 + $0x2b0] sm:$0xff]  ;;  %v4959_v20 = vpack.c.bf16 %v133_v12, %v126_v11  ;;  %v150_v56 = vld [vmem:[%s7479_s0 + $0x360] sm:$0xff]  ;;  %v3575_v5 = vld [vmem:[%s7478_s1 + $0x168] sm:$0xf0] }
  0x3e   :  { %v4963_v22 = vpack.c.bf16 %v135_v16, %v128_v15  ;;  %v5019_v60 = vpack.c.bf16 %v150_v56, %v143_v55  ;;  %v4151_v61 = vld [vmem:[%s7478_s1 + $0xe4] sm:$0xf]  ;;  %v53_v12 = vld [vmem:[%s7479_s0 + $0x58] sm:$0xff]  ;;  %v47_v13 = vld [vmem:[%s7479_s0 + $0x28] sm:$0xff] }
  0x3f   :  { %1170 = vmatpush.bf16.msrb.mxu3 %v3426_v58  ;;  %v5015_v58 = vpack.c.bf16 %v148_v51, %v141_v48  ;;  %v3514_v63 = vor.u32 %v4151_v61, %v3511_v62  ;;  %v46_v11 = vld [vmem:[%s7479_s0 + $0x20] sm:$0xff]  ;;  %v48_v15 = vld [vmem:[%s7479_s0 + $0x30] sm:$0xff]  ;;  %v55_v16 = vld [vmem:[%s7479_s0 + $0x68] sm:$0xff] }
  0x40   :  { %1026 = vmatpush.bf16.msrb.mxu0 %v3654_v52  ;;  %v142_v52 = vld [vmem:[%s7479_s0 + $0x320] sm:$0xff]  ;;  %7516 = vst [vmem:[#allocation2_spill] sm:$0xff] %v5019_v60  ;;  %v5055_v17 = vpack.c.bf16 %v53_v12, %v46_v11  ;;  %v5059_v23 = vpack.c.bf16 %v55_v16, %v48_v15  ;;  %v4149_v31 = vld [vmem:[%s7478_s1 + $0xd4] sm:$0xf]  ;;  %v3503_v32 = vld [vmem:[%s7478_s1 + $0xd8] sm:$0xf0] }
  0x41   :  { %1075 = vmatpush.bf16.msrb.mxu1 %v3718_v57  ;;  %v5013_v57 = vpack.c.bf16 %v147_v47, %v140_v41  ;;  %v5017_v59 = vpack.c.bf16 %v149_v54, %v142_v52  ;;  %v54_v14 = vld [vmem:[%s7479_s0 + $0x60] sm:$0xff]  ;;  %v4165_v34 = vld [vmem:[%s7478_s1 + $0x154] sm:$0xf]  ;;  %v3567_v36 = vld [vmem:[%s7478_s1 + $0x158] sm:$0xf0] }
  0x42   :  { %7518 = vst [vmem:[#allocation4_spill] sm:$0xff] %v5059_v23  ;;  %v67_v56 = vld [vmem:[%s7479_s0 + $0xc8] sm:$0xff]  ;;  %v61_v61 = vld [vmem:[%s7479_s0 + $0x98] sm:$0xff]  ;;  %v68_v62 = vld [vmem:[%s7479_s0 + $0xd0] sm:$0xff] }
  0x43   :  { %841 = vmatmul.bf16.gmra.mxu0 %v4719_v24  ;;  %1171 = vmatpush.bf16.msrb.mxu3 %v3418_v4  ;;  %v4167_v4 = vld [vmem:[%s7478_s1 + $0x164] sm:$0xf] }
  0x44   :  { %890 = vmatmul.bf16.gmra.mxu1 %v4721_v25  ;;  %1215 = vmatpush.bf16.msra.mxu0 %v3522_v33  ;;  %v3578_v10 = vor.u32 %v4167_v4, %v3575_v5  ;;  %v3506_v33 = vor.u32 %v4149_v31, %v3503_v32  ;;  %v69_v4 = vld [vmem:[%s7479_s0 + $0xd8] sm:$0xff]  ;;  %v3495_v31 = vld [vmem:[%s7478_s1 + $0xc8] sm:$0xf0] }
  0x45   :  { %939 = vmatmul.bf16.gmra.mxu2 %v4723_v26  ;;  %1264 = vmatpush.bf16.msra.mxu1 %v3586_v37  ;;  %v3570_v37 = vor.u32 %v4165_v34, %v3567_v36  ;;  %v3559_v34 = vld [vmem:[%s7478_s1 + $0x148] sm:$0xf0] }
  0x46   :  { %988 = vmatmul.bf16.gmra.mxu3 %v4725_v27 }
  0x47   :  { %1172 = vmatpush.bf16.msrb.mxu3 %v3410_v19  ;;  %v5057_v19 = vpack.c.bf16 %v54_v14, %v47_v13  ;;  %v5100_v14 = vpack.c.bf16 %v68_v62, %v61_v61  ;;  %v82_v61 = vld [vmem:[%s7479_s0 + $0x140] sm:$0xff]  ;;  %v76_v62 = vld [vmem:[%s7479_s0 + $0x110] sm:$0xff] }
  0x48   :  { %1216 = vmatpush.bf16.msra.mxu0 %v3514_v63  ;;  %v62_v63 = vld [vmem:[%s7479_s0 + $0xa0] sm:$0xff] }
  0x49   :  { %1265 = vmatpush.bf16.msra.mxu1 %v3578_v10  ;;  %7517 = vst [vmem:[#allocation3_spill] sm:$0xff] %v5057_v19  ;;  %v5102_v15 = vpack.c.bf16 %v69_v4, %v62_v63  ;;  %v83_v63 = vld [vmem:[%s7479_s0 + $0x148] sm:$0xff] }
  0x4a   :  { %7519 = vst [vmem:[#allocation5_spill] sm:$0xff] %v5100_v14 }
  0x4b   :  { %1173 = vmatpush.bf16.msrb.mxu3 %v3402_v30  ;;  %7520 = vst [vmem:[#allocation6_spill] sm:$0xff] %v5102_v15 }
  0x4c   :  { %1217 = vmatpush.bf16.msra.mxu0 %v3506_v33  ;;  %v4163_v33 = vld [vmem:[%s7478_s1 + $0x144] sm:$0xf] }
  0x4d   :  { %1266 = vmatpush.bf16.msra.mxu1 %v3570_v37  ;;  %v3562_v36 = vor.u32 %v4163_v33, %v3559_v34  ;;  %v4145_v33 = vld [vmem:[%s7478_s1 + $0xb4] sm:$0xf]  ;;  %v3487_v34 = vld [vmem:[%s7478_s1 + $0xb8] sm:$0xf0] }
  0x51   :  { %1267 = vmatpush.bf16.msra.mxu1 %v3562_v36  ;;  %v3490_v36 = vor.u32 %v4145_v33, %v3487_v34 }
  0x53   :  { %846 = vmatmul.bf16.gmra.mxu0 %v4767_v42 }
  0x54   :  { %895 = vmatmul.bf16.gmra.mxu1 %v4769_v43 }
  0x55   :  { %944 = vmatmul.bf16.gmra.mxu2 %v4771_v44 }
  0x56   :  { %993 = vmatmul.bf16.gmra.mxu3 %v4773_v46 }
  0x63   :  { %851 = vmatmul.bf16.gmra.mxu0 %v4815_v0 }
  0x64   :  { %900 = vmatmul.bf16.gmra.mxu1 %v4817_v1 }
  0x65   :  { %949 = vmatmul.bf16.gmra.mxu2 %v4819_v2 }
  0x66   :  { %998 = vmatmul.bf16.gmra.mxu3 %v4821_v3 }
  0x73   :  { %856 = vmatmul.bf16.gmra.mxu0 %v4881_v35 }
  0x74   :  { %905 = vmatmul.bf16.gmra.mxu1 %v4889_v38 }
  0x75   :  { %954 = vmatmul.bf16.gmra.mxu2 %v4891_v39 }
  0x76   :  { %1003 = vmatmul.bf16.gmra.mxu3 %v4893_v40 }
  0x83   :  { %861 = vmatmul.bf16.gmra.mxu0 %v4959_v20 }
  0x84   :  { %910 = vmatmul.bf16.gmra.mxu1 %v4961_v21 }
  0x85   :  { %959 = vmatmul.bf16.gmra.mxu2 %v4963_v22 }
  0x86   :  { %1008 = vmatmul.bf16.gmra.mxu3 %v4971_v29 }
  0x93   :  { %866 = vmatmul.bf16.gmra.mxu0 %v5013_v57 }
  0x94   :  { %915 = vmatmul.bf16.gmra.mxu1 %v5015_v58 }
  0x95   :  { %964 = vmatmul.bf16.gmra.mxu2 %v5017_v59 }
  0x96   :  { %1013 = vmatmul.bf16.gmra.mxu3 %v5019_v60 }
  0xa0   :  { %v832_v18 = vpop.f32.mrf.mxu0 }
  0xa1   :  { %v881_v28 = vpop.f32.mrf.mxu1 }
  0xa2   :  { %v882_v30 = vadd.f32 %v881_v28, %v832_v18 }
  0xa3   :  { %1027 = vmatmul.bf16.vlgmr.msrb.gmra.mxu0 %v5055_v17 }
  0xa4   :  { %1076 = vmatmul.bf16.vlgmr.msrb.gmra.mxu1 %v5057_v19 }
  0xa5   :  { %3787 = vmatmul.msk.bf16.vlgmr.msrb.gmra.mxu2 %vm798_vm0, %v5059_v23 }
  0xa6   :  { %1174 = vmatmul.bf16.vlgmr.msrb.gmra.mxu3 %v4611_v45  ;;  %v60_v45 = vld [vmem:[%s7479_s0 + $0x90] sm:$0xff] }
  0xa7   :  { %v5098_v10 = vpack.c.bf16 %v67_v56, %v60_v45  ;;  %v81_v45 = vld [vmem:[%s7479_s0 + $0x138] sm:$0xff]  ;;  %v75_v56 = vld [vmem:[%s7479_s0 + $0x108] sm:$0xff] }
  0xa8   :  { %v930_v41 = vpop.f32.mrf.mxu2  ;;  %v834_v48 = vpop.f32.mrf.mxu0 }
  0xa9   :  { %v931_v47 = vadd.f32 %v930_v41, %v882_v30  ;;  %v979_v51 = vpop.f32.mrf.mxu3  ;;  %v883_v52 = vpop.f32.mrf.mxu1  ;;  %v4147_v30 = vld [vmem:[%s7478_s1 + $0xc4] sm:$0xf] }
  0xaa   :  { %v884_v54 = vadd.f32 %v883_v52, %v834_v48  ;;  %v3498_v32 = vor.u32 %v4147_v30, %v3495_v31 }
  0xab   :  { %v5078_v55 = vadd.f32 %v979_v51, %v931_v47 }
  0xac   :  { %1218 = vmatpush.bf16.msra.mxu0 %v3498_v32 }
  0xb0   :  { %v932_v5 = vpop.f32.mrf.mxu2  ;;  %v837_v12 = vpop.f32.mrf.mxu0  ;;  %1219 = vmatpush.bf16.msra.mxu0 %v3490_v36 }
  0xb1   :  { %v933_v11 = vadd.f32 %v932_v5, %v884_v54  ;;  %v981_v13 = vpop.f32.mrf.mxu3  ;;  %v886_v16 = vpop.f32.mrf.mxu1 }
  0xb2   :  { %v887_v18 = vadd.f32 %v886_v16, %v837_v12  ;;  %v5145_v16 = vpack.c.bf16 %v82_v61, %v75_v56 }
  0xb3   :  { %v5104_v28 = vadd.f32 %v981_v13, %v933_v11  ;;  %1032 = vmatmul.bf16.gmra.mxu0 %v5098_v10 }
  0xb4   :  { %1081 = vmatmul.bf16.gmra.mxu1 %v5100_v14  ;;  %7521 = vst [vmem:[#allocation7_spill] sm:$0xff] %v5145_v16 }
  0xb5   :  { %3788 = vmatmul.msk.bf16.gmra.mxu2 %vm798_vm0, %v5102_v15 }
  0xb6   :  { %1179 = vmatmul.bf16.gmra.mxu3 %v4671_v6  ;;  %v74_v6 = vld [vmem:[%s7479_s0 + $0x100] sm:$0xff] }
  0xb7   :  { %v5143_v5 = vpack.c.bf16 %v81_v45, %v74_v6 }
  0xb8   :  { %v935_v37 = vpop.f32.mrf.mxu2  ;;  %v839_v47 = vpop.f32.mrf.mxu0 }
  0xb9   :  { %v936_v41 = vadd.f32 %v935_v37, %v887_v18  ;;  %v984_v48 = vpop.f32.mrf.mxu3  ;;  %v888_v51 = vpop.f32.mrf.mxu1  ;;  %v5147_v18 = vpack.c.bf16 %v83_v63, %v76_v62  ;;  %v4161_v37 = vld [vmem:[%s7478_s1 + $0x134] sm:$0xf]  ;;  %v95_v62 = vld [vmem:[%s7479_s0 + $0x1a8] sm:$0xff]  ;;  %v89_v63 = vld [vmem:[%s7479_s0 + $0x178] sm:$0xff] }
  0xba   :  { %v889_v52 = vadd.f32 %v888_v51, %v839_v47 }
  0xbb   :  { %v5123_v54 = vadd.f32 %v984_v48, %v936_v41  ;;  %7522 = vst [vmem:[#allocation8_spill] sm:$0xff] %v5147_v18  ;;  %v3551_v41 = vld [vmem:[%s7478_s1 + $0x138] sm:$0xf0] }
  0xbc   :  { %v3554_v47 = vor.u32 %v4161_v37, %v3551_v41 }
  0xbe   :  { %1268 = vmatpush.bf16.msra.mxu1 %v3554_v47 }
  0xc0   :  { %v937_v4 = vpop.f32.mrf.mxu2  ;;  %v842_v12 = vpop.f32.mrf.mxu0 }
  0xc1   :  { %v938_v11 = vadd.f32 %v937_v4, %v889_v52  ;;  %v986_v13 = vpop.f32.mrf.mxu3  ;;  %v891_v30 = vpop.f32.mrf.mxu1  ;;  %v96_v4 = vld [vmem:[%s7479_s0 + $0x1b0] sm:$0xff] }
  0xc2   :  { %v892_v31 = vadd.f32 %v891_v30, %v842_v12  ;;  %v97_v12 = vld [vmem:[%s7479_s0 + $0x1b8] sm:$0xff]  ;;  %v5190_v36 = vpack.c.bf16 %v96_v4, %v89_v63 }
  0xc3   :  { %v5149_v32 = vadd.f32 %v986_v13, %v938_v11  ;;  %1037 = vmatmul.bf16.gmra.mxu0 %v5143_v5  ;;  %v90_v11 = vld [vmem:[%s7479_s0 + $0x180] sm:$0xff] }
  0xc4   :  { %1086 = vmatmul.bf16.gmra.mxu1 %v5145_v16  ;;  %7523 = vst [vmem:[#allocation9_spill] sm:$0xff] %v5190_v36  ;;  %v5192_v37 = vpack.c.bf16 %v97_v12, %v90_v11 }
  0xc5   :  { %3789 = vmatmul.msk.bf16.gmra.mxu2 %vm798_vm0, %v5147_v18 }
  0xc6   :  { %1184 = vmatmul.bf16.gmra.mxu3 %v4719_v24  ;;  %v88_v24 = vld [vmem:[%s7479_s0 + $0x170] sm:$0xff]  ;;  %7524 = vst [vmem:[#allocation10_spill] sm:$0xff] %v5192_v37 }
  0xc7   :  { %v5188_v30 = vpack.c.bf16 %v95_v62, %v88_v24 }
  0xc8   :  { %v940_v48 = vpop.f32.mrf.mxu2  ;;  %v844_v52 = vpop.f32.mrf.mxu0 }
  0xc9   :  { %v941_v51 = vadd.f32 %v940_v48, %v892_v31  ;;  %v989_v6 = vpop.f32.mrf.mxu3  ;;  %v893_v45 = vpop.f32.mrf.mxu1 }
  0xca   :  { %v894_v56 = vadd.f32 %v893_v45, %v844_v52  ;;  %v3479_v52 = vld [vmem:[%s7478_s1 + $0xa8] sm:$0xf0]  ;;  %v4159_v45 = vld [vmem:[%s7478_s1 + $0x124] sm:$0xf] }
  0xcb   :  { %v5168_v61 = vadd.f32 %v989_v6, %v941_v51  ;;  %v4143_v51 = vld [vmem:[%s7478_s1 + $0xa4] sm:$0xf] }
  0xcc   :  { %v3482_v6 = vor.u32 %v4143_v51, %v3479_v52  ;;  %v111_v51 = vld [vmem:[%s7479_s0 + $0x228] sm:$0xff] }
  0xce   :  { %1220 = vmatpush.bf16.msra.mxu0 %v3482_v6 }
  0xd0   :  { %v942_v13 = vpop.f32.mrf.mxu2  ;;  %v847_v33 = vpop.f32.mrf.mxu0 }
  0xd1   :  { %v943_v31 = vadd.f32 %v942_v13, %v894_v56  ;;  %v991_v34 = vpop.f32.mrf.mxu3  ;;  %v896_v41 = vpop.f32.mrf.mxu1  ;;  %v3543_v56 = vld [vmem:[%s7478_s1 + $0x128] sm:$0xf0] }
  0xd2   :  { %v897_v47 = vadd.f32 %v896_v41, %v847_v33  ;;  %v3546_v24 = vor.u32 %v4159_v45, %v3543_v56  ;;  %v109_v33 = vld [vmem:[%s7479_s0 + $0x218] sm:$0xff]  ;;  %v110_v41 = vld [vmem:[%s7479_s0 + $0x220] sm:$0xff] }
  0xd3   :  { %v5194_v48 = vadd.f32 %v991_v34, %v943_v31  ;;  %1042 = vmatmul.bf16.gmra.mxu0 %v5188_v30  ;;  %v103_v34 = vld [vmem:[%s7479_s0 + $0x1e8] sm:$0xff] }
  0xd4   :  { %1091 = vmatmul.bf16.gmra.mxu1 %v5190_v36 }
  0xd5   :  { %3790 = vmatmul.msk.bf16.gmra.mxu2 %vm798_vm0, %v5192_v37  ;;  %1269 = vmatpush.bf16.msra.mxu1 %v3546_v24  ;;  %v4185_v37 = vld [vmem:[%s7478_s1 + $0x1f4] sm:$0xf] }
  0xd6   :  { %1189 = vmatmul.bf16.gmra.mxu3 %v4767_v42  ;;  %v102_v42 = vld [vmem:[%s7479_s0 + $0x1e0] sm:$0xff] }
  0xd7   :  { %v5233_v6 = vpack.c.bf16 %v109_v33, %v102_v42  ;;  %v4141_v42 = vld [vmem:[%s7478_s1 + $0x94] sm:$0xf]  ;;  %v3471_v33 = vld [vmem:[%s7478_s1 + $0x98] sm:$0xf0] }
  0xd8   :  { %v945_v62 = vpop.f32.mrf.mxu2  ;;  %v849_v4 = vpop.f32.mrf.mxu0 }
  0xd9   :  { %v946_v63 = vadd.f32 %v945_v62, %v897_v47  ;;  %v994_v11 = vpop.f32.mrf.mxu3  ;;  %v898_v12 = vpop.f32.mrf.mxu1  ;;  %v104_v47 = vld [vmem:[%s7479_s0 + $0x1f0] sm:$0xff]  ;;  %v5235_v62 = vpack.c.bf16 %v110_v41, %v103_v34 }
  0xda   :  { %v899_v13 = vadd.f32 %v898_v12, %v849_v4  ;;  %v4201_v41 = vld [vmem:[%s7478_s1 + $0x274] sm:$0xf] }
  0xdb   :  { %v5213_v31 = vadd.f32 %v994_v11, %v946_v63  ;;  %7525 = vst [vmem:[#allocation11_spill] sm:$0xff] %v5235_v62  ;;  %v5237_v63 = vpack.c.bf16 %v111_v51, %v104_v47  ;;  %v3474_v47 = vor.u32 %v4141_v42, %v3471_v33  ;;  %v4157_v51 = vld [vmem:[%s7478_s1 + $0x114] sm:$0xf] }
  0xdd   :  { %7526 = vst [vmem:[#allocation12_spill] sm:$0xff] %v5237_v63  ;;  %1221 = vmatpush.bf16.msra.mxu0 %v3474_v47  ;;  %v3631_v47 = vld [vmem:[%s7478_s1 + $0x1d8] sm:$0xf0] }
  0xe0   :  { %v947_v52 = vpop.f32.mrf.mxu2  ;;  %v852_v56 = vpop.f32.mrf.mxu0 }
  0xe1   :  { %v948_v45 = vadd.f32 %v947_v52, %v899_v13  ;;  %v996_v24 = vpop.f32.mrf.mxu3  ;;  %v901_v4 = vpop.f32.mrf.mxu1  ;;  %v3647_v13 = vld [vmem:[%s7478_s1 + $0x1f8] sm:$0xf0] }
  0xe2   :  { %v902_v11 = vadd.f32 %v901_v4, %v852_v56  ;;  %v3650_v34 = vor.u32 %v4185_v37, %v3647_v13  ;;  %v3535_v52 = vld [vmem:[%s7478_s1 + $0x118] sm:$0xf0] }
  0xe3   :  { %v5239_v12 = vadd.f32 %v996_v24, %v948_v45  ;;  %1047 = vmatmul.bf16.gmra.mxu0 %v5233_v6  ;;  %v3711_v45 = vld [vmem:[%s7478_s1 + $0x278] sm:$0xf0]  ;;  %v3538_v37 = vor.u32 %v4157_v51, %v3535_v52  ;;  %v3639_v24 = vld [vmem:[%s7478_s1 + $0x1e8] sm:$0xf0] }
  0xe4   :  { %1096 = vmatmul.bf16.gmra.mxu1 %v5235_v62  ;;  %1313 = vmatpush.bf16.msra.mxu2 %v3650_v34  ;;  %v3714_v56 = vor.u32 %v4201_v41, %v3711_v45  ;;  %v4199_v34 = vld [vmem:[%s7478_s1 + $0x264] sm:$0xf]  ;;  %v3703_v41 = vld [vmem:[%s7478_s1 + $0x268] sm:$0xf0] }
  0xe5   :  { %3791 = vmatmul.msk.bf16.gmra.mxu2 %vm798_vm0, %v5237_v63  ;;  %1270 = vmatpush.bf16.msra.mxu1 %v3538_v37  ;;  %v3706_v52 = vor.u32 %v4199_v34, %v3703_v41  ;;  %v116_v37 = vld [vmem:[%s7479_s0 + $0x250] sm:$0xff]  ;;  %v4179_v41 = vld [vmem:[%s7478_s1 + $0x1c4] sm:$0xf] }
  0xe6   :  { %1194 = vmatmul.bf16.gmra.mxu3 %v4815_v0  ;;  %v4183_v0 = vld [vmem:[%s7478_s1 + $0x1e4] sm:$0xf] }
  0xe7   :  { %v3642_v13 = vor.u32 %v4183_v0, %v3639_v24  ;;  %1362 = vmatpush.bf16.msra.mxu3 %v3714_v56  ;;  %v123_v56 = vld [vmem:[%s7479_s0 + $0x288] sm:$0xff]  ;;  %v4197_v24 = vld [vmem:[%s7478_s1 + $0x254] sm:$0xf] }
  0xe8   :  { %v950_v4 = vpop.f32.mrf.mxu2  ;;  %v854_v33 = vpop.f32.mrf.mxu0 }
  0xe9   :  { %v951_v42 = vadd.f32 %v950_v4, %v902_v11  ;;  %v999_v63 = vpop.f32.mrf.mxu3  ;;  %v903_v51 = vpop.f32.mrf.mxu1  ;;  %1314 = vmatpush.bf16.msra.mxu2 %v3642_v13  ;;  %v4181_v11 = vld [vmem:[%s7478_s1 + $0x1d4] sm:$0xf]  ;;  %v3695_v4 = vld [vmem:[%s7478_s1 + $0x258] sm:$0xf0] }
  0xea   :  { %v904_v45 = vadd.f32 %v903_v51, %v854_v33  ;;  %v3634_v0 = vor.u32 %v4181_v11, %v3631_v47  ;;  %v124_v13 = vld [vmem:[%s7479_s0 + $0x290] sm:$0xff]  ;;  %v125_v33 = vld [vmem:[%s7479_s0 + $0x298] sm:$0xff]  ;;  %v3698_v34 = vor.u32 %v4197_v24, %v3695_v4  ;;  %v3623_v51 = vld [vmem:[%s7478_s1 + $0x1c8] sm:$0xf0]  ;;  %v5320_v11 = vpack.c.bf16 %v123_v56, %v116_v37 }
  0xeb   :  { %v5282_v62 = vadd.f32 %v999_v63, %v951_v42  ;;  %v117_v63 = vld [vmem:[%s7479_s0 + $0x258] sm:$0xff]  ;;  %1363 = vmatpush.bf16.msra.mxu3 %v3706_v52  ;;  %v118_v42 = vld [vmem:[%s7479_s0 + $0x260] sm:$0xff]  ;;  %v3626_v47 = vor.u32 %v4179_v41, %v3623_v51  ;;  %v3687_v24 = vld [vmem:[%s7478_s1 + $0x248] sm:$0xf0] }
  0xec   :  { %v5322_v15 = vpack.c.bf16 %v124_v13, %v117_v63  ;;  %v5324_v14 = vpack.c.bf16 %v125_v33, %v118_v42  ;;  %v4177_v63 = vld [vmem:[%s7478_s1 + $0x1b4] sm:$0xf]  ;;  %v3615_v13 = vld [vmem:[%s7478_s1 + $0x1b8] sm:$0xf0]  ;;  %v3527_v41 = vld [vmem:[%s7478_s1 + $0x108] sm:$0xf0] }
  0xed   :  { %1315 = vmatpush.bf16.msra.mxu2 %v3634_v0  ;;  %v4195_v0 = vld [vmem:[%s7478_s1 + $0x244] sm:$0xf]  ;;  %v4193_v42 = vld [vmem:[%s7478_s1 + $0x234] sm:$0xf]  ;;  %v3679_v51 = vld [vmem:[%s7478_s1 + $0x238] sm:$0xf0] }
  0xee   :  { %7527 = vst [vmem:[#allocation13_spill] sm:$0xff] %v5322_v15 }
  0xef   :  { %7528 = vst [vmem:[#allocation14_spill] sm:$0xff] %v5324_v14  ;;  %1364 = vmatpush.bf16.msra.mxu3 %v3698_v34  ;;  %v4155_v34 = vld [vmem:[%s7478_s1 + $0x104] sm:$0xf] }
  0xf0   :  { %v952_v52 = vpop.f32.mrf.mxu2  ;;  %v857_v18 = vpop.f32.mrf.mxu0 }
  0xf1   :  { %v953_v36 = vadd.f32 %v952_v52, %v904_v45  ;;  %v1001_v16 = vpop.f32.mrf.mxu3  ;;  %v906_v4 = vpop.f32.mrf.mxu1  ;;  %1316 = vmatpush.bf16.msra.mxu2 %v3626_v47  ;;  %v3690_v45 = vor.u32 %v4195_v0, %v3687_v24  ;;  %v3530_v52 = vor.u32 %v4155_v34, %v3527_v41  ;;  %v3682_v47 = vor.u32 %v4193_v42, %v3679_v51  ;;  %v3607_v0 = vld [vmem:[%s7478_s1 + $0x1a8] sm:$0xf0]  ;;  %v3599_v41 = vld [vmem:[%s7478_s1 + $0x198] sm:$0xf0]  ;;  %v130_v51 = vld [vmem:[%s7479_s0 + $0x2c0] sm:$0xff] }
  0xf2   :  { %v907_v37 = vadd.f32 %v906_v4, %v857_v18  ;;  %v3463_v18 = vld [vmem:[%s7478_s1 + $0x88] sm:$0xf0] }
  0xf3   :  { %v5332_v56 = vadd.f32 %v1001_v16, %v953_v36  ;;  %1052 = vmatmul.bf16.gmra.mxu0 %v5320_v11  ;;  %v4139_v16 = vld [vmem:[%s7478_s1 + $0x84] sm:$0xf]  ;;  %v3618_v36 = vor.u32 %v4177_v63, %v3615_v13  ;;  %1365 = vmatpush.bf16.msra.mxu3 %v3690_v45 }
  0xf4   :  { %1101 = vmatmul.bf16.gmra.mxu1 %v5322_v15  ;;  %v3466_v33 = vor.u32 %v4139_v16, %v3463_v18  ;;  %v4191_v45 = vld [vmem:[%s7478_s1 + $0x224] sm:$0xf]  ;;  %v3671_v18 = vld [vmem:[%s7478_s1 + $0x228] sm:$0xf0] }
  0xf5   :  { %3792 = vmatmul.msk.bf16.gmra.mxu2 %vm798_vm0, %v5324_v14  ;;  %1271 = vmatpush.bf16.msra.mxu1 %v3530_v52  ;;  %v137_v52 = vld [vmem:[%s7479_s0 + $0x2f8] sm:$0xff] }
  0xf6   :  { %1199 = vmatmul.bf16.gmra.mxu3 %v4881_v35  ;;  %1317 = vmatpush.bf16.msra.mxu2 %v3618_v36  ;;  %v4175_v35 = vld [vmem:[%s7478_s1 + $0x1a4] sm:$0xf] }
  0xf7   :  { %1222 = vmatpush.bf16.msra.mxu0 %v3466_v33  ;;  %v3610_v4 = vor.u32 %v4175_v35, %v3607_v0  ;;  %1366 = vmatpush.bf16.msra.mxu3 %v3682_v47  ;;  %v3674_v33 = vor.u32 %v4191_v45, %v3671_v18  ;;  %v131_v47 = vld [vmem:[%s7479_s0 + $0x2c8] sm:$0xff]  ;;  %v4189_v0 = vld [vmem:[%s7478_s1 + $0x214] sm:$0xf]  ;;  %v4171_v45 = vld [vmem:[%s7478_s1 + $0x184] sm:$0xf] }
  0xf8   :  { %v955_v24 = vpop.f32.mrf.mxu2  ;;  %v859_v13 = vpop.f32.mrf.mxu0  ;;  %v3591_v18 = vld [vmem:[%s7478_s1 + $0x188] sm:$0xf0] }
  0xf9   :  { %v956_v63 = vadd.f32 %v955_v24, %v907_v37  ;;  %v1004_v16 = vpop.f32.mrf.mxu3  ;;  %v908_v36 = vpop.f32.mrf.mxu1  ;;  %v4173_v37 = vld [vmem:[%s7478_s1 + $0x194] sm:$0xf]  ;;  %v3663_v24 = vld [vmem:[%s7478_s1 + $0x218] sm:$0xf0] }
  0xfa   :  { %v909_v42 = vadd.f32 %v908_v36, %v859_v13  ;;  %1318 = vmatpush.bf16.msra.mxu2 %v3610_v4  ;;  %v3602_v35 = vor.u32 %v4173_v37, %v3599_v41  ;;  %v138_v4 = vld [vmem:[%s7479_s0 + $0x300] sm:$0xff]  ;;  %v139_v13 = vld [vmem:[%s7479_s0 + $0x308] sm:$0xff]  ;;  %v5413_v37 = vpack.c.bf16 %v137_v52, %v130_v51  ;;  %v3594_v41 = vor.u32 %v4171_v45, %v3591_v18  ;;  %v4217_v52 = vld [vmem:[%s7478_s1 + $0x2f4] sm:$0xf] }
  0xfb   :  { %v5375_v34 = vadd.f32 %v1004_v16, %v956_v63  ;;  %v132_v63 = vld [vmem:[%s7479_s0 + $0x2d0] sm:$0xff]  ;;  %1367 = vmatpush.bf16.msra.mxu3 %v3674_v33  ;;  %v3666_v16 = vor.u32 %v4189_v0, %v3663_v24  ;;  %v5415_v19 = vpack.c.bf16 %v138_v4, %v131_v47  ;;  %v3655_v0 = vld [vmem:[%s7478_s1 + $0x208] sm:$0xf0] }
  0xfc   :  { %v5417_v33 = vpack.c.bf16 %v139_v13, %v132_v63  ;;  %v3783_v47 = vld [vmem:[%s7478_s1 + $0x308] sm:$0xf0] }
  0xfd   :  { %7529 = vst [vmem:[#allocation15_spill] sm:$0xff] %v5415_v19 }
  0xfe   :  { %1319 = vmatpush.bf16.msra.mxu2 %v3602_v35  ;;  %7530 = vst [vmem:[#allocation16_spill] sm:$0xff] %v5417_v33  ;;  %v4187_v35 = vld [vmem:[%s7478_s1 + $0x204] sm:$0xf] }
  0xff   :  { %1368 = vmatpush.bf16.msra.mxu3 %v3666_v16 }
 0x100   :  { %v957_v36 = vpop.f32.mrf.mxu2  ;;  %v862_v15 = vpop.f32.mrf.mxu0 }
 0x101   :  { %v958_v14 = vadd.f32 %v957_v36, %v909_v42  ;;  %v1006_v23 = vpop.f32.mrf.mxu3  ;;  %v911_v24 = vpop.f32.mrf.mxu1  ;;  %v3658_v42 = vor.u32 %v4187_v35, %v3655_v0  ;;  %v151_v35 = vld [vmem:[%s7479_s0 + $0x368] sm:$0xff]  ;;  %v145_v0 = vld [vmem:[%s7479_s0 + $0x338] sm:$0xff] }
 0x102   :  { %v912_v60 = vadd.f32 %v911_v24, %v862_v15  ;;  %1320 = vmatpush.bf16.msra.mxu2 %v3594_v41  ;;  %v3775_v15 = vld [vmem:[%s7478_s1 + $0x2f8] sm:$0xf0]  ;;  %v144_v41 = vld [vmem:[%s7479_s0 + $0x330] sm:$0xff]  ;;  %v146_v24 = vld [vmem:[%s7479_s0 + $0x340] sm:$0xff] }
 0x103   :  { %v5425_v51 = vadd.f32 %v1006_v23, %v958_v14  ;;  %1057 = vmatmul.bf16.gmra.mxu0 %v5413_v37  ;;  %v3778_v23 = vor.u32 %v4217_v52, %v3775_v15  ;;  %v4219_v14 = vld [vmem:[%s7478_s1 + $0x304] sm:$0xf]  ;;  %1369 = vmatpush.bf16.msra.mxu3 %v3658_v42  ;;  %v153_v42 = vld [vmem:[%s7479_s0 + $0x378] sm:$0xff]  ;;  %v5464_v15 = vpack.c.bf16 %v151_v35, %v144_v41 }
 0x104   :  { %1106 = vmatmul.bf16.gmra.mxu1 %v5415_v19  ;;  %v3786_v4 = vor.u32 %v4219_v14, %v3783_v47 }
 0x105   :  { %3793 = vmatmul.msk.bf16.gmra.mxu2 %vm798_vm0, %v5417_v33  ;;  %1411 = vmatpush.bf16.msrb.mxu0 %v3778_v23 }
 0x106   :  { %1204 = vmatmul.bf16.gmra.mxu3 %v4959_v20  ;;  %1467 = vmatpush.bf16.msrb.mxu1 %v3786_v4 }
 0x108   :  { %v960_v63 = vpop.f32.mrf.mxu2  ;;  %v864_v16 = vpop.f32.mrf.mxu0 }
 0x109   :  { %v961_v13 = vadd.f32 %v960_v63, %v912_v60  ;;  %v1009_v45 = vpop.f32.mrf.mxu3  ;;  %v913_v18 = vpop.f32.mrf.mxu1  ;;  %v152_v60 = vld [vmem:[%s7479_s0 + $0x370] sm:$0xff]  ;;  %v5468_v63 = vpack.c.bf16 %v153_v42, %v146_v24 }
 0x10a   :  { %v914_v36 = vadd.f32 %v913_v18, %v864_v16  ;;  %v5466_v4 = vpack.c.bf16 %v152_v60, %v145_v0  ;;  %v4215_v18 = vld [vmem:[%s7478_s1 + $0x2e4] sm:$0xf] }
 0x10b   :  { %v5444_v20 = vadd.f32 %v1009_v45, %v961_v13  ;;  %7532 = vst [vmem:[#allocation18_spill] sm:$0xff] %v5468_v63 }
 0x10c   :  { %7531 = vst [vmem:[#allocation17_spill] sm:$0xff] %v5466_v4 }
 0x110   :  { %v962_v52 = vpop.f32.mrf.mxu2  ;;  %v867_v14 = vpop.f32.mrf.mxu0 }
 0x111   :  { %v963_v23 = vadd.f32 %v962_v52, %v914_v36  ;;  %v1011_v47 = vpop.f32.mrf.mxu3  ;;  %v916_v13 = vpop.f32.mrf.mxu1  ;;  %v3767_v36 = vld [vmem:[%s7478_s1 + $0x2e8] sm:$0xf0] }
 0x112   :  { %v917_v16 = vadd.f32 %v916_v13, %v867_v14  ;;  %v3770_v41 = vor.u32 %v4215_v18, %v3767_v36  ;;  %v3759_v18 = vld [vmem:[%s7478_s1 + $0x2d8] sm:$0xf0] }
 0x113   :  { %v5470_v45 = vadd.f32 %v1011_v47, %v963_v23  ;;  %1062 = vmatmul.bf16.gmra.mxu0 %v5464_v15 }
 0x114   :  { %1111 = vmatmul.bf16.gmra.mxu1 %v5466_v4  ;;  %1412 = vmatpush.bf16.msrb.mxu0 %v3770_v41 }
 0x115   :  { %3794 = vmatmul.msk.bf16.gmra.mxu2 %vm798_vm0, %v5468_v63 }
 0x116   :  { %1209 = vmatmul.bf16.gmra.mxu3 %v5013_v57 }
 0x118   :  { %v965_v35 = vpop.f32.mrf.mxu2  ;;  %v869_v60 = vpop.f32.mrf.mxu0 }
 0x119   :  { %v966_v0 = vadd.f32 %v965_v35, %v917_v16  ;;  %v1014_v24 = vpop.f32.mrf.mxu3  ;;  %v918_v42 = vpop.f32.mrf.mxu1  ;;  %v4213_v16 = vld [vmem:[%s7478_s1 + $0x2d4] sm:$0xf] }
 0x11a   :  { %v919_v52 = vadd.f32 %v918_v42, %v869_v60 }
 0x11b   :  { %v5483_v23 = vadd.f32 %v1014_v24, %v966_v0 }
 0x120   :  { %v967_v14 = vpop.f32.mrf.mxu2  ;;  %v1028_v63 = vpop.f32.mrf.mxu0 }
 0x121   :  { %v968_v47 = vadd.f32 %v967_v14, %v919_v52  ;;  %v1016_v13 = vpop.f32.mrf.mxu3  ;;  %v1029_v4 = vadd.f32 %v1028_v63, %v5078_v55  ;;  %v1077_v33 = vpop.f32.mrf.mxu1  ;;  %v3762_v55 = vor.u32 %v4213_v16, %v3759_v18  ;;  %v3751_v52 = vld [vmem:[%s7478_s1 + $0x2c8] sm:$0xf0] }
 0x123   :  { %v5486_v19 = vadd.f32 %v1016_v13, %v968_v47  ;;  %v1078_v57 = vadd.f32 %v1077_v33, %v1029_v4  ;;  %1223 = vmatmul.bf16.vlgmr.msra.gmra.mxu0 %v4619_v49 }
 0x124   :  { %1272 = vmatmul.bf16.vlgmr.msra.gmra.mxu1 %v4621_v50  ;;  %1413 = vmatpush.bf16.msrb.mxu0 %v3762_v55 }
 0x125   :  { %1321 = vmatmul.bf16.vlgmr.msra.gmra.mxu2 %v4629_v53 }
 0x126   :  { %1370 = vmatmul.bf16.vlgmr.msra.gmra.mxu3 %v5055_v17 }
 0x128   :  { %v1126_v63 = vpop.f32.mrf.mxu2  ;;  %v1030_v49 = vpop.f32.mrf.mxu0 }
 0x129   :  { %v5498_v33 = vadd.f32 %v1126_v63, %v1078_v57  ;;  %v5500_v4 = vpop.f32.mrf.mxu3  ;;  %v1031_v50 = vadd.f32 %v1030_v49, %v5104_v28  ;;  %v1079_v53 = vpop.f32.mrf.mxu1  ;;  %v4211_v28 = vld [vmem:[%s7478_s1 + $0x2c4] sm:$0xf] }
 0x12a   :  { %v3754_v14 = vor.u32 %v4211_v28, %v3751_v52 }
 0x12b   :  { %7533 = vst [vmem:[#allocation19_spill] sm:$0xff] %v5498_v33  ;;  %v1080_v36 = vadd.f32 %v1079_v53, %v1031_v50  ;;  %v3743_v53 = vld [vmem:[%s7478_s1 + $0x2b8] sm:$0xf0] }
 0x12c   :  { %1414 = vmatpush.bf16.msrb.mxu0 %v3754_v14 }
 0x130   :  { %v1128_v41 = vpop.f32.mrf.mxu2  ;;  %v1033_v0 = vpop.f32.mrf.mxu0 }
 0x131   :  { %v5503_v35 = vadd.f32 %v1128_v41, %v1080_v36  ;;  %v5505_v60 = vpop.f32.mrf.mxu3  ;;  %v1034_v17 = vadd.f32 %v1033_v0, %v5123_v54  ;;  %v1082_v24 = vpop.f32.mrf.mxu1 }
 0x133   :  { %7534 = vst [vmem:[#allocation20_spill] sm:$0xff] %v5503_v35  ;;  %v1083_v42 = vadd.f32 %v1082_v24, %v1034_v17  ;;  %1228 = vmatmul.bf16.gmra.mxu0 %v4673_v7 }
 0x134   :  { %1277 = vmatmul.bf16.gmra.mxu1 %v4675_v8 }
 0x135   :  { %1326 = vmatmul.bf16.gmra.mxu2 %v4677_v9 }
 0x136   :  { %1375 = vmatmul.bf16.gmra.mxu3 %v5098_v10 }
 0x138   :  { %v1131_v54 = vpop.f32.mrf.mxu2  ;;  %v1035_v7 = vpop.f32.mrf.mxu0 }
 0x139   :  { %v5518_v47 = vadd.f32 %v1131_v54, %v1083_v42  ;;  %v5520_v13 = vpop.f32.mrf.mxu3  ;;  %v1036_v8 = vadd.f32 %v1035_v7, %v5149_v32  ;;  %v1084_v9 = vpop.f32.mrf.mxu1  ;;  %v4209_v32 = vld [vmem:[%s7478_s1 + $0x2b4] sm:$0xf]  ;;  %v3735_v7 = vld [vmem:[%s7478_s1 + $0x2a8] sm:$0xf0] }
 0x13a   :  { %v3746_v36 = vor.u32 %v4209_v32, %v3743_v53 }
 0x13b   :  { %7535 = vst [vmem:[#allocation21_spill] sm:$0xff] %v5518_v47  ;;  %v1085_v57 = vadd.f32 %v1084_v9, %v1036_v8 }
 0x13c   :  { %1415 = vmatpush.bf16.msrb.mxu0 %v3746_v36  ;;  %v3727_v36 = vld [vmem:[%s7478_s1 + $0x298] sm:$0xf0] }
 0x140   :  { %v1133_v16 = vpop.f32.mrf.mxu2  ;;  %v1038_v55 = vpop.f32.mrf.mxu0 }
 0x141   :  { %v5523_v18 = vadd.f32 %v1133_v16, %v1085_v57  ;;  %v5525_v63 = vpop.f32.mrf.mxu3  ;;  %v1039_v10 = vadd.f32 %v1038_v55, %v5168_v61  ;;  %v1087_v49 = vpop.f32.mrf.mxu1 }
 0x143   :  { %v1088_v50 = vadd.f32 %v1087_v49, %v1039_v10  ;;  %1233 = vmatmul.bf16.gmra.mxu0 %v4721_v25 }
 0x144   :  { %1282 = vmatmul.bf16.gmra.mxu1 %v4723_v26 }
 0x145   :  { %1331 = vmatmul.bf16.gmra.mxu2 %v4725_v27 }
 0x146   :  { %1380 = vmatmul.bf16.gmra.mxu3 %v5143_v5 }
 0x148   :  { %v1136_v61 = vpop.f32.mrf.mxu2  ;;  %v1040_v25 = vpop.f32.mrf.mxu0 }
 0x149   :  { %v5538_v41 = vadd.f32 %v1136_v61, %v1088_v50  ;;  %v5540_v0 = vpop.f32.mrf.mxu3  ;;  %v1041_v26 = vadd.f32 %v1040_v25, %v5194_v48  ;;  %v1089_v27 = vpop.f32.mrf.mxu1  ;;  %v4207_v48 = vld [vmem:[%s7478_s1 + $0x2a4] sm:$0xf] }
 0x14a   :  { %v3738_v8 = vor.u32 %v4207_v48, %v3735_v7 }
 0x14b   :  { %7536 = vst [vmem:[#allocation22_spill] sm:$0xff] %v5538_v41  ;;  %v1090_v17 = vadd.f32 %v1089_v27, %v1041_v26 }
 0x14c   :  { %1416 = vmatpush.bf16.msrb.mxu0 %v3738_v8 }
 0x150   :  { %v1138_v24 = vpop.f32.mrf.mxu2  ;;  %v1043_v28 = vpop.f32.mrf.mxu0 }
 0x151   :  { %v5543_v42 = vadd.f32 %v1138_v24, %v1090_v17  ;;  %v5545_v52 = vpop.f32.mrf.mxu3  ;;  %v1044_v5 = vadd.f32 %v1043_v28, %v5213_v31  ;;  %v1092_v14 = vpop.f32.mrf.mxu1 }
 0x153   :  { %7537 = vst [vmem:[#allocation23_spill] sm:$0xff] %v5543_v42  ;;  %v1093_v54 = vadd.f32 %v1092_v14, %v1044_v5  ;;  %1238 = vmatmul.bf16.gmra.mxu0 %v4769_v43 }
 0x154   :  { %1287 = vmatmul.bf16.gmra.mxu1 %v4771_v44 }
 0x155   :  { %1336 = vmatmul.bf16.gmra.mxu2 %v4773_v46 }
 0x156   :  { %1385 = vmatmul.bf16.gmra.mxu3 %v5188_v30 }
 0x158   :  { %v1141_v31 = vpop.f32.mrf.mxu2  ;;  %v1045_v43 = vpop.f32.mrf.mxu0 }
 0x159   :  { %v5558_v9 = vadd.f32 %v1141_v31, %v1093_v54  ;;  %v5560_v57 = vpop.f32.mrf.mxu3  ;;  %v1046_v44 = vadd.f32 %v1045_v43, %v5239_v12  ;;  %v1094_v46 = vpop.f32.mrf.mxu1  ;;  %v4205_v12 = vld [vmem:[%s7478_s1 + $0x294] sm:$0xf]  ;;  %v3719_v54 = vld [vmem:[%s7478_s1 + $0x288] sm:$0xf0] }
 0x15a   :  { %v3730_v61 = vor.u32 %v4205_v12, %v3727_v36 }
 0x15b   :  { %7538 = vst [vmem:[#allocation24_spill] sm:$0xff] %v5558_v9  ;;  %v1095_v16 = vadd.f32 %v1094_v46, %v1046_v44 }
 0x15c   :  { %1417 = vmatpush.bf16.msrb.mxu0 %v3730_v61 }
 0x160   :  { %v1143_v55 = vpop.f32.mrf.mxu2  ;;  %v1048_v49 = vpop.f32.mrf.mxu0 }
 0x161   :  { %v5563_v10 = vadd.f32 %v1143_v55, %v1095_v16  ;;  %v5565_v50 = vpop.f32.mrf.mxu3  ;;  %v1049_v30 = vadd.f32 %v1048_v49, %v5282_v62  ;;  %v1097_v32 = vpop.f32.mrf.mxu1 }
 0x163   :  { %7539 = vst [vmem:[#allocation25_spill] sm:$0xff] %v5563_v10  ;;  %v1098_v53 = vadd.f32 %v1097_v32, %v1049_v30  ;;  %1243 = vmatmul.bf16.gmra.mxu0 %v4817_v1 }
 0x164   :  { %1292 = vmatmul.bf16.gmra.mxu1 %v4819_v2 }
 0x165   :  { %1341 = vmatmul.bf16.gmra.mxu2 %v4821_v3 }
 0x166   :  { %1390 = vmatmul.bf16.gmra.mxu3 %v5233_v6 }
 0x168   :  { %v1146_v62 = vpop.f32.mrf.mxu2  ;;  %v1050_v1 = vpop.f32.mrf.mxu0 }
 0x169   :  { %v5578_v25 = vadd.f32 %v1146_v62, %v1098_v53  ;;  %v5580_v26 = vpop.f32.mrf.mxu3  ;;  %v1051_v2 = vadd.f32 %v1050_v1, %v5332_v56  ;;  %v1099_v3 = vpop.f32.mrf.mxu1  ;;  %v4203_v56 = vld [vmem:[%s7478_s1 + $0x284] sm:$0xf] }
 0x16a   :  { %v3722_v48 = vor.u32 %v4203_v56, %v3719_v54  ;;  %v7541_v62 = vld [vmem:[#allocation2_spill] sm:$0xff]  ;;  %v7543_v54 = vld [vmem:[#allocation3_spill] sm:$0xff] }
 0x16b   :  { %v5583_v27 = vadd.f32 %v1099_v3, %v1051_v2 }
 0x16c   :  { %1418 = vmatpush.bf16.msrb.mxu0 %v3722_v48  ;;  %v7544_v48 = vld [vmem:[#allocation4_spill] sm:$0xff] }
 0x170   :  { %v5585_v17 = vpop.f32.mrf.mxu2  ;;  %v1053_v24 = vpop.f32.mrf.mxu0 }
 0x171   :  { %v5587_v28 = vpop.f32.mrf.mxu3  ;;  %v1054_v6 = vadd.f32 %v1053_v24, %v5375_v34  ;;  %v1102_v5 = vpop.f32.mrf.mxu1 }
 0x173   :  { %v1103_v14 = vadd.f32 %v1102_v5, %v1054_v6  ;;  %1248 = vmatmul.bf16.gmra.mxu0 %v4889_v38 }
 0x174   :  { %1297 = vmatmul.bf16.gmra.mxu1 %v4891_v39 }
 0x175   :  { %1346 = vmatmul.bf16.gmra.mxu2 %v4893_v40 }
 0x176   :  { %1395 = vmatmul.bf16.gmra.mxu3 %v5320_v11 }
 0x178   :  { %v1151_v34 = vpop.f32.mrf.mxu2  ;;  %v1055_v38 = vpop.f32.mrf.mxu0 }
 0x179   :  { %v5600_v7 = vadd.f32 %v1151_v34, %v1103_v14  ;;  %v5602_v8 = vpop.f32.mrf.mxu3  ;;  %v1056_v39 = vadd.f32 %v1055_v38, %v5425_v51  ;;  %v1104_v40 = vpop.f32.mrf.mxu1 }
 0x17b   :  { %v5605_v31 = vadd.f32 %v1104_v40, %v1056_v39 }
 0x180   :  { %v5607_v43 = vpop.f32.mrf.mxu2  ;;  %v1058_v44 = vpop.f32.mrf.mxu0 }
 0x181   :  { %v5609_v46 = vpop.f32.mrf.mxu3  ;;  %v1059_v11 = vadd.f32 %v1058_v44, %v5444_v20  ;;  %v1107_v16 = vpop.f32.mrf.mxu1 }
 0x183   :  { %v1108_v55 = vadd.f32 %v1107_v16, %v1059_v11  ;;  %1253 = vmatmul.bf16.gmra.mxu0 %v4961_v21 }
 0x184   :  { %1302 = vmatmul.bf16.gmra.mxu1 %v4963_v22 }
 0x185   :  { %1351 = vmatmul.bf16.gmra.mxu2 %v4971_v29 }
 0x186   :  { %1400 = vmatmul.bf16.gmra.mxu3 %v5413_v37 }
 0x188   :  { %v1156_v51 = vpop.f32.mrf.mxu2  ;;  %v1060_v30 = vpop.f32.mrf.mxu0 }
 0x189   :  { %v5616_v49 = vadd.f32 %v1156_v51, %v1108_v55  ;;  %v5618_v32 = vpop.f32.mrf.mxu3  ;;  %v1061_v53 = vadd.f32 %v1060_v30, %v5470_v45  ;;  %v1109_v12 = vpop.f32.mrf.mxu1 }
 0x18b   :  { %v5621_v20 = vadd.f32 %v1109_v12, %v1061_v53 }
 0x190   :  { %v5623_v36 = vpop.f32.mrf.mxu2  ;;  %v1063_v21 = vpop.f32.mrf.mxu0 }
 0x191   :  { %v5625_v61 = vpop.f32.mrf.mxu3  ;;  %v1064_v22 = vadd.f32 %v1063_v21, %v5483_v23  ;;  %v1112_v29 = vpop.f32.mrf.mxu1  ;;  %v7545_v21 = vld [vmem:[#allocation5_spill] sm:$0xff] }
 0x192   :  { %7540 = vst [vmem:[#allocation26_spill] sm:$0xff] %v5625_v61 }
 0x193   :  { %v1113_v37 = vadd.f32 %v1112_v29, %v1064_v22  ;;  %1258 = vmatmul.bf16.gmra.mxu0 %v5015_v58  ;;  %v7546_v22 = vld [vmem:[#allocation6_spill] sm:$0xff] }
 0x194   :  { %1307 = vmatmul.bf16.gmra.mxu1 %v5017_v59 }
 0x195   :  { %1356 = vmatmul.bf16.gmra.mxu2 %v7541_v62 }
 0x196   :  { %1405 = vmatmul.bf16.gmra.mxu3 %v5464_v15 }
 0x198   :  { %v1161_v45 = vpop.f32.mrf.mxu2  ;;  %v1065_v2 = vpop.f32.mrf.mxu0 }
 0x199   :  { %v5632_v1 = vadd.f32 %v1161_v45, %v1113_v37  ;;  %v5634_v3 = vpop.f32.mrf.mxu3  ;;  %v1066_v24 = vadd.f32 %v1065_v2, %v5486_v19  ;;  %v1114_v6 = vpop.f32.mrf.mxu1 }
 0x19b   :  { %v5637_v23 = vadd.f32 %v1114_v6, %v1066_v24 }
 0x1a0   :  { %v5639_v5 = vpop.f32.mrf.mxu2  ;;  %v1224_v59 = vpop.f32.mrf.mxu0 }
 0x1a1   :  { %v5641_v58 = vpop.f32.mrf.mxu3  ;;  %v1225_v14 = vadd.f32 %v1224_v59, %v5500_v4  ;;  %v1273_v56 = vpop.f32.mrf.mxu1 }
 0x1a2   :  { %7542 = vst [vmem:[#allocation2_spill] sm:$0xff] %v5641_v58 }
 0x1a3   :  { %v1274_v15 = vadd.f32 %v1273_v56, %v1225_v14  ;;  %1419 = vmatmul.bf16.vlgmr.msrb.gmra.mxu0 %v7543_v54 }
 0x1a4   :  { %3795 = vmatmul.msk.bf16.vlgmr.msrb.gmra.mxu1 %vm798_vm0, %v7544_v48  ;;  %v7547_v48 = vld [vmem:[#allocation7_spill] sm:$0xff] }
 0x1a8   :  { %v1322_v34 = vpop.f32.mrf.mxu2  ;;  %v1226_v19 = vpop.f32.mrf.mxu0 }
 0x1a9   :  { %v1323_v38 = vadd.f32 %v1322_v34, %v1274_v15  ;;  %v1371_v39 = vpop.f32.mrf.mxu3  ;;  %v1227_v40 = vadd.f32 %v1226_v19, %v5505_v60  ;;  %v1275_v44 = vpop.f32.mrf.mxu1  ;;  %v7548_v34 = vld [vmem:[#allocation8_spill] sm:$0xff] }
 0x1ab   :  { %v5648_v11 = vadd.f32 %v1371_v39, %v1323_v38  ;;  %v5650_v16 = vadd.f32 %v1275_v44, %v1227_v40 }
 0x1b0   :  { %v5652_v55 = vpop.f32.mrf.mxu2  ;;  %v1229_v4 = vpop.f32.mrf.mxu0 }
 0x1b1   :  { %v5654_v51 = vpop.f32.mrf.mxu3  ;;  %v1230_v30 = vadd.f32 %v1229_v4, %v5520_v13  ;;  %v1278_v53 = vpop.f32.mrf.mxu1 }
 0x1b3   :  { %v1279_v12 = vadd.f32 %v1278_v53, %v1230_v30  ;;  %1424 = vmatmul.bf16.gmra.mxu0 %v7545_v21 }
 0x1b4   :  { %3796 = vmatmul.msk.bf16.gmra.mxu1 %vm798_vm0, %v7546_v22  ;;  %v7549_v22 = vld [vmem:[#allocation9_spill] sm:$0xff] }
 0x1b8   :  { %v1327_v60 = vpop.f32.mrf.mxu2  ;;  %v1231_v37 = vpop.f32.mrf.mxu0 }
 0x1b9   :  { %v1328_v29 = vadd.f32 %v1327_v60, %v1279_v12  ;;  %v1376_v62 = vpop.f32.mrf.mxu3  ;;  %v1232_v45 = vadd.f32 %v1231_v37, %v5525_v63  ;;  %v1280_v2 = vpop.f32.mrf.mxu1  ;;  %v7550_v60 = vld [vmem:[#allocation10_spill] sm:$0xff] }
 0x1bb   :  { %v5661_v24 = vadd.f32 %v1376_v62, %v1328_v29  ;;  %v5663_v6 = vadd.f32 %v1280_v2, %v1232_v45 }
 0x1c0   :  { %v5665_v59 = vpop.f32.mrf.mxu2  ;;  %v1234_v13 = vpop.f32.mrf.mxu0 }
 0x1c1   :  { %v5667_v14 = vpop.f32.mrf.mxu3  ;;  %v1235_v56 = vadd.f32 %v1234_v13, %v5540_v0  ;;  %v1283_v15 = vpop.f32.mrf.mxu1 }
 0x1c3   :  { %v1284_v54 = vadd.f32 %v1283_v15, %v1235_v56  ;;  %1429 = vmatmul.bf16.gmra.mxu0 %v7547_v48  ;;  %v7552_v15 = vld [vmem:[#allocation12_spill] sm:$0xff] }
 0x1c4   :  { %3797 = vmatmul.msk.bf16.gmra.mxu1 %vm798_vm0, %v7548_v34 }
 0x1c8   :  { %v1332_v63 = vpop.f32.mrf.mxu2  ;;  %v1236_v19 = vpop.f32.mrf.mxu0 }
 0x1c9   :  { %v1333_v38 = vadd.f32 %v1332_v63, %v1284_v54  ;;  %v1381_v39 = vpop.f32.mrf.mxu3  ;;  %v1237_v40 = vadd.f32 %v1236_v19, %v5545_v52  ;;  %v1285_v44 = vpop.f32.mrf.mxu1  ;;  %v7554_v19 = vld [vmem:[#allocation13_spill] sm:$0xff] }
 0x1cb   :  { %v5674_v4 = vadd.f32 %v1381_v39, %v1333_v38  ;;  %v5676_v30 = vadd.f32 %v1285_v44, %v1237_v40 }
 0x1d0   :  { %v1239_v53 = vpop.f32.mrf.mxu0 }
 0x1d1   :  { %v1240_v0 = vadd.f32 %v1239_v53, %v5560_v57  ;;  %v1288_v12 = vpop.f32.mrf.mxu1  ;;  %v7551_v57 = vld [vmem:[#allocation11_spill] sm:$0xff] }
 0x1d3   :  { %v5679_v21 = vadd.f32 %v1288_v12, %v1240_v0  ;;  %1434 = vmatmul.bf16.gmra.mxu0 %v7549_v22  ;;  %v7558_v22 = vld [vmem:[#allocation15_spill] sm:$0xff] }
 0x1d4   :  { %3798 = vmatmul.msk.bf16.gmra.mxu1 %vm798_vm0, %v7550_v60 }
 0x1d8   :  { %v1241_v29 = vpop.f32.mrf.mxu0 }
 0x1d9   :  { %v1242_v37 = vadd.f32 %v1241_v29, %v5565_v50  ;;  %v1290_v52 = vpop.f32.mrf.mxu1 }
 0x1db   :  { %v5685_v62 = vadd.f32 %v1290_v52, %v1242_v37 }
 0x1e0   :  { %v1244_v45 = vpop.f32.mrf.mxu0 }
 0x1e1   :  { %v1245_v2 = vadd.f32 %v1244_v45, %v5580_v26  ;;  %v1293_v13 = vpop.f32.mrf.mxu1  ;;  %v7555_v26 = vld [vmem:[#allocation14_spill] sm:$0xff] }
 0x1e3   :  { %v5688_v56 = vadd.f32 %v1293_v13, %v1245_v2  ;;  %1439 = vmatmul.bf16.gmra.mxu0 %v7551_v57  ;;  %v7563_v13 = vld [vmem:[#allocation17_spill] sm:$0xff] }
 0x1e4   :  { %3799 = vmatmul.msk.bf16.gmra.mxu1 %vm798_vm0, %v7552_v15 }
 0x1e8   :  { %v5693_v54 = vpop.f32.mrf.mxu0 }
 0x1e9   :  { %v5695_v48 = vpop.f32.mrf.mxu1 }
 0x1f0   :  { %v1249_v34 = vpop.f32.mrf.mxu0 }
 0x1f1   :  { %v1250_v50 = vadd.f32 %v1249_v34, %v5602_v8  ;;  %v1298_v63 = vpop.f32.mrf.mxu1  ;;  %v7559_v8 = vld [vmem:[#allocation16_spill] sm:$0xff] }
 0x1f3   :  { %v5698_v38 = vadd.f32 %v1298_v63, %v1250_v50  ;;  %1444 = vmatmul.bf16.gmra.mxu0 %v7554_v19 }
 0x1f4   :  { %3800 = vmatmul.msk.bf16.gmra.mxu1 %vm798_vm0, %v7555_v26 }
 0x1f5   :  { %7553 = vst [vmem:[#allocation3_spill] sm:$0xff] %v5698_v38 }
 0x1f8   :  { %v5703_v39 = vpop.f32.mrf.mxu0 }
 0x1f9   :  { %v5705_v40 = vpop.f32.mrf.mxu1 }
 0x1fa   :  { %7556 = vst [vmem:[#allocation4_spill] sm:$0xff] %v5705_v40 }
 0x200   :  { %v1254_v44 = vpop.f32.mrf.mxu0 }
 0x201   :  { %v1255_v53 = vadd.f32 %v1254_v44, %v5618_v32  ;;  %v1303_v0 = vpop.f32.mrf.mxu1  ;;  %v7564_v32 = vld [vmem:[#allocation18_spill] sm:$0xff]  ;;  %v5734_v44 = vpop.f32.mrf.mxu2 }
 0x203   :  { %v5708_v12 = vadd.f32 %v1303_v0, %v1255_v53  ;;  %1449 = vmatmul.bf16.gmra.mxu0 %v7558_v22  ;;  %v5736_v53 = vpop.f32.mrf.mxu3 }
 0x204   :  { %3801 = vmatmul.msk.bf16.gmra.mxu1 %vm798_vm0, %v7559_v8 }
 0x205   :  { %7557 = vst [vmem:[#allocation5_spill] sm:$0xff] %v5708_v12 }
 0x208   :  { %v5713_v60 = vpop.f32.mrf.mxu0 }
 0x209   :  { %7560 = vst [vmem:[#allocation6_spill] sm:$0xff] %v5713_v60  ;;  %v5715_v29 = vpop.f32.mrf.mxu1 }
 0x20a   :  { %7561 = vst [vmem:[#allocation7_spill] sm:$0xff] %v5715_v29 }
 0x210   :  { %v1259_v37 = vpop.f32.mrf.mxu0 }
 0x211   :  { %v1260_v52 = vadd.f32 %v1259_v37, %v5634_v3  ;;  %v1308_v45 = vpop.f32.mrf.mxu1 }
 0x213   :  { %v5718_v2 = vadd.f32 %v1308_v45, %v1260_v52  ;;  %1454 = vmatmul.bf16.gmra.mxu0 %v7563_v13  ;;  %v5741_v52 = vpop.f32.mrf.mxu2  ;;  %v5747_v13 = vpop.f32.mrf.mxu3 }
 0x214   :  { %3802 = vmatmul.msk.bf16.gmra.mxu1 %vm798_vm0, %v7564_v32 }
 0x215   :  { %7562 = vst [vmem:[#allocation8_spill] sm:$0xff] %v5718_v2 }
 0x218   :  { %v5723_v57 = vpop.f32.mrf.mxu0 }
 0x219   :  { %7565 = vst [vmem:[#allocation9_spill] sm:$0xff] %v5723_v57  ;;  %v5725_v15 = vpop.f32.mrf.mxu1 }
 0x21a   :  { %7566 = vst [vmem:[#allocation10_spill] sm:$0xff] %v5725_v15  ;;  %v3863_v15 = vld [vmem:[%s7480_s4 + $0x78] sm:$0xf0] }
 0x21b   :  { %v5749_v32 = vpop.f32.mrf.mxu2  ;;  %v5778_v61 = vpop.f32.mrf.mxu3 }
 0x220   :  { %v1420_v34 = vpop.f32.mrf.mxu0 }
 0x221   :  { %v1421_v50 = vadd.f32 %v1420_v34, %v5648_v11  ;;  %v1469_v63 = vpop.f32.mrf.mxu1  ;;  %v3861_v34 = vld [vmem:[%s7480_s4 + $0x70] sm:$0xf] }
 0x223   :  { %v5728_v19 = vadd.f32 %v1469_v63, %v1421_v50  ;;  %v3925_v50 = vld [vmem:[%s7480_s4 + $0xf0] sm:$0xf] }
 0x228   :  { %v5730_v26 = vpop.f32.mrf.mxu0 }
 0x229   :  { %v5732_v3 = vpop.f32.mrf.mxu1 }
 0x230   :  { %v1425_v0 = vpop.f32.mrf.mxu0 }
 0x231   :  { %v1426_v22 = vadd.f32 %v1425_v0, %v5661_v24  ;;  %v1474_v8 = vpop.f32.mrf.mxu1  ;;  %v4236_v24 = vld [vmem:[%s7480_s4 + $0x74] sm:$0xf0] }
 0x232   :  { %v3862_v0 = vor.u32 %v4236_v24, %v3861_v34  ;;  %v4251_v34 = vld [vmem:[%s7480_s4 + $0xf4] sm:$0xf]  ;;  %v3927_v24 = vld [vmem:[%s7480_s4 + $0xf8] sm:$0xf0] }
 0x233   :  { %v5739_v37 = vadd.f32 %v1474_v8, %v1426_v22  ;;  %v4252_v22 = vld [vmem:[%s7480_s4 + $0xf4] sm:$0xf0]  ;;  %v4235_v8 = vld [vmem:[%s7480_s4 + $0x74] sm:$0xf]  ;;  %v3930_v12 = vor.u32 %v4251_v34, %v3927_v24 }
 0x234   :  { %v3926_v2 = vor.u32 %v4252_v22, %v3925_v50  ;;  %v3866_v29 = vor.u32 %v4235_v8, %v3863_v15  ;;  %1993 = vmatpush.bf16.msrb.mxu2 %v3862_v0  ;;  %v5782_v15 = vpop.f32.mrf.mxu2  ;;  %v3853_v0 = vld [vmem:[%s7480_s4 + $0x60] sm:$0xf]  ;;  %v4233_v22 = vld [vmem:[%s7480_s4 + $0x64] sm:$0xf]  ;;  %v3855_v8 = vld [vmem:[%s7480_s4 + $0x68] sm:$0xf0] }
 0x235   :  { %2140 = vmatpush.bf16.msra.mxu1 %v3930_v12  ;;  %v3917_v12 = vld [vmem:[%s7480_s4 + $0xe0] sm:$0xf] }
 0x236   :  { %2042 = vmatpush.bf16.msrb.mxu3 %v3926_v2  ;;  %2091 = vmatpush.bf16.msra.mxu0 %v3866_v29 }
 0x238   :  { %v5743_v11 = vpop.f32.mrf.mxu0 }
 0x239   :  { %v5745_v45 = vpop.f32.mrf.mxu1 }
 0x240   :  { %v1430_v63 = vpop.f32.mrf.mxu0 }
 0x241   :  { %v1431_v57 = vadd.f32 %v1430_v63, %v5674_v4  ;;  %v1479_v58 = vpop.f32.mrf.mxu1  ;;  %v5786_v63 = vpop.f32.mrf.mxu3 }
 0x242   :  { %7569 = vst [vmem:[#allocation13_spill] sm:$0xff] %v5786_v63  ;;  %v1568_v63 = vmul.f32 %v5523_v18, %v5523_v18 }
 0x243   :  { %v5776_v60 = vadd.f32 %v1479_v58, %v1431_v57  ;;  %v4234_v58 = vld [vmem:[%s7480_s4 + $0x64] sm:$0xf0] }
 0x244   :  { %v3854_v2 = vor.u32 %v4234_v58, %v3853_v0  ;;  %v4250_v57 = vld [vmem:[%s7480_s4 + $0xe4] sm:$0xf0]  ;;  %v4249_v0 = vld [vmem:[%s7480_s4 + $0xe4] sm:$0xf]  ;;  %v3919_v58 = vld [vmem:[%s7480_s4 + $0xe8] sm:$0xf0] }
 0x245   :  { %7567 = vst [vmem:[#allocation11_spill] sm:$0xff] %v5776_v60  ;;  %v3918_v24 = vor.u32 %v4250_v57, %v3917_v12  ;;  %v3858_v60 = vor.u32 %v4233_v22, %v3855_v8  ;;  %v3922_v40 = vor.u32 %v4249_v0, %v3919_v58  ;;  %v1511_v57 = vadd.f32 %v5503_v35, %v5498_v33  ;;  %v3909_v0 = vld [vmem:[%s7480_s4 + $0xd0] sm:$0xf] }
 0x246   :  { %1994 = vmatpush.bf16.msrb.mxu2 %v3854_v2  ;;  %v1564_v2 = vmul.f32 %v5503_v35, %v5503_v35  ;;  %v1562_v58 = vmul.f32 %v5498_v33, %v5498_v33 }
 0x247   :  { %2043 = vmatpush.bf16.msrb.mxu3 %v3918_v24  ;;  %2092 = vmatpush.bf16.msra.mxu0 %v3858_v60  ;;  %v1512_v22 = vadd.f32 %v1511_v57, %v5518_v47  ;;  %v4232_v60 = vld [vmem:[%s7480_s4 + $0x54] sm:$0xf0]  ;;  %v1566_v57 = vmul.f32 %v5518_v47, %v5518_v47 }
 0x248   :  { %v5780_v4 = vpop.f32.mrf.mxu0  ;;  %2141 = vmatpush.bf16.msra.mxu1 %v3922_v40  ;;  %v3845_v40 = vld [vmem:[%s7480_s4 + $0x50] sm:$0xf] }
 0x249   :  { %v5784_v50 = vpop.f32.mrf.mxu1  ;;  %v5818_v38 = vpop.f32.mrf.mxu3  ;;  %v1513_v24 = vadd.f32 %v1512_v22, %v5523_v18  ;;  %v3846_v22 = vor.u32 %v4232_v60, %v3845_v40  ;;  %v4247_v40 = vld [vmem:[%s7480_s4 + $0xd4] sm:$0xf]  ;;  %v3911_v60 = vld [vmem:[%s7480_s4 + $0xd8] sm:$0xf0] }
 0x24a   :  { %7568 = vst [vmem:[#allocation12_spill] sm:$0xff] %v5784_v50  ;;  %v5816_v50 = vpop.f32.mrf.mxu2 }
 0x24b   :  { %7572 = vst [vmem:[#allocation16_spill] sm:$0xff] %v5816_v50  ;;  %v1514_v33 = vadd.f32 %v1513_v24, %v5538_v41  ;;  %1995 = vmatpush.bf16.msrb.mxu2 %v3846_v22  ;;  %v3914_v24 = vor.u32 %v4247_v40, %v3911_v60  ;;  %v5878_v22 = vadd.f32 %v5585_v17, %v5583_v27 }
 0x24c   :  { %7573 = vst [vmem:[#allocation17_spill] sm:$0xff] %v5818_v38  ;;  %v4231_v38 = vld [vmem:[%s7480_s4 + $0x54] sm:$0xf]  ;;  %v1576_v40 = vmul.f32 %v5563_v10, %v5563_v10  ;;  %v5894_v27 = vadd.f32 %v5607_v43, %v5605_v31  ;;  %v5906_v31 = vadd.f32 %v5623_v36, %v5621_v20  ;;  %v3837_v43 = vld [vmem:[%s7480_s4 + $0x40] sm:$0xf] }
 0x24d   :  { %2142 = vmatpush.bf16.msra.mxu1 %v3914_v24  ;;  %v1578_v24 = vmul.f32 %v5578_v25, %v5578_v25  ;;  %v4246_v36 = vld [vmem:[%s7480_s4 + $0xc4] sm:$0xf0] }
 0x250   :  { %v5797_v29 = vpop.f32.mrf.mxu0 }
 0x251   :  { %7570 = vst [vmem:[#allocation14_spill] sm:$0xff] %v5797_v29  ;;  %v5808_v34 = vpop.f32.mrf.mxu1  ;;  %v5867_v29 = vpop.f32.mrf.mxu3 }
 0x252   :  { %7571 = vst [vmem:[#allocation15_spill] sm:$0xff] %v5808_v34  ;;  %v5827_v8 = vpop.f32.mrf.mxu2 }
 0x253   :  { %7576 = vst [vmem:[#allocation28_spill] sm:$0xff] %v5827_v8 }
 0x258   :  { %v5820_v34 = vpop.f32.mrf.mxu0 }
 0x259   :  { %7574 = vst [vmem:[#allocation18_spill] sm:$0xff] %v5820_v34  ;;  %v5822_v12 = vpop.f32.mrf.mxu1  ;;  %v3847_v34 = vld [vmem:[%s7480_s4 + $0x58] sm:$0xf0] }
 0x25a   :  { %7575 = vst [vmem:[#allocation27_spill] sm:$0xff] %v5822_v12  ;;  %v4248_v12 = vld [vmem:[%s7480_s4 + $0xd4] sm:$0xf0]  ;;  %v3850_v50 = vor.u32 %v4231_v38, %v3847_v34  ;;  %v1570_v34 = vmul.f32 %v5538_v41, %v5538_v41 }
 0x25b   :  { %v3910_v47 = vor.u32 %v4248_v12, %v3909_v0 }
 0x25c   :  { %2093 = vmatpush.bf16.msra.mxu0 %v3850_v50 }
 0x25d   :  { %2044 = vmatpush.bf16.msrb.mxu3 %v3910_v47 }
 0x260   :  { %v5845_v35 = vpop.f32.mrf.mxu0 }
 0x261   :  { %7577 = vst [vmem:[#allocation29_spill] sm:$0xff] %v5845_v35  ;;  %v5857_v8 = vpop.f32.mrf.mxu1  ;;  %v1594_v35 = vadd.f32 %v1564_v2, %v1562_v58  ;;  %v1572_v2 = vmul.f32 %v5543_v42, %v5543_v42 }
 0x262   :  { %7578 = vst [vmem:[#allocation30_spill] sm:$0xff] %v5857_v8  ;;  %v1515_v8 = vadd.f32 %v1514_v33, %v5543_v42  ;;  %v5880_v33 = vpop.f32.mrf.mxu2 }
 0x263   :  { %v1595_v38 = vadd.f32 %v1594_v35, %v1566_v57  ;;  %v1574_v35 = vmul.f32 %v5558_v9, %v5558_v9 }
 0x264   :  { %v1516_v12 = vadd.f32 %v1515_v8, %v5558_v9 }
 0x265   :  { %v1596_v0 = vadd.f32 %v1595_v38, %v1568_v63  ;;  %v4317_v38 = vmov 128.0  }
 0x266   :  { %v1517_v58 = vadd.f32 %v1516_v12, %v5563_v10  ;;  %4303 = vrcp.f32 %v4317_v38 }
 0x267   :  { %v1597_v47 = vadd.f32 %v1596_v0, %v1570_v34  ;;  %v5898_v34 = vpop.f32.mrf.mxu3 }
 0x268   :  { %v5884_v50 = vpop.f32.mrf.mxu0  ;;  %v1518_v8 = vadd.f32 %v1517_v58, %v5578_v25 }
 0x269   :  { %v5887_v63 = vpop.f32.mrf.mxu1  ;;  %v1598_v57 = vadd.f32 %v1597_v47, %v1572_v2  ;;  %v1580_v2 = vmul.f32 %v5878_v22, %v5878_v22  ;;  %v4230_v47 = vld [vmem:[%s7480_s4 + $0x44] sm:$0xf0] }
 0x26a   :  { %v1519_v60 = vadd.f32 %v1518_v8, %v5878_v22  ;;  %v3838_v20 = vor.u32 %v4230_v47, %v3837_v43  ;;  %v4245_v43 = vld [vmem:[%s7480_s4 + $0xc4] sm:$0xf]  ;;  %v3903_v47 = vld [vmem:[%s7480_s4 + $0xc8] sm:$0xf0] }
 0x26b   :  { %v1599_v17 = vadd.f32 %v1598_v57, %v1574_v35  ;;  %v3901_v35 = vld [vmem:[%s7480_s4 + $0xc0] sm:$0xf]  ;;  %v1325_v57 = vadd.f32 %v5652_v55, %v5650_v16  ;;  %v5933_v55 = vpop.f32.mrf.mxu2  ;;  %v3906_v42 = vor.u32 %v4245_v43, %v3903_v47 }
 0x26c   :  { %v1520_v12 = vadd.f32 %v1519_v60, %v5600_v7  ;;  %v4229_v60 = vld [vmem:[%s7480_s4 + $0x44] sm:$0xf]  ;;  %v5943_v10 = vpop.eup %4303  ;;  %1996 = vmatpush.bf16.msrb.mxu2 %v3838_v20 }
 0x26d   :  { %v1600_v0 = vadd.f32 %v1599_v17, %v1576_v40  ;;  %v3839_v17 = vld [vmem:[%s7480_s4 + $0x48] sm:$0xf0]  ;;  %2143 = vmatpush.bf16.msra.mxu1 %v3906_v42  ;;  %vm1558_vm1 = vweird.f32 %v5943_v10 }
 0x26e   :  { %v1521_v58 = vadd.f32 %v1520_v12, %v5894_v27  ;;  %v3902_v12 = vor.u32 %v4246_v36, %v3901_v35  ;;  %v5950_v35 = vadd.f32 %v5639_v5, %v5637_v23  ;;  %v1374_v36 = vadd.f32 %v5654_v51, %v1325_v57 }
 0x26f   :  { %v1601_v8 = vadd.f32 %v1600_v0, %v1578_v24  ;;  %v1582_v24 = vmul.f32 %v5600_v7, %v5600_v7  ;;  %v3842_v0 = vor.u32 %v4229_v60, %v3839_v17  ;;  %v1330_v60 = vadd.f32 %v5665_v59, %v5663_v6 }
 0x270   :  { %v5919_v40 = vpop.f32.mrf.mxu0  ;;  %v1522_v16 = vadd.f32 %v1521_v58, %v5616_v49  ;;  %v1584_v58 = vmul.f32 %v5894_v27, %v5894_v27  ;;  %2045 = vmatpush.bf16.msrb.mxu3 %v3902_v12  ;;  %v1554_v17 = vmul.f32 128.0, %v5943_v10  ;;  %v1423_v23 = vadd.f32 %v5730_v26, %v1374_v36 }
 0x271   :  { %v5935_v38 = vpop.f32.mrf.mxu1  ;;  %v1602_v9 = vadd.f32 %v1601_v8, %v1580_v2  ;;  %2094 = vmatpush.bf16.msra.mxu0 %v3842_v0  ;;  %v1586_v8 = vmul.f32 %v5616_v49, %v5616_v49  ;;  %v1588_v51 = vmul.f32 %v5906_v31, %v5906_v31  ;;  %v1379_v42 = vadd.f32 %v5667_v14, %v1330_v60 }
 0x272   :  { %v1523_v41 = vadd.f32 %v1522_v16, %v5906_v31  ;;  %v5959_v16 = vpop.f32.mrf.mxu3  ;;  %v1590_v59 = vmul.f32 %v5632_v1, %v5632_v1  ;;  %v1338_v26 = vadd.f32 %v5741_v52, %v5679_v21  ;;  %v5977_v0 = vadd.f32 %v5732_v3, %v1423_v23 }
 0x273   :  { %v1603_v2 = vadd.f32 %v1602_v9, %v1582_v24  ;;  %v1335_v9 = vadd.f32 %v5734_v44, %v5676_v30  ;;  %v1555_v24 = vsub.f32 1.0, %v1554_v17  ;;  %v1428_v14 = vadd.f32 %v5743_v11, %v1379_v42  ;;  %v7583_v42 = vld [vmem:[#allocation28_spill] sm:$0xff] }
 0x274   :  { %v1524_v20 = vadd.f32 %v1523_v41, %v5632_v1  ;;  %v1592_v30 = vmul.f32 %v5950_v35, %v5950_v35  ;;  %v1247_v44 = vadd.f32 %v5693_v54, %v5587_v28  ;;  %v1340_v60 = vadd.f32 %v5749_v32, %v5685_v62 }
 0x275   :  { %v1604_v5 = vadd.f32 %v1603_v2, %v1584_v58  ;;  %v1354_v58 = vpop.f32.mrf.mxu2  ;;  %v1384_v36 = vadd.f32 %v5736_v53, %v1335_v9  ;;  %v5988_v3 = vmul.f32 %v5943_v10, %v1555_v24  ;;  %v1343_v52 = vadd.f32 %v5782_v15, %v5688_v56 }
 0x276   :  { %v1525_v57 = vadd.f32 %v1524_v20, %v5950_v35  ;;  %v1387_v11 = vadd.f32 %v5747_v13, %v1338_v26  ;;  %v1565_v2 = vmul.f32 %v5977_v0, %v5977_v0  ;;  %v5996_v28 = vadd.f32 %v5745_v45, %v1428_v14  ;;  %v7579_v45 = vld [vmem:[#allocation14_spill] sm:$0xff] }
 0x277   :  { %v1605_v41 = vadd.f32 %v1604_v5, %v1586_v8  ;;  %v1433_v54 = vadd.f32 %v5780_v4, %v1384_v36  ;;  %v1296_v62 = vadd.f32 %v5695_v48, %v1247_v44  ;;  %v1252_v32 = vadd.f32 %v5703_v39, %v5609_v46  ;;  %v7580_v4 = vld [vmem:[#allocation13_spill] sm:$0xff]  ;;  %v7582_v48 = vld [vmem:[#allocation3_spill] sm:$0xff]  ;;  %v7585_v26 = vld [vmem:[#allocation18_spill] sm:$0xff] }
 0x278   :  { %v5968_v6 = vpop.f32.mrf.mxu0  ;;  %v1526_v47 = vrot.slane %v1525_v57, 4  ;;  %v1389_v20 = vadd.f32 %v5778_v61, %v1340_v60  ;;  %v1563_v13 = vmul.f32 %v5728_v19, %v5728_v19  ;;  %v1567_v15 = vmul.f32 %v5739_v37, %v5739_v37  ;;  %v7587_v44 = vld [vmem:[#allocation26_spill] sm:$0xff] }
 0x279   :  { %v5972_v12 = vpop.f32.mrf.mxu1  ;;  %v1606_v43 = vadd.f32 %v1605_v41, %v1588_v51  ;;  %v1436_v17 = vadd.f32 %v7579_v45, %v1387_v11  ;;  %v1392_v5 = vadd.f32 %v7580_v4, %v1343_v52  ;;  %v7581_v51 = vld [vmem:[#allocation16_spill] sm:$0xff]  ;;  %v1348_v9 = vadd.f32 %v7583_v42, %v7582_v48  ;;  %v7588_v36 = vld [vmem:[#allocation6_spill] sm:$0xff]  ;;  %v7589_v11 = vld [vmem:[#allocation11_spill] sm:$0xff] }
 0x27a   :  { %v1527_v53 = vadd.f32 %v1526_v47, %v1525_v57  ;;  %v1403_v56 = vpop.f32.mrf.mxu3  ;;  %v1345_v57 = vadd.f32 %v7581_v51, %v1296_v62  ;;  %v1532_v46 = vadd.f32 %v5977_v0, %v5728_v19  ;;  %v1615_v39 = vadd.f32 %v1565_v2, %v1563_v13  ;;  %v7586_v47 = vld [vmem:[#allocation4_spill] sm:$0xff]  ;;  %v7590_v62 = vld [vmem:[#allocation15_spill] sm:$0xff]  ;;  %v7591_v45 = vld [vmem:[#allocation29_spill] sm:$0xff] }
 0x27b   :  { %v1607_v21 = vadd.f32 %v1606_v43, %v1590_v59  ;;  %v1569_v41 = vmul.f32 %v5996_v28, %v5996_v28  ;;  %v7584_v59 = vld [vmem:[#allocation12_spill] sm:$0xff]  ;;  %v1438_v14 = vadd.f32 %v7585_v26, %v1389_v20  ;;  %v1257_v60 = vadd.f32 %v7588_v36, %v7587_v44  ;;  %v7592_v51 = vld [vmem:[#allocation17_spill] sm:$0xff] }
 0x27c   :  { %v6019_v24 = vadd.f32 %v7584_v59, %v1433_v54  ;;  %v1616_v52 = vadd.f32 %v1615_v39, %v1567_v15  ;;  %v1571_v2 = vmul.f32 %v7589_v11, %v7589_v11  ;;  %v6029_v13 = vadd.f32 %v7590_v62, %v1436_v17  ;;  %v7593_v39 = vld [vmem:[#allocation27_spill] sm:$0xff]  ;;  %v7594_v17 = vld [vmem:[#allocation5_spill] sm:$0xff] }
 0x27d   :  { %v1608_v8 = vadd.f32 %v1607_v21, %v1592_v30  ;;  %v1301_v30 = vadd.f32 %v7586_v47, %v1252_v32  ;;  %v1533_v21 = vadd.f32 %v1532_v46, %v5739_v37  ;;  %v1441_v54 = vadd.f32 %v7591_v45, %v1392_v5  ;;  %v1357_v32 = vpop.f32.mrf.mxu2  ;;  %v7595_v47 = vld [vmem:[#allocation7_spill] sm:$0xff] }
 0x27e   :  { %v1528_v4 = vrot.slane %v1527_v53, 2  ;;  %v1394_v20 = vadd.f32 %v7592_v51, %v1345_v57  ;;  %v1397_v59 = vadd.f32 %v5867_v29, %v1348_v9  ;;  %v1617_v46 = vadd.f32 %v1616_v52, %v1569_v41  ;;  %v7596_v9 = vld [vmem:[#allocation30_spill] sm:$0xff]  ;;  %v7597_v51 = vld [vmem:[#allocation8_spill] sm:$0xff] }
 0x27f   :  { %v1609_v43 = vrot.slane %v1608_v8, 4  ;;  %v1350_v48 = vadd.f32 %v5880_v33, %v1301_v30  ;;  %v1534_v42 = vadd.f32 %v1533_v21, %v5996_v28  ;;  %v1573_v15 = vmul.f32 %v6019_v24, %v6019_v24 }
 0x280   :  { %v1450_v23 = vpop.f32.mrf.mxu0  ;;  %v6039_v26 = vadd.f32 %v7593_v39, %v1438_v14  ;;  %v1353_v5 = vadd.f32 %v5933_v55, %v7594_v17  ;;  %v1306_v44 = vadd.f32 %v7595_v47, %v1257_v60  ;;  %v1443_v33 = vadd.f32 %v5884_v50, %v1394_v20 }
 0x281   :  { %v6014_v61 = vpop.f32.mrf.mxu1  ;;  %v1535_v57 = vadd.f32 %v1534_v42, %v7589_v11  ;;  %v1610_v30 = vadd.f32 %v1609_v43, %v1608_v8  ;;  %v1618_v36 = vadd.f32 %v1617_v46, %v1571_v2  ;;  %v1575_v29 = vmul.f32 %v6029_v13, %v6029_v13  ;;  %v7599_v42 = vld [vmem:[#allocation9_spill] sm:$0xff] }
 0x282   :  { %v6049_v41 = vadd.f32 %v7596_v9, %v1441_v54  ;;  %v1399_v14 = vadd.f32 %v5898_v34, %v1350_v48  ;;  %v1355_v52 = vadd.f32 %v1354_v58, %v1306_v44  ;;  %v1446_v60 = vadd.f32 %v5919_v40, %v1397_v59  ;;  %v1406_v8 = vpop.f32.mrf.mxu3  ;;  %v7598_v40 = vld [vmem:[#allocation2_spill] sm:$0xff] }
 0x283   :  { %v1536_v55 = vadd.f32 %v1535_v57, %v6019_v24  ;;  %v1529_v45 = vadd.f32 %v1528_v4, %v1527_v53  ;;  %v1358_v50 = vadd.f32 %v1357_v32, %v7597_v51  ;;  %v1619_v43 = vadd.f32 %v1618_v36, %v1573_v15 }
 0x284   :  { %v1577_v2 = vmul.f32 %v6039_v26, %v6039_v26  ;;  %v1402_v54 = vadd.f32 %v5959_v16, %v1353_v5  ;;  %v6060_v34 = vadd.f32 %v5887_v63, %v1443_v33  ;;  %v1448_v58 = vadd.f32 %v5968_v6, %v1399_v14 }
 0x285   :  { %v1537_v20 = vadd.f32 %v1536_v55, %v6029_v13  ;;  %v1611_v48 = vrot.slane %v1610_v30, 2  ;;  %v1262_v53 = vadd.f32 %v7599_v42, %v7598_v40  ;;  %v1620_v4 = vadd.f32 %v1619_v43, %v1575_v29  ;;  %v1359_v17 = vpop.f32.mrf.mxu2 }
 0x286   :  { %v1579_v32 = vmul.f32 %v6049_v41, %v6049_v41  ;;  %v1404_v59 = vadd.f32 %v1403_v56, %v1355_v52  ;;  %v6069_v16 = vadd.f32 %v5935_v38, %v1446_v60  ;;  %v1451_v15 = vadd.f32 %v1450_v23, %v1402_v54  ;;  %v7600_v23 = vld [vmem:[#allocation10_spill] sm:$0xff] }
 0x287   :  { %v1538_v46 = vadd.f32 %v1537_v20, %v6039_v26  ;;  %v1557_v63 = vadd.f32 %v5943_v10, %v5988_v3  ;;  %v1407_v6 = vadd.f32 %v1406_v8, %v1358_v50  ;;  %v1621_v39 = vadd.f32 %v1620_v4, %v1577_v2 }
 0x288   :  { %v1452_v21 = vpop.f32.mrf.mxu0  ;;  %v1581_v47 = vmul.f32 %v6060_v34, %v6060_v34  ;;  %v6078_v56 = vadd.f32 %v5972_v12, %v1448_v58  ;;  %v1530_v38 = vrot.slane %v1529_v45, 1  ;;  %v1612_v57 = vadd.f32 %v1611_v48, %v1610_v30 }
 0x289   :  { %v1501_v62 = vpop.f32.mrf.mxu1  ;;  %v1539_v5 = vadd.f32 %v1538_v46, %v6049_v41  ;;  %v1453_v44 = vadd.f32 %v1452_v21, %v1404_v59  ;;  %v1311_v33 = vadd.f32 %v7600_v23, %v1262_v53  ;;  %v1622_v36 = vadd.f32 %v1621_v39, %v1579_v32 }
 0x28a   :  { %v1583_v9 = vmul.f32 %v6069_v16, %v6069_v16  ;;  %v6085_v14 = vadd.f32 %v6014_v61, %v1451_v15  ;;  %v1585_v30 = vmul.f32 %v6078_v56, %v6078_v56  ;;  %v1531_v50 = vadd.f32 %v1530_v38, %v1529_v45  ;;  %v1408_v61 = vpop.f32.mrf.mxu3 }
 0x28b   :  { %v1540_v29 = vadd.f32 %v1539_v5, %v6060_v34  ;;  %v1360_v60 = vadd.f32 %v1359_v17, %v1311_v33  ;;  %v1623_v12 = vadd.f32 %v1622_v36, %v1581_v47  ;;  %v6090_v51 = vadd.f32 %v1501_v62, %v1453_v44 }
 0x28c   :  { %v6095_v8 = vsel %vm1558_vm1, %v5943_v10, %v1557_v63  ;;  %v1613_v43 = vrot.slane %v1612_v57, 1  ;;  %v1587_v20 = vmul.f32 %v6085_v14, %v6085_v14 }
 0x28d   :  { %v1541_v21 = vadd.f32 %v1540_v29, %v6069_v16  ;;  %v1624_v2 = vadd.f32 %v1623_v12, %v1583_v9  ;;  %v1409_v48 = vadd.f32 %v1408_v61, %v1360_v60  ;;  %v1589_v45 = vmul.f32 %v6090_v51, %v6090_v51  ;;  %v4228_v61 = vld [vmem:[%s7480_s4 + $0x34] sm:$0xf0] }
 0x28e   :  { %v6106_v10 = vmul.f32 %v6095_v8, %v1531_v50  ;;  %v1614_v42 = vadd.f32 %v1613_v43, %v1612_v57  ;;  %v3829_v43 = vld [vmem:[%s7480_s4 + $0x30] sm:$0xf] }
 0x28f   :  { %v1542_v54 = vadd.f32 %v1541_v21, %v6078_v56  ;;  %v1625_v40 = vadd.f32 %v1624_v2, %v1585_v30  ;;  %v3893_v2 = vld [vmem:[%s7480_s4 + $0xb0] sm:$0xf] }
 0x290   :  { %v1455_v3 = vpop.f32.mrf.mxu0  ;;  %v1636_v17 = vmul.f32 %v1614_v42, %v6095_v8  ;;  %v1638_v5 = vmul.f32 %v6106_v10, %v6106_v10 }
 0x291   :  { %v1456_v52 = vadd.f32 %v1455_v3, %v1407_v6  ;;  %v1504_v55 = vpop.f32.mrf.mxu1  ;;  %v1543_v62 = vadd.f32 %v1542_v54, %v6085_v14  ;;  %v1626_v4 = vadd.f32 %v1625_v40, %v1587_v20  ;;  %v4244_v40 = vld [vmem:[%s7480_s4 + $0xb4] sm:$0xf0] }
 0x292   :  { %v1640_v33 = vsub.f32 %v1636_v17, %v1638_v5  ;;  %v3894_v42 = vor.u32 %v4244_v40, %v3893_v2  ;;  %v3885_v17 = vld [vmem:[%s7480_s4 + $0xa0] sm:$0xf]  ;;  %v3815_v2 = vld [vmem:[%s7480_s4 + $0x18] sm:$0xf0]  ;;  %v4239_v40 = vld [vmem:[%s7480_s4 + $0x94] sm:$0xf] }
 0x293   :  { %v6100_v58 = vadd.f32 %v1504_v55, %v1456_v52  ;;  %v1544_v32 = vadd.f32 %v1543_v62, %v6090_v51  ;;  %v1627_v63 = vadd.f32 %v1626_v4, %v1589_v45  ;;  %v4227_v62 = vld [vmem:[%s7480_s4 + $0x34] sm:$0xf]  ;;  %v3831_v45 = vld [vmem:[%s7480_s4 + $0x38] sm:$0xf0] }
 0x294   :  { %v6120_v52 = vadd.f32 1e-05, %v1640_v33  ;;  %v4243_v4 = vld [vmem:[%s7480_s4 + $0xb4] sm:$0xf]  ;;  %2046 = vmatpush.bf16.msrb.mxu3 %v3894_v42 }
 0x295   :  { %v1591_v59 = vmul.f32 %v6100_v58, %v6100_v58  ;;  %v1545_v6 = vadd.f32 %v1544_v32, %v6100_v58  ;;  %v3895_v32 = vld [vmem:[%s7480_s4 + $0xb8] sm:$0xf0] }
 0x296   :  { %4305 = vrsqrt.f32 %v6120_v52  ;;  %vm1650_vm6 = vweird.f32 %v6120_v52 }
 0x297   :  { %v1628_v47 = vadd.f32 %v1627_v63, %v1591_v59  ;;  %v3821_v63 = vld [vmem:[%s7480_s4 + $0x20] sm:$0xf] }
 0x298   :  { %v1457_v53 = vpop.f32.mrf.mxu0 }
 0x299   :  { %v1458_v46 = vadd.f32 %v1457_v53, %v1409_v48  ;;  %v1506_v15 = vpop.f32.mrf.mxu1  ;;  %v3830_v48 = vor.u32 %v4228_v61, %v3829_v43  ;;  %v3834_v53 = vor.u32 %v4227_v62, %v3831_v45  ;;  %v4240_v43 = vld [vmem:[%s7480_s4 + $0x94] sm:$0xf0]  ;;  %v4223_v61 = vld [vmem:[%s7480_s4 + $0x14] sm:$0xf]  ;;  %v3879_v62 = vld [vmem:[%s7480_s4 + $0x98] sm:$0xf0] }
 0x29a   :  { %v3805_v45 = vld [vmem:[%s7480_s4] sm:$0xf]  ;;  %v3882_v42 = vor.u32 %v4239_v40, %v3879_v62 }
 0x29b   :  { %v6112_v39 = vadd.f32 %v1506_v15, %v1458_v46  ;;  %1997 = vmatpush.bf16.msrb.mxu2 %v3830_v48  ;;  %v3898_v15 = vor.u32 %v4243_v4, %v3895_v32  ;;  %2095 = vmatpush.bf16.msra.mxu0 %v3834_v53  ;;  %v3818_v48 = vor.u32 %v4223_v61, %v3815_v2  ;;  %v4222_v53 = vld [vmem:[%s7480_s4 + $0x4] sm:$0xf0]  ;;  %v3869_v4 = vld [vmem:[%s7480_s4 + $0x80] sm:$0xf] }
 0x29c   :  { %v6162_v5 = vpop.eup %4305  ;;  %v4238_v32 = vld [vmem:[%s7480_s4 + $0x84] sm:$0xf0]  ;;  %v1510_v40 = vld [vmem:[%s7482_s3] sm:$0x3] }
 0x29d   :  { %v1546_v44 = vadd.f32 %v1545_v6, %v6112_v39  ;;  %v1593_v38 = vmul.f32 %v6112_v39, %v6112_v39  ;;  %v4226_v6 = vld [vmem:[%s7480_s4 + $0x24] sm:$0xf0]  ;;  %2144 = vmatpush.bf16.msra.mxu1 %v3898_v15  ;;  %v3870_v15 = vor.u32 %v4238_v32, %v3869_v4  ;;  %vm1651_vm3 = vweird.f32 %v6162_v5  ;;  %v7602_v32 = vld [vmem:[#allocation20_spill] sm:$0xff] }
 0x29e   :  { %vm1652_vm8 = vmor %vm1650_vm6, %vm1651_vm3 }
 0x29f   :  { %v1547_v57 = vrot.slane %v1546_v44, 4  ;;  %v1629_v23 = vadd.f32 %v1628_v47, %v1593_v38  ;;  %v4242_v38 = vld [vmem:[%s7480_s4 + $0xa4] sm:$0xf0] }
 0x2a0   :  { %v3886_v33 = vor.u32 %v4242_v38, %v3885_v17  ;;  %v4237_v17 = vld [vmem:[%s7480_s4 + $0x84] sm:$0xf] }
 0x2a1   :  { %v1548_v36 = vadd.f32 %v1547_v57, %v1546_v44  ;;  %v1630_v3 = vrot.slane %v1629_v23, 4  ;;  %v3822_v44 = vor.u32 %v4226_v6, %v3821_v63  ;;  %v4225_v57 = vld [vmem:[%s7480_s4 + $0x24] sm:$0xf]  ;;  %v3807_v6 = vld [vmem:[%s7480_s4 + $0x8] sm:$0xf0] }
 0x2a2   :  { %2047 = vmatpush.bf16.msrb.mxu3 %v3886_v33  ;;  %v4221_v63 = vld [vmem:[%s7480_s4 + $0x4] sm:$0xf] }
 0x2a3   :  { %v1549_v29 = vrot.slane %v1548_v36, 2  ;;  %v1631_v9 = vadd.f32 %v1630_v3, %v1629_v23  ;;  %v3823_v23 = vld [vmem:[%s7480_s4 + $0x28] sm:$0xf0]  ;;  %v4241_v3 = vld [vmem:[%s7480_s4 + $0xa4] sm:$0xf]  ;;  %1998 = vmatpush.bf16.msrb.mxu2 %v3822_v44 }
 0x2a4   :  { %v3871_v44 = vld [vmem:[%s7480_s4 + $0x88] sm:$0xf0] }
 0x2a5   :  { %v1550_v55 = vadd.f32 %v1549_v29, %v1548_v36  ;;  %v1632_v60 = vrot.slane %v1631_v9, 2  ;;  %v3826_v36 = vor.u32 %v4225_v57, %v3823_v23  ;;  %v3887_v29 = vld [vmem:[%s7480_s4 + $0xa8] sm:$0xf0]  ;;  %v3874_v38 = vor.u32 %v4237_v17, %v3871_v44 }
 0x2a7   :  { %v1551_v12 = vrot.slane %v1550_v55, 1  ;;  %v1633_v21 = vadd.f32 %v1632_v60, %v1631_v9  ;;  %v1645_v60 = vmul.f32 %v6162_v5, %v6120_v52  ;;  %2096 = vmatpush.bf16.msra.mxu0 %v3826_v36 }
 0x2a9   :  { %v1552_v30 = vadd.f32 %v1551_v12, %v1550_v55  ;;  %v1634_v50 = vrot.slane %v1633_v21, 1  ;;  %v3890_v55 = vor.u32 %v4241_v3, %v3887_v29  ;;  %v3813_v12 = vld [vmem:[%s7480_s4 + $0x10] sm:$0xf] }
 0x2ab   :  { %v6133_v54 = vmul.f32 %v6095_v8, %v1552_v30  ;;  %v1635_v20 = vadd.f32 %v1634_v50, %v1633_v21  ;;  %v4224_v21 = vld [vmem:[%s7480_s4 + $0x14] sm:$0xf0]  ;;  %v3877_v30 = vld [vmem:[%s7480_s4 + $0x90] sm:$0xf]  ;;  %2145 = vmatpush.bf16.msra.mxu1 %v3890_v55  ;;  %2097 = vmatpush.bf16.msra.mxu0 %v3818_v48 }
 0x2ac   :  { %v3814_v50 = vor.u32 %v4224_v21, %v3813_v12 }
 0x2ad   :  { %v1637_v59 = vmul.f32 %v1635_v20, %v6095_v8  ;;  %v1639_v46 = vmul.f32 %v6133_v54, %v6133_v54  ;;  %v3878_v20 = vor.u32 %v4240_v43, %v3877_v30  ;;  %v1509_v30 = vld [vmem:[%s7481_s2] sm:$0x3] }
 0x2ae   :  { %1999 = vmatpush.bf16.msrb.mxu2 %v3814_v50 }
 0x2af   :  { %v1641_v47 = vsub.f32 %v1637_v59, %v1639_v46  ;;  %v1646_v59 = vmul.f32 %v6162_v5, %v1645_v60  ;;  %2048 = vmatpush.bf16.msrb.mxu3 %v3878_v20  ;;  %v3806_v46 = vor.u32 %v4222_v53, %v3805_v45  ;;  %2146 = vmatpush.bf16.msra.mxu1 %v3882_v42  ;;  %v7601_v53 = vld [vmem:[#allocation19_spill] sm:$0xff] }
 0x2b1   :  { %v1643_v9 = vadd.f32 1e-05, %v1641_v47  ;;  %v3810_v47 = vor.u32 %v4221_v63, %v3807_v6  ;;  %v1647_v23 = vmul.f32 0.5, %v1646_v59 }
 0x2b2   :  { %2000 = vmatpush.bf16.msrb.mxu2 %v3806_v46 }
 0x2b3   :  { %4307 = vrsqrt.f32 %v1643_v9  ;;  %2049 = vmatpush.bf16.msrb.mxu3 %v3870_v15  ;;  %2098 = vmatpush.bf16.msra.mxu0 %v3810_v47  ;;  %v1648_v3 = vsub.f32 1.5, %v1647_v23  ;;  %vm1660_vm4 = vweird.f32 %v1643_v9  ;;  %v7603_v23 = vld [vmem:[#allocation21_spill] sm:$0xff] }
 0x2b4   :  { %2147 = vmatpush.bf16.msra.mxu1 %v3874_v38 }
 0x2b5   :  { %v1649_v60 = vmul.f32 %v6162_v5, %v1648_v3 }
 0x2b7   :  { %v1653_v43 = vsel %vm1652_vm8, %v6162_v5, %v1649_v60 }
 0x2b9   :  { %v4308_v57 = vpop.eup %4307 }
 0x2ba   :  { %v1655_v33 = vmul.f32 %v4308_v57, %v1643_v9  ;;  %vm1661_vm2 = vweird.f32 %v4308_v57 }
 0x2bb   :  { %vm1662_vm5 = vmor %vm1660_vm4, %vm1661_vm2 }
 0x2bc   :  { %v1656_v36 = vmul.f32 %v4308_v57, %v1655_v33 }
 0x2be   :  { %v1657_v29 = vmul.f32 0.5, %v1656_v36 }
 0x2c0   :  { %v1658_v55 = vsub.f32 1.5, %v1657_v29 }
 0x2c2   :  { %v1659_v12 = vmul.f32 %v4308_v57, %v1658_v55 }
 0x2c4   :  { %v1663_v21 = vsel %vm1662_vm5, %v4308_v57, %v1659_v12 }
 0x2c5   :  { %v1666_v50 = vrot.slane %v1663_v21, 7 }
 0x2c7   :  { %v1668_v61 = vsel %vm1667_vm7, %v1653_v43, %v1666_v50 }
 0x2c8   :  { %v1670_v2 = vmul.f32 %v1668_v61, %v1509_v30 }
 0x2ca   :  { %v6238_v20 = vperm.slane %v1670_v2, 0  ;;  %v6240_v48 = vperm.slane %v1670_v2, 1 }
 0x2cc   :  { %v1677_v52 = vmul.f32 %v6240_v48, %v6133_v54  ;;  %v6246_v9 = vmul.f32 %v6240_v48, %v6112_v39  ;;  %v1676_v5 = vmul.f32 %v6238_v20, %v6106_v10  ;;  %v1684_v4 = vmul.f32 %v6238_v20, %v7601_v53 }
 0x2cd   :  { %v1686_v54 = vmul.f32 %v6238_v20, %v7602_v32  ;;  %v1685_v46 = vmul.f32 %v6240_v48, %v5728_v19  ;;  %v1687_v10 = vmul.f32 %v6240_v48, %v5977_v0  ;;  %v1688_v33 = vmul.f32 %v6238_v20, %v7603_v23 }
 0x2ce   :  { %v1680_v62 = vrot.slane %v1677_v52, 7  ;;  %v1690_v19 = vmul.f32 %v6238_v20, %v5523_v18  ;;  %v1689_v0 = vmul.f32 %v6240_v48, %v5739_v37  ;;  %v1691_v36 = vmul.f32 %v6240_v48, %v5996_v28 }
 0x2cf   :  { %v1700_v55 = vmul.f32 %v6238_v20, %v5578_v25  ;;  %v1702_v60 = vmul.f32 %v6238_v20, %v5878_v22  ;;  %v1701_v18 = vmul.f32 %v6240_v48, %v6049_v41  ;;  %v1703_v37 = vmul.f32 %v6240_v48, %v6060_v34 }
 0x2d0   :  { %v1681_v45 = vsel %vm1667_vm7, %v1676_v5, %v1680_v62  ;;  %v1704_v25 = vmul.f32 %v6238_v20, %v5600_v7  ;;  %v1706_v22 = vmul.f32 %v6238_v20, %v5894_v27  ;;  %v1705_v41 = vmul.f32 %v6240_v48, %v6069_v16 }
 0x2d1   :  { %v1683_v42 = vsub.f32 %v1510_v40, %v1681_v45  ;;  %v1707_v34 = vmul.f32 %v6240_v48, %v6078_v56  ;;  %v1708_v43 = vmul.f32 %v6238_v20, %v5616_v49  ;;  %v1710_v7 = vmul.f32 %v6238_v20, %v5906_v31 }
 0x2d2   :  { %v1709_v27 = vmul.f32 %v6240_v48, %v6085_v14  ;;  %v1711_v16 = vmul.f32 %v6240_v48, %v6090_v51 }
 0x2d3   :  { %v6258_v59 = vperm.slane %v1683_v42, 0  ;;  %v6260_v39 = vperm.slane %v1683_v42, 1 }
 0x2d5   :  { %v1721_v15 = vadd.f32 %v6258_v59, %v1684_v4  ;;  %v1723_v63 = vadd.f32 %v6258_v59, %v1686_v54  ;;  %v1722_v6 = vadd.f32 %v6260_v39, %v1685_v46  ;;  %v1724_v17 = vadd.f32 %v6260_v39, %v1687_v10 }
 0x2d6   :  { %v1725_v12 = vadd.f32 %v6258_v59, %v1688_v33  ;;  %v1727_v21 = vadd.f32 %v6258_v59, %v1690_v19  ;;  %v1726_v28 = vadd.f32 %v6260_v39, %v1689_v0  ;;  %v1728_v30 = vadd.f32 %v6260_v39, %v1691_v36 }
 0x2d7   :  { %v1753_v47 = vmax.f32 %v1721_v15, 0.0  ;;  %v1755_v44 = vmax.f32 %v1723_v63, 0.0  ;;  %v1754_v38 = vmax.f32 %v1722_v6, 0.0  ;;  %v1756_v57 = vmax.f32 %v1724_v17, 0.0 }
 0x2d8   :  { %v1737_v50 = vadd.f32 %v6258_v59, %v1700_v55  ;;  %v1757_v61 = vmax.f32 %v1725_v12, 0.0  ;;  %v1759_v2 = vmax.f32 %v1727_v21, 0.0  ;;  %v1739_v52 = vadd.f32 %v6258_v59, %v1702_v60 }
 0x2d9   :  { %v1785_v3 = vpack.c.bf16 %v1755_v44, %v1753_v47  ;;  %v1786_v29 = vpack.c.bf16 %v1756_v57, %v1754_v38  ;;  %v1758_v40 = vmax.f32 %v1726_v28, 0.0  ;;  %v1738_v5 = vadd.f32 %v6260_v39, %v1701_v18 }
 0x2da   :  { %v1769_v56 = vmax.f32 %v1737_v50, 0.0  ;;  %v1740_v62 = vadd.f32 %v6260_v39, %v1703_v37  ;;  %v1760_v49 = vmax.f32 %v1728_v30, 0.0  ;;  %v1771_v45 = vmax.f32 %v1739_v52, 0.0  ;;  %v7605_v50 = vld [vmem:[#allocation23_spill] sm:$0xff] }
 0x2db   :  { %2001 = vmatmul.bf16.vlgmr.msrb.gmra.mxu2 %v1785_v3  ;;  %2050 = vmatmul.bf16.vlgmr.msrb.gmra.mxu3 %v1786_v29  ;;  %v1741_v31 = vadd.f32 %v6258_v59, %v1704_v25  ;;  %v1743_v42 = vadd.f32 %v6258_v59, %v1706_v22  ;;  %v1770_v14 = vmax.f32 %v1738_v5, 0.0  ;;  %v1742_v4 = vadd.f32 %v6260_v39, %v1705_v41  ;;  %v7604_v41 = vld [vmem:[#allocation22_spill] sm:$0xff] }
 0x2dc   :  { %2099 = vmatmul.bf16.vlgmr.msra.gmra.mxu0 %v1785_v3  ;;  %2148 = vmatmul.bf16.vlgmr.msra.gmra.mxu1 %v1786_v29  ;;  %v1772_v53 = vmax.f32 %v1740_v62, 0.0  ;;  %v1744_v32 = vadd.f32 %v6260_v39, %v1707_v34  ;;  %v6314_v54 = vpack.c.bf16 %v1771_v45, %v1769_v56  ;;  %v1745_v10 = vadd.f32 %v6258_v59, %v1708_v43 }
 0x2dd   :  { %v1773_v51 = vmax.f32 %v1741_v31, 0.0  ;;  %v1775_v46 = vmax.f32 %v1743_v42, 0.0  ;;  %v1774_v63 = vmax.f32 %v1742_v4, 0.0  ;;  %v1747_v17 = vadd.f32 %v6258_v59, %v1710_v7  ;;  %v7607_v31 = vld [vmem:[#allocation25_spill] sm:$0xff] }
 0x2de   :  { %v6317_v15 = vpack.c.bf16 %v1772_v53, %v1770_v14  ;;  %v1776_v6 = vmax.f32 %v1744_v32, 0.0  ;;  %v1777_v44 = vmax.f32 %v1745_v10, 0.0  ;;  %v1746_v38 = vadd.f32 %v6260_v39, %v1709_v27 }
 0x2df   :  { %v6320_v47 = vpack.c.bf16 %v1775_v46, %v1773_v51  ;;  %v1748_v57 = vadd.f32 %v6260_v39, %v1711_v16  ;;  %v1779_v33 = vmax.f32 %v1747_v17, 0.0  ;;  %v1712_v19 = vmul.f32 %v6238_v20, %v5632_v1 }
 0x2e0   :  { %v6324_v23 = vpack.c.bf16 %v1776_v6, %v1774_v63  ;;  %v1714_v0 = vmul.f32 %v6238_v20, %v5950_v35  ;;  %v1778_v36 = vmax.f32 %v1746_v38, 0.0  ;;  %v1713_v29 = vmul.f32 %v6240_v48, %v6100_v58 }
 0x2e1   :  { %v1780_v3 = vmax.f32 %v1748_v57, 0.0  ;;  %v1752_v55 = vadd.f32 %v6260_v39, %v6246_v9  ;;  %v1797_v60 = vpack.c.bf16 %v1779_v33, %v1777_v44  ;;  %v1749_v12 = vadd.f32 %v6258_v59, %v1712_v19 }
 0x2e2   :  { %v1751_v21 = vadd.f32 %v6258_v59, %v1714_v0  ;;  %v1750_v37 = vadd.f32 %v6260_v39, %v1713_v29  ;;  %v1787_v28 = vpack.c.bf16 %v1759_v2, %v1757_v61  ;;  %v1788_v25 = vpack.c.bf16 %v1760_v49, %v1758_v40 }
 0x2e3   :  { %v1798_v18 = vpack.c.bf16 %v1780_v3, %v1778_v36  ;;  %v1784_v1 = vmax.f32 %v1752_v55, 0.0  ;;  %v1781_v35 = vmax.f32 %v1749_v12, 0.0  ;;  %v1692_v34 = vmul.f32 %v6238_v20, %v7604_v41  ;;  %v4267_v41 = vld [vmem:[%s7483_s7 + $0x74] sm:$0xf] }
 0x2e4   :  { %v1783_v22 = vmax.f32 %v1751_v21, 0.0  ;;  %v1782_v30 = vmax.f32 %v1750_v37, 0.0  ;;  %v1694_v43 = vmul.f32 %v6238_v20, %v7605_v50  ;;  %v1693_v7 = vmul.f32 %v6240_v48, %v7589_v11  ;;  %v7606_v11 = vld [vmem:[#allocation24_spill] sm:$0xff] }
 0x2e5   :  { %v1695_v27 = vmul.f32 %v6240_v48, %v6019_v24  ;;  %v1729_v61 = vadd.f32 %v6258_v59, %v1692_v34  ;;  %v1696_v24 = vmul.f32 %v6238_v20, %v7606_v11  ;;  %v1698_v42 = vmul.f32 %v6238_v20, %v7607_v31  ;;  %v3989_v21 = vld [vmem:[%s7483_s7 + $0x70] sm:$0xf]  ;;  %v3991_v34 = vld [vmem:[%s7483_s7 + $0x78] sm:$0xf0]  ;;  %v4283_v50 = vld [vmem:[%s7483_s7 + $0xf4] sm:$0xf] }
 0x2e6   :  { %v1799_v58 = vpack.c.bf16 %v1783_v22, %v1781_v35  ;;  %v1800_v9 = vpack.c.bf16 %v1784_v1, %v1782_v30  ;;  %v1731_v2 = vadd.f32 %v6258_v59, %v1694_v43  ;;  %v1730_v52 = vadd.f32 %v6260_v39, %v1693_v7  ;;  %v4053_v37 = vld [vmem:[%s7483_s7 + $0xf0] sm:$0xf] }
 0x2e7   :  { %v1732_v16 = vadd.f32 %v6260_v39, %v1695_v27  ;;  %v1761_v40 = vmax.f32 %v1729_v61, 0.0  ;;  %v1697_v14 = vmul.f32 %v6240_v48, %v6029_v13  ;;  %v1699_v53 = vmul.f32 %v6240_v48, %v6039_v26  ;;  %v4055_v27 = vld [vmem:[%s7483_s7 + $0xf8] sm:$0xf0] }
 0x2e8   :  { %v1763_v56 = vmax.f32 %v1731_v2, 0.0  ;;  %v1762_v5 = vmax.f32 %v1730_v52, 0.0  ;;  %v1733_v4 = vadd.f32 %v6258_v59, %v1696_v24  ;;  %v1735_v32 = vadd.f32 %v6258_v59, %v1698_v42 }
 0x2e9   :  { %v1764_v62 = vmax.f32 %v1732_v16, 0.0  ;;  %v1734_v51 = vadd.f32 %v6260_v39, %v1697_v14  ;;  %v1736_v46 = vadd.f32 %v6260_v39, %v1699_v53  ;;  %v3994_v7 = vor.u32 %v4267_v41, %v3991_v34  ;;  %v4265_v53 = vld [vmem:[%s7483_s7 + $0x64] sm:$0xf]  ;;  %v3965_v34 = vld [vmem:[%s7483_s7 + $0x40] sm:$0xf] }
 0x2ea   :  { %v1789_v49 = vpack.c.bf16 %v1763_v56, %v1761_v40  ;;  %v1765_v10 = vmax.f32 %v1733_v4, 0.0  ;;  %v1767_v63 = vmax.f32 %v1735_v32, 0.0  ;;  %v4058_v61 = vor.u32 %v4283_v50, %v4055_v27  ;;  %v3981_v56 = vld [vmem:[%s7483_s7 + $0x60] sm:$0xf]  ;;  %v3983_v4 = vld [vmem:[%s7483_s7 + $0x68] sm:$0xf0] }
 0x2eb   :  { %2006 = vmatmul.bf16.gmra.mxu2 %v1787_v28  ;;  %2055 = vmatmul.bf16.gmra.mxu3 %v1788_v25  ;;  %v1790_v45 = vpack.c.bf16 %v1764_v62, %v1762_v5  ;;  %v1766_v6 = vmax.f32 %v1734_v51, 0.0  ;;  %v1768_v17 = vmax.f32 %v1736_v46, 0.0  ;;  %v4266_v5 = vld [vmem:[%s7483_s7 + $0x64] sm:$0xf0]  ;;  %v4045_v62 = vld [vmem:[%s7483_s7 + $0xe0] sm:$0xf]  ;;  %v3986_v51 = vor.u32 %v4265_v53, %v3983_v4 }
 0x2ec   :  { %2104 = vmatmul.bf16.gmra.mxu0 %v1787_v28  ;;  %2153 = vmatmul.bf16.gmra.mxu1 %v1788_v25  ;;  %v1791_v44 = vpack.c.bf16 %v1767_v63, %v1765_v10  ;;  %v4284_v28 = vld [vmem:[%s7483_s7 + $0xf4] sm:$0xf0]  ;;  %v4281_v32 = vld [vmem:[%s7483_s7 + $0xe4] sm:$0xf]  ;;  %v4047_v46 = vld [vmem:[%s7483_s7 + $0xe8] sm:$0xf0] }
 0x2ed   :  { %v1792_v20 = vpack.c.bf16 %v1768_v17, %v1766_v6  ;;  %v4054_v25 = vor.u32 %v4284_v28, %v4053_v37  ;;  %2763 = vmatpush.bf16.msrb.mxu0 %v3994_v7  ;;  %2812 = vmatpush.bf16.msrb.mxu1 %v4058_v61  ;;  %v4050_v10 = vor.u32 %v4281_v32, %v4047_v46  ;;  %v3975_v37 = vld [vmem:[%s7483_s7 + $0x58] sm:$0xf0]  ;;  %v4262_v50 = vld [vmem:[%s7483_s7 + $0x44] sm:$0xf0]  ;;  %v4029_v7 = vld [vmem:[%s7483_s7 + $0xc0] sm:$0xf] }
 0x2ee   :  { %v3966_v27 = vor.u32 %v4262_v50, %v3965_v34  ;;  %v4278_v61 = vld [vmem:[%s7483_s7 + $0xc4] sm:$0xf0]  ;;  %v3967_v53 = vld [vmem:[%s7483_s7 + $0x48] sm:$0xf0]  ;;  %v4277_v4 = vld [vmem:[%s7483_s7 + $0xc4] sm:$0xf] }
 0x2ef   :  { %2714 = vmatpush.bf16.msra.mxu3 %v4054_v25  ;;  %v4039_v25 = vld [vmem:[%s7483_s7 + $0xd8] sm:$0xf0] }
 0x2f1   :  { %2764 = vmatpush.bf16.msrb.mxu0 %v3986_v51  ;;  %2813 = vmatpush.bf16.msrb.mxu1 %v4050_v10  ;;  %v4031_v51 = vld [vmem:[%s7483_s7 + $0xc8] sm:$0xf0] }
 0x2f2   :  { %v4034_v46 = vor.u32 %v4277_v4, %v4031_v51 }
 0x2fb   :  { %2011 = vmatmul.bf16.gmra.mxu2 %v1789_v49  ;;  %2060 = vmatmul.bf16.gmra.mxu3 %v1790_v45 }
 0x2fc   :  { %2109 = vmatmul.bf16.gmra.mxu0 %v1789_v49  ;;  %2158 = vmatmul.bf16.gmra.mxu1 %v1790_v45  ;;  %v3982_v49 = vor.u32 %v4266_v5, %v3981_v56  ;;  %v4282_v45 = vld [vmem:[%s7483_s7 + $0xe4] sm:$0xf0]  ;;  %v4030_v56 = vor.u32 %v4278_v61, %v4029_v7 }
 0x2fd   :  { %v4046_v11 = vor.u32 %v4282_v45, %v4045_v62 }
 0x2ff   :  { %2715 = vmatpush.bf16.msra.mxu3 %v4046_v11  ;;  %v4261_v11 = vld [vmem:[%s7483_s7 + $0x44] sm:$0xf] }
 0x300   :  { %v3970_v32 = vor.u32 %v4261_v11, %v3967_v53 }
 0x30b   :  { %2016 = vmatmul.bf16.gmra.mxu2 %v1791_v44  ;;  %2065 = vmatmul.bf16.gmra.mxu3 %v1792_v20 }
 0x30c   :  { %2114 = vmatmul.bf16.gmra.mxu0 %v1791_v44  ;;  %2163 = vmatmul.bf16.gmra.mxu1 %v1792_v20  ;;  %v3973_v20 = vld [vmem:[%s7483_s7 + $0x50] sm:$0xf] }
 0x31b   :  { %2021 = vmatmul.bf16.gmra.mxu2 %v6314_v54  ;;  %2070 = vmatmul.bf16.gmra.mxu3 %v6317_v15 }
 0x31c   :  { %2119 = vmatmul.bf16.gmra.mxu0 %v6314_v54  ;;  %2168 = vmatmul.bf16.gmra.mxu1 %v6317_v15 }
 0x32b   :  { %2026 = vmatmul.bf16.gmra.mxu2 %v6320_v47  ;;  %2075 = vmatmul.bf16.gmra.mxu3 %v6324_v23 }
 0x32c   :  { %2124 = vmatmul.bf16.gmra.mxu0 %v6320_v47  ;;  %2173 = vmatmul.bf16.gmra.mxu1 %v6324_v23 }
 0x33b   :  { %2031 = vmatmul.bf16.gmra.mxu2 %v1797_v60  ;;  %2080 = vmatmul.bf16.gmra.mxu3 %v1798_v18 }
 0x33c   :  { %2129 = vmatmul.bf16.gmra.mxu0 %v1797_v60  ;;  %2178 = vmatmul.bf16.gmra.mxu1 %v1798_v18  ;;  %v4268_v18 = vld [vmem:[%s7483_s7 + $0x74] sm:$0xf0] }
 0x33d   :  { %v3990_v1 = vor.u32 %v4268_v18, %v3989_v21  ;;  %v4263_v18 = vld [vmem:[%s7483_s7 + $0x54] sm:$0xf] }
 0x33e   :  { %v3978_v28 = vor.u32 %v4263_v18, %v3975_v37 }
 0x33f   :  { %2665 = vmatpush.bf16.msra.mxu2 %v3990_v1  ;;  %v4279_v1 = vld [vmem:[%s7483_s7 + $0xd4] sm:$0xf] }
 0x340   :  { %2765 = vmatpush.bf16.msrb.mxu0 %v3978_v28 }
 0x343   :  { %2666 = vmatpush.bf16.msra.mxu2 %v3982_v49 }
 0x344   :  { %2766 = vmatpush.bf16.msrb.mxu0 %v3970_v32 }
 0x34b   :  { %2036 = vmatmul.bf16.gmra.mxu2 %v1799_v58  ;;  %2085 = vmatmul.bf16.gmra.mxu3 %v1800_v9 }
 0x34c   :  { %2134 = vmatmul.bf16.gmra.mxu0 %v1799_v58  ;;  %2183 = vmatmul.bf16.gmra.mxu1 %v1800_v9 }
 0x359   :  { %v2100_v13 = vpop.f32.mrf.mxu0  ;;  %v2149_v26 = vpop.f32.mrf.mxu1 }
 0x35a   :  { %v6369_v48 = vadd.f32 %v2149_v26, %v2100_v13  ;;  %v4264_v13 = vld [vmem:[%s7483_s7 + $0x54] sm:$0xf0]  ;;  %v4037_v26 = vld [vmem:[%s7483_s7 + $0xd0] sm:$0xf] }
 0x35e   :  { %v2002_v59 = vpop.f32.mrf.mxu2  ;;  %v2051_v39 = vpop.f32.mrf.mxu3 }
 0x35f   :  { %v6371_v54 = vadd.f32 %v2051_v39, %v2002_v59  ;;  %v3974_v59 = vor.u32 %v4264_v13, %v3973_v20  ;;  %v4280_v39 = vld [vmem:[%s7483_s7 + $0xd4] sm:$0xf0] }
 0x361   :  { %v6373_v15 = vpop.f32.mrf.mxu0  ;;  %v6375_v47 = vpop.f32.mrf.mxu1  ;;  %2667 = vmatpush.bf16.msra.mxu2 %v3974_v59 }
 0x362   :  { %v6547_v13 = vadd.f32 %v6375_v47, %v6373_v15  ;;  %v2236_v15 = vmul.f32 %v6369_v48, %v6369_v48 }
 0x364   :  { %v2212_v47 = vadd.f32 %v6547_v13, %v6369_v48 }
 0x365   :  { %2668 = vmatpush.bf16.msra.mxu2 %v3966_v27 }
 0x366   :  { %v6377_v38 = vpop.f32.mrf.mxu2  ;;  %v6379_v57 = vpop.f32.mrf.mxu3 }
 0x367   :  { %v6561_v18 = vadd.f32 %v6379_v57, %v6377_v38 }
 0x369   :  { %v2105_v23 = vpop.f32.mrf.mxu0  ;;  %v2154_v33 = vpop.f32.mrf.mxu1 }
 0x36a   :  { %v6381_v19 = vadd.f32 %v2154_v33, %v2105_v23  ;;  %v4038_v23 = vor.u32 %v4280_v39, %v4037_v26  ;;  %v2238_v26 = vmul.f32 %v6547_v13, %v6547_v13 }
 0x36c   :  { %2716 = vmatpush.bf16.msra.mxu3 %v4038_v23  ;;  %v2240_v37 = vmul.f32 %v6381_v19, %v6381_v19  ;;  %v2213_v28 = vadd.f32 %v2212_v47, %v6381_v19 }
 0x36e   :  { %v2007_v0 = vpop.f32.mrf.mxu2  ;;  %v2056_v36 = vpop.f32.mrf.mxu3 }
 0x36f   :  { %v6383_v3 = vadd.f32 %v2056_v36, %v2007_v0 }
 0x370   :  { %2717 = vmatpush.bf16.msra.mxu3 %v4030_v56 }
 0x371   :  { %v6385_v29 = vpop.f32.mrf.mxu0  ;;  %v6387_v55 = vpop.f32.mrf.mxu1 }
 0x372   :  { %v6553_v59 = vadd.f32 %v6387_v55, %v6385_v29  ;;  %v2288_v55 = vadd.f32 %v2238_v26, %v2236_v15 }
 0x374   :  { %v2242_v38 = vmul.f32 %v6553_v59, %v6553_v59  ;;  %v2289_v34 = vadd.f32 %v2288_v55, %v2240_v37  ;;  %v2214_v50 = vadd.f32 %v2213_v28, %v6553_v59 }
 0x376   :  { %v6389_v60 = vpop.f32.mrf.mxu2  ;;  %v6391_v12 = vpop.f32.mrf.mxu3 }
 0x379   :  { %v2110_v35 = vpop.f32.mrf.mxu0  ;;  %v2159_v22 = vpop.f32.mrf.mxu1 }
 0x37a   :  { %v6405_v30 = vadd.f32 %v2159_v22, %v2110_v35  ;;  %v4042_v35 = vor.u32 %v4279_v1, %v4039_v25  ;;  %v2237_v25 = vmul.f32 %v6561_v18, %v6561_v18 }
 0x37c   :  { %2814 = vmatpush.bf16.msrb.mxu1 %v4042_v35  ;;  %v6584_v35 = vadd.f32 %v6391_v12, %v6389_v60  ;;  %v2244_v7 = vmul.f32 %v6405_v30, %v6405_v30  ;;  %v2239_v60 = vmul.f32 %v6383_v3, %v6383_v3  ;;  %v2290_v12 = vadd.f32 %v2289_v34, %v2242_v38 }
 0x37d   :  { %v2215_v61 = vadd.f32 %v2214_v50, %v6405_v30 }
 0x37e   :  { %v2012_v58 = vpop.f32.mrf.mxu2  ;;  %v2061_v9 = vpop.f32.mrf.mxu3  ;;  %v2241_v32 = vmul.f32 %v6584_v35, %v6584_v35 }
 0x37f   :  { %v6416_v43 = vadd.f32 %v2061_v9, %v2012_v58 }
 0x380   :  { %2815 = vmatpush.bf16.msrb.mxu1 %v4034_v46  ;;  %v2291_v46 = vadd.f32 %v2290_v12, %v2244_v7 }
 0x381   :  { %v6421_v2 = vpop.f32.mrf.mxu0  ;;  %v6423_v52 = vpop.f32.mrf.mxu1  ;;  %v2243_v37 = vmul.f32 %v6416_v43, %v6416_v43 }
 0x382   :  { %v6578_v57 = vadd.f32 %v6423_v52, %v6421_v2  ;;  %v2235_v2 = vmul.f32 %v6371_v54, %v6371_v54  ;;  %v2191_v52 = vadd.f32 %v6561_v18, %v6371_v54 }
 0x384   :  { %v2246_v56 = vmul.f32 %v6578_v57, %v6578_v57  ;;  %v2267_v53 = vadd.f32 %v2237_v25, %v2235_v2  ;;  %v2192_v4 = vadd.f32 %v2191_v52, %v6383_v3  ;;  %v2216_v26 = vadd.f32 %v2215_v61, %v6578_v57 }
 0x386   :  { %v6425_v16 = vpop.f32.mrf.mxu2  ;;  %v6427_v40 = vpop.f32.mrf.mxu3  ;;  %v2268_v15 = vadd.f32 %v2267_v53, %v2239_v60  ;;  %v2193_v47 = vadd.f32 %v2192_v4, %v6584_v35  ;;  %v2292_v28 = vadd.f32 %v2291_v46, %v2246_v56 }
 0x387   :  { %v6615_v51 = vadd.f32 %v6427_v40, %v6425_v16 }
 0x388   :  { %v2194_v34 = vadd.f32 %v2193_v47, %v6416_v43 }
 0x389   :  { %v6441_v24 = vpop.f32.mrf.mxu0  ;;  %v6443_v31 = vpop.f32.mrf.mxu1  ;;  %v2245_v50 = vmul.f32 %v6615_v51, %v6615_v51 }
 0x38a   :  { %v6591_v27 = vadd.f32 %v6443_v31, %v6441_v24  ;;  %v2195_v52 = vadd.f32 %v2194_v34, %v6615_v51 }
 0x38c   :  { %v2217_v38 = vadd.f32 %v2216_v26, %v6591_v27 }
 0x38e   :  { %v6445_v42 = vpop.f32.mrf.mxu2  ;;  %v6447_v14 = vpop.f32.mrf.mxu3 }
 0x38f   :  { %v6629_v16 = vadd.f32 %v6447_v14, %v6445_v42 }
 0x391   :  { %v6461_v63 = vpop.f32.mrf.mxu0  ;;  %v6463_v6 = vpop.f32.mrf.mxu1  ;;  %v2247_v60 = vmul.f32 %v6629_v16, %v6629_v16  ;;  %v2196_v4 = vadd.f32 %v2195_v52, %v6629_v16 }
 0x392   :  { %v6604_v11 = vadd.f32 %v6463_v6, %v6461_v63  ;;  %v2248_v63 = vmul.f32 %v6591_v27, %v6591_v27 }
 0x394   :  { %v2250_v25 = vmul.f32 %v6604_v11, %v6604_v11  ;;  %v2293_v14 = vadd.f32 %v2292_v28, %v2248_v63  ;;  %v2218_v7 = vadd.f32 %v2217_v38, %v6604_v11 }
 0x396   :  { %v6465_v17 = vpop.f32.mrf.mxu2  ;;  %v6467_v44 = vpop.f32.mrf.mxu3 }
 0x397   :  { %v6643_v42 = vadd.f32 %v6467_v44, %v6465_v17  ;;  %v2294_v44 = vadd.f32 %v2293_v14, %v2250_v25 }
 0x399   :  { %v6481_v33 = vpop.f32.mrf.mxu0  ;;  %v6483_v0 = vpop.f32.mrf.mxu1  ;;  %v2197_v63 = vadd.f32 %v2196_v4, %v6643_v42 }
 0x39a   :  { %v6622_v6 = vadd.f32 %v6483_v0, %v6481_v33  ;;  %v2269_v0 = vadd.f32 %v2268_v15, %v2241_v32  ;;  %v2249_v32 = vmul.f32 %v6643_v42, %v6643_v42 }
 0x39c   :  { %v2252_v2 = vmul.f32 %v6622_v6, %v6622_v6  ;;  %v2219_v12 = vadd.f32 %v2218_v7, %v6622_v6 }
 0x39e   :  { %v6485_v36 = vpop.f32.mrf.mxu2  ;;  %v6487_v21 = vpop.f32.mrf.mxu3 }
 0x39f   :  { %v6657_v17 = vadd.f32 %v6487_v21, %v6485_v36  ;;  %v2295_v21 = vadd.f32 %v2294_v44, %v2252_v2 }
 0x3a1   :  { %v6501_v22 = vpop.f32.mrf.mxu0  ;;  %v6503_v58 = vpop.f32.mrf.mxu1  ;;  %v2251_v15 = vmul.f32 %v6657_v17, %v6657_v17  ;;  %v2198_v25 = vadd.f32 %v2197_v63, %v6657_v17 }
 0x3a2   :  { %v6636_v33 = vadd.f32 %v6503_v58, %v6501_v22  ;;  %v2270_v58 = vadd.f32 %v2269_v0, %v2243_v37 }
 0x3a4   :  { %v2254_v61 = vmul.f32 %v6636_v33, %v6636_v33  ;;  %v2271_v53 = vadd.f32 %v2270_v58, %v2245_v50  ;;  %v2220_v46 = vadd.f32 %v2219_v12, %v6636_v33 }
 0x3a6   :  { %v6505_v9 = vpop.f32.mrf.mxu2  ;;  %v6507_v41 = vpop.f32.mrf.mxu3  ;;  %v2296_v37 = vadd.f32 %v2295_v21, %v2254_v61 }
 0x3a7   :  { %v6671_v36 = vadd.f32 %v6507_v41, %v6505_v9 }
 0x3a9   :  { %v6521_v5 = vpop.f32.mrf.mxu0  ;;  %v6523_v62 = vpop.f32.mrf.mxu1  ;;  %v2253_v0 = vmul.f32 %v6671_v36, %v6671_v36 }
 0x3aa   :  { %v6650_v22 = vadd.f32 %v6523_v62, %v6521_v5 }
 0x3ac   :  { %v2256_v26 = vmul.f32 %v6650_v22, %v6650_v22  ;;  %v2221_v28 = vadd.f32 %v2220_v46, %v6650_v22 }
 0x3ae   :  { %v6525_v49 = vpop.f32.mrf.mxu2  ;;  %v6527_v45 = vpop.f32.mrf.mxu3 }
 0x3af   :  { %v6685_v9 = vadd.f32 %v6527_v45, %v6525_v49  ;;  %v2297_v45 = vadd.f32 %v2296_v37, %v2256_v26 }
 0x3b1   :  { %v6541_v10 = vpop.f32.mrf.mxu0  ;;  %v6543_v20 = vpop.f32.mrf.mxu1  ;;  %v2255_v7 = vmul.f32 %v6685_v9, %v6685_v9 }
 0x3b2   :  { %v6664_v5 = vadd.f32 %v6543_v20, %v6541_v10  ;;  %v2272_v20 = vadd.f32 %v2271_v53, %v2247_v60 }
 0x3b4   :  { %v2258_v38 = vmul.f32 %v6664_v5, %v6664_v5  ;;  %v2222_v34 = vadd.f32 %v2221_v28, %v6664_v5 }
 0x3b6   :  { %v6555_v39 = vpop.f32.mrf.mxu2  ;;  %v6557_v23 = vpop.f32.mrf.mxu3 }
 0x3b7   :  { %v6697_v49 = vadd.f32 %v6557_v23, %v6555_v39  ;;  %v2298_v39 = vadd.f32 %v2297_v45, %v2258_v38 }
 0x3b9   :  { %v6569_v1 = vpop.f32.mrf.mxu0  ;;  %v6571_v29 = vpop.f32.mrf.mxu1  ;;  %v2257_v61 = vmul.f32 %v6697_v49, %v6697_v49 }
 0x3ba   :  { %v6678_v10 = vadd.f32 %v6571_v29, %v6569_v1  ;;  %v2273_v29 = vadd.f32 %v2272_v20, %v2249_v32 }
 0x3bc   :  { %v2260_v50 = vmul.f32 %v6678_v10, %v6678_v10  ;;  %v2223_v23 = vadd.f32 %v2222_v34, %v6678_v10 }
 0x3be   :  { %v6606_v24 = vpop.f32.mrf.mxu2  ;;  %v6608_v31 = vpop.f32.mrf.mxu3  ;;  %v2299_v4 = vadd.f32 %v2298_v39, %v2260_v50 }
 0x3bf   :  { %v6709_v2 = vadd.f32 %v6608_v31, %v6606_v24 }
 0x3c1   :  { %v2132_v40 = vpop.f32.mrf.mxu0  ;;  %v2181_v55 = vpop.f32.mrf.mxu1  ;;  %v2259_v46 = vmul.f32 %v6709_v2, %v6709_v2 }
 0x3c2   :  { %v6690_v1 = vadd.f32 %v2181_v55, %v2132_v40  ;;  %v2274_v40 = vadd.f32 %v2273_v29, %v2251_v15  ;;  %v2199_v55 = vadd.f32 %v2198_v25, %v6671_v36 }
 0x3c4   :  { %v2262_v58 = vmul.f32 %v6690_v1, %v6690_v1  ;;  %v2275_v44 = vadd.f32 %v2274_v40, %v2253_v0  ;;  %v2200_v12 = vadd.f32 %v2199_v55, %v6685_v9  ;;  %v2224_v24 = vadd.f32 %v2223_v23, %v6690_v1 }
 0x3c6   :  { %v2034_v62 = vpop.f32.mrf.mxu2  ;;  %v2083_v56 = vpop.f32.mrf.mxu3  ;;  %v2276_v32 = vadd.f32 %v2275_v44, %v2255_v7  ;;  %v2201_v21 = vadd.f32 %v2200_v12, %v6697_v49  ;;  %v2300_v15 = vadd.f32 %v2299_v4, %v2262_v58 }
 0x3c7   :  { %v6717_v53 = vadd.f32 %v2083_v56, %v2034_v62 }
 0x3c9   :  { %v2135_v41 = vpop.f32.mrf.mxu0  ;;  %v2184_v47 = vpop.f32.mrf.mxu1  ;;  %v2261_v37 = vmul.f32 %v6717_v53, %v6717_v53 }
 0x3ca   :  { %v6702_v14 = vadd.f32 %v2184_v47, %v2135_v41  ;;  %v2277_v41 = vadd.f32 %v2276_v32, %v2257_v61  ;;  %v2202_v47 = vadd.f32 %v2201_v21, %v6709_v2 }
 0x3cc   :  { %v2264_v31 = vmul.f32 %v6702_v14, %v6702_v14  ;;  %v2225_v62 = vadd.f32 %v2224_v24, %v6702_v14  ;;  %v2278_v25 = vadd.f32 %v2277_v41, %v2259_v46  ;;  %v2203_v0 = vadd.f32 %v2202_v47, %v6717_v53  ;;  %v3957_v46 = vld [vmem:[%s7483_s7 + $0x30] sm:$0xf] }
 0x3ce   :  { %v2037_v52 = vpop.f32.mrf.mxu2  ;;  %v2086_v60 = vpop.f32.mrf.mxu3  ;;  %v2301_v28 = vadd.f32 %v2300_v15, %v2264_v31  ;;  %v2279_v7 = vadd.f32 %v2278_v25, %v2261_v37  ;;  %v4021_v15 = vld [vmem:[%s7483_s7 + $0xb0] sm:$0xf] }
 0x3cf   :  { %v6725_v26 = vadd.f32 %v2086_v60, %v2037_v52 }
 0x3d1   :  { %v2137_v20 = vpop.f32.mrf.mxu0  ;;  %v2186_v63 = vpop.f32.mrf.mxu1  ;;  %v2263_v45 = vmul.f32 %v6725_v26, %v6725_v26  ;;  %v2204_v39 = vadd.f32 %v2203_v0, %v6725_v26 }
 0x3d2   :  { %v6728_v56 = vadd.f32 %v2186_v63, %v2137_v20  ;;  %v4260_v20 = vld [vmem:[%s7483_s7 + $0x34] sm:$0xf0] }
 0x3d3   :  { %v2280_v60 = vadd.f32 %v2279_v7, %v2263_v45  ;;  %v3958_v63 = vor.u32 %v4260_v20, %v3957_v46  ;;  %v4259_v20 = vld [vmem:[%s7483_s7 + $0x34] sm:$0xf] }
 0x3d4   :  { %v2226_v38 = vadd.f32 %v2225_v62, %v6728_v56  ;;  %v2266_v29 = vmul.f32 %v6728_v56, %v6728_v56  ;;  %v4276_v62 = vld [vmem:[%s7483_s7 + $0xb4] sm:$0xf0] }
 0x3d5   :  { %2669 = vmatpush.bf16.msra.mxu2 %v3958_v63  ;;  %v3959_v63 = vld [vmem:[%s7483_s7 + $0x38] sm:$0xf0] }
 0x3d6   :  { %v2227_v34 = vrot.slane %v2226_v38, 4  ;;  %v2302_v50 = vadd.f32 %v2301_v28, %v2266_v29  ;;  %v2039_v40 = vpop.f32.mrf.mxu2  ;;  %v2088_v55 = vpop.f32.mrf.mxu3  ;;  %v4022_v28 = vor.u32 %v4276_v62, %v4021_v15  ;;  %v3962_v15 = vor.u32 %v4259_v20, %v3959_v63  ;;  %v4275_v62 = vld [vmem:[%s7483_s7 + $0xb4] sm:$0xf]  ;;  %v3943_v63 = vld [vmem:[%s7483_s7 + $0x18] sm:$0xf0] }
 0x3d7   :  { %v6740_v23 = vadd.f32 %v2088_v55, %v2039_v40  ;;  %v4255_v20 = vld [vmem:[%s7483_s7 + $0x14] sm:$0xf] }
 0x3d8   :  { %v2228_v58 = vadd.f32 %v2227_v34, %v2226_v38  ;;  %v2303_v52 = vrot.slane %v2302_v50, 4  ;;  %2718 = vmatpush.bf16.msra.mxu3 %v4022_v28  ;;  %2767 = vmatpush.bf16.msrb.mxu0 %v3962_v15  ;;  %v4271_v15 = vld [vmem:[%s7483_s7 + $0x94] sm:$0xf] }
 0x3d9   :  { %v2205_v44 = vadd.f32 %v2204_v39, %v6740_v23  ;;  %v2265_v12 = vmul.f32 %v6740_v23, %v6740_v23 }
 0x3da   :  { %v2229_v61 = vrot.slane %v2228_v58, 2  ;;  %v2304_v4 = vadd.f32 %v2303_v52, %v2302_v50 }
 0x3db   :  { %v2206_v24 = vrot.slane %v2205_v44, 4  ;;  %v2281_v31 = vadd.f32 %v2280_v60, %v2265_v12 }
 0x3dc   :  { %v2230_v32 = vadd.f32 %v2229_v61, %v2228_v58  ;;  %v2305_v21 = vrot.slane %v2304_v4, 2 }
 0x3dd   :  { %v2207_v41 = vadd.f32 %v2206_v24, %v2205_v44  ;;  %v2282_v38 = vrot.slane %v2281_v31, 4 }
 0x3de   :  { %v2231_v47 = vrot.slane %v2230_v32, 1  ;;  %v2306_v37 = vadd.f32 %v2305_v21, %v2304_v4 }
 0x3df   :  { %v2208_v29 = vrot.slane %v2207_v41, 2  ;;  %v2283_v45 = vadd.f32 %v2282_v38, %v2281_v31  ;;  %v4258_v38 = vld [vmem:[%s7483_s7 + $0x24] sm:$0xf0] }
 0x3e0   :  { %v2232_v25 = vadd.f32 %v2231_v47, %v2230_v32  ;;  %v2307_v0 = vrot.slane %v2306_v37, 1  ;;  %v3949_v47 = vld [vmem:[%s7483_s7 + $0x20] sm:$0xf] }
 0x3e1   :  { %v2209_v34 = vadd.f32 %v2208_v29, %v2207_v41  ;;  %v2284_v55 = vrot.slane %v2283_v45, 2  ;;  %v4023_v41 = vld [vmem:[%s7483_s7 + $0xb8] sm:$0xf0]  ;;  %v4013_v29 = vld [vmem:[%s7483_s7 + $0xa0] sm:$0xf] }
 0x3e2   :  { %v6758_v50 = vmul.f32 %v2232_v25, %v6095_v8  ;;  %v2308_v40 = vadd.f32 %v2307_v0, %v2306_v37  ;;  %v4026_v28 = vor.u32 %v4275_v62, %v4023_v41  ;;  %v4274_v25 = vld [vmem:[%s7483_s7 + $0xa4] sm:$0xf0]  ;;  %v3946_v41 = vor.u32 %v4255_v20, %v3943_v63 }
 0x3e3   :  { %v2210_v7 = vrot.slane %v2209_v34, 1  ;;  %v2285_v52 = vadd.f32 %v2284_v55, %v2283_v45  ;;  %v3950_v45 = vor.u32 %v4258_v38, %v3949_v47  ;;  %v3951_v55 = vld [vmem:[%s7483_s7 + $0x28] sm:$0xf0]  ;;  %v4007_v47 = vld [vmem:[%s7483_s7 + $0x98] sm:$0xf0] }
 0x3e4   :  { %v2310_v39 = vmul.f32 %v2308_v40, %v6095_v8  ;;  %v2312_v58 = vmul.f32 %v6758_v50, %v6758_v50  ;;  %v4257_v40 = vld [vmem:[%s7483_s7 + $0x24] sm:$0xf]  ;;  %2816 = vmatpush.bf16.msrb.mxu1 %v4026_v28  ;;  %v3933_v28 = vld [vmem:[%s7483_s7] sm:$0xf] }
 0x3e5   :  { %v2211_v60 = vadd.f32 %v2210_v7, %v2209_v34  ;;  %v2286_v12 = vrot.slane %v2285_v52, 1  ;;  %v4014_v34 = vor.u32 %v4274_v25, %v4013_v29  ;;  %v4273_v7 = vld [vmem:[%s7483_s7 + $0xa4] sm:$0xf]  ;;  %2670 = vmatpush.bf16.msra.mxu2 %v3950_v45  ;;  %v4010_v29 = vor.u32 %v4271_v15, %v4007_v47  ;;  %v4254_v25 = vld [vmem:[%s7483_s7 + $0x4] sm:$0xf0] }
 0x3e6   :  { %v2314_v44 = vsub.f32 %v2310_v39, %v2312_v58  ;;  %v3954_v39 = vor.u32 %v4257_v40, %v3951_v55  ;;  %v4015_v58 = vld [vmem:[%s7483_s7 + $0xa8] sm:$0xf0]  ;;  %v4270_v45 = vld [vmem:[%s7483_s7 + $0x84] sm:$0xf0]  ;;  %v3934_v55 = vor.u32 %v4254_v25, %v3933_v28  ;;  %v2190_v25 = vld [vmem:[%s7485_s6] sm:$0x3] }
 0x3e7   :  { %v6764_v61 = vmul.f32 %v2211_v60, %v6095_v8  ;;  %v2287_v24 = vadd.f32 %v2286_v12, %v2285_v52  ;;  %v3941_v52 = vld [vmem:[%s7483_s7 + $0x10] sm:$0xf]  ;;  %2719 = vmatpush.bf16.msra.mxu3 %v4014_v34  ;;  %v4256_v12 = vld [vmem:[%s7483_s7 + $0x14] sm:$0xf0] }
 0x3e8   :  { %v6766_v4 = vadd.f32 1e-05, %v2314_v44  ;;  %v4018_v44 = vor.u32 %v4273_v7, %v4015_v58  ;;  %2768 = vmatpush.bf16.msrb.mxu0 %v3954_v39  ;;  %v4253_v7 = vld [vmem:[%s7483_s7 + $0x4] sm:$0xf]  ;;  %v3935_v39 = vld [vmem:[%s7483_s7 + $0x8] sm:$0xf0] }
 0x3e9   :  { %v2311_v31 = vmul.f32 %v6764_v61, %v6764_v61  ;;  %v2309_v32 = vmul.f32 %v2287_v24, %v6095_v8  ;;  %v4005_v24 = vld [vmem:[%s7483_s7 + $0x90] sm:$0xf] }
 0x3ea   :  { %4309 = vrsqrt.f32 %v6766_v4  ;;  %2817 = vmatpush.bf16.msrb.mxu1 %v4018_v44  ;;  %vm2333_vm10 = vweird.f32 %v6766_v4 }
 0x3eb   :  { %v2313_v21 = vsub.f32 %v2309_v32, %v2311_v31  ;;  %v4272_v31 = vld [vmem:[%s7483_s7 + $0x94] sm:$0xf0]  ;;  %v3942_v32 = vor.u32 %v4256_v12, %v3941_v52  ;;  %v4269_v52 = vld [vmem:[%s7483_s7 + $0x84] sm:$0xf] }
 0x3ec   :  { %2769 = vmatpush.bf16.msrb.mxu0 %v3946_v41 }
 0x3ed   :  { %v6772_v46 = vadd.f32 1e-05, %v2313_v21  ;;  %v4006_v21 = vor.u32 %v4272_v31, %v4005_v24  ;;  %2671 = vmatpush.bf16.msra.mxu2 %v3942_v32  ;;  %v3938_v24 = vor.u32 %v4253_v7, %v3935_v39 }
 0x3ee   :  { %2818 = vmatpush.bf16.msrb.mxu1 %v4010_v29 }
 0x3ef   :  { %4311 = vrsqrt.f32 %v6772_v46  ;;  %2720 = vmatpush.bf16.msra.mxu3 %v4006_v21  ;;  %vm2323_vm13 = vweird.f32 %v6772_v46 }
 0x3f0   :  { %v6789_v37 = vpop.eup %4309  ;;  %2770 = vmatpush.bf16.msrb.mxu0 %v3938_v24 }
 0x3f1   :  { %v2328_v0 = vmul.f32 %v6789_v37, %v6766_v4  ;;  %vm2334_vm9 = vweird.f32 %v6789_v37  ;;  %2672 = vmatpush.bf16.msra.mxu2 %v3934_v55 }
 0x3f2   :  { %vm2335_vm11 = vmor %vm2333_vm10, %vm2334_vm9 }
 0x3f3   :  { %v2329_v60 = vmul.f32 %v6789_v37, %v2328_v0  ;;  %v3997_v0 = vld [vmem:[%s7483_s7 + $0x80] sm:$0xf] }
 0x3f4   :  { %v3998_v58 = vor.u32 %v4270_v45, %v3997_v0 }
 0x3f5   :  { %v2330_v62 = vmul.f32 0.5, %v2329_v60  ;;  %v4312_v38 = vpop.eup %4311  ;;  %v3999_v60 = vld [vmem:[%s7483_s7 + $0x88] sm:$0xf0] }
 0x3f6   :  { %v2318_v40 = vmul.f32 %v4312_v38, %v6772_v46  ;;  %v4002_v31 = vor.u32 %v4269_v52, %v3999_v60  ;;  %2721 = vmatpush.bf16.msra.mxu3 %v3998_v58  ;;  %vm2324_vm12 = vweird.f32 %v4312_v38 }
 0x3f7   :  { %v2331_v34 = vsub.f32 1.5, %v2330_v62  ;;  %v2189_v62 = vld [vmem:[%s7484_s5] sm:$0x3]  ;;  %vm2325_vm14 = vmor %vm2323_vm13, %vm2324_vm12 }
 0x3f8   :  { %v2319_v12 = vmul.f32 %v4312_v38, %v2318_v40  ;;  %2819 = vmatpush.bf16.msrb.mxu1 %v4002_v31 }
 0x3f9   :  { %v2332_v44 = vmul.f32 %v6789_v37, %v2331_v34 }
 0x3fa   :  { %v2320_v32 = vmul.f32 0.5, %v2319_v12 }
 0x3fb   :  { %v2336_v21 = vsel %vm2335_vm11, %v6789_v37, %v2332_v44 }
 0x3fc   :  { %v2321_v20 = vsub.f32 1.5, %v2320_v32  ;;  %v2339_v15 = vrot.slane %v2336_v21, 7 }
 0x3fe   :  { %v2322_v63 = vmul.f32 %v4312_v38, %v2321_v20 }
 0x400   :  { %v2326_v4 = vsel %vm2325_vm14, %v4312_v38, %v2322_v63 }
 0x401   :  { %v2340_v41 = vsel %vm1667_vm7, %v2326_v4, %v2339_v15 }
 0x402   :  { %v2342_v47 = vmul.f32 %v2340_v41, %v2189_v62 }
 0x404   :  { %v6874_v28 = vperm.slane %v2342_v47, 0  ;;  %v6876_v37 = vperm.slane %v2342_v47, 1 }
 0x406   :  { %v2349_v29 = vmul.f32 %v6876_v37, %v6758_v50  ;;  %v6882_v46 = vmul.f32 %v6874_v28, %v6740_v23  ;;  %v2348_v38 = vmul.f32 %v6874_v28, %v6764_v61  ;;  %v2356_v40 = vmul.f32 %v6874_v28, %v6371_v54 }
 0x407   :  { %v2358_v50 = vmul.f32 %v6874_v28, %v6561_v18  ;;  %v2357_v7 = vmul.f32 %v6876_v37, %v6369_v48  ;;  %v2359_v61 = vmul.f32 %v6876_v37, %v6547_v13  ;;  %v2360_v24 = vmul.f32 %v6874_v28, %v6383_v3 }
 0x408   :  { %v2352_v0 = vrot.slane %v2349_v29, 7  ;;  %v2362_v48 = vmul.f32 %v6874_v28, %v6584_v35  ;;  %v2361_v13 = vmul.f32 %v6876_v37, %v6381_v19  ;;  %v2363_v31 = vmul.f32 %v6876_v37, %v6553_v59 }
 0x409   :  { %v2372_v20 = vmul.f32 %v6874_v28, %v6657_v17  ;;  %v2374_v63 = vmul.f32 %v6874_v28, %v6671_v36  ;;  %v2373_v35 = vmul.f32 %v6876_v37, %v6622_v6  ;;  %v2375_v19 = vmul.f32 %v6876_v37, %v6636_v33 }
 0x40a   :  { %v2353_v45 = vsel %vm1667_vm7, %v2348_v38, %v2352_v0  ;;  %v2376_v17 = vmul.f32 %v6874_v28, %v6685_v9  ;;  %v2378_v36 = vmul.f32 %v6874_v28, %v6697_v49  ;;  %v2377_v6 = vmul.f32 %v6876_v37, %v6650_v22 }
 0x40b   :  { %v2355_v34 = vsub.f32 %v2190_v25, %v2353_v45  ;;  %v2379_v33 = vmul.f32 %v6876_v37, %v6664_v5  ;;  %v2380_v41 = vmul.f32 %v6874_v28, %v6709_v2  ;;  %v2382_v9 = vmul.f32 %v6874_v28, %v6717_v53 }
 0x40c   :  { %v2381_v49 = vmul.f32 %v6876_v37, %v6678_v10  ;;  %v2383_v22 = vmul.f32 %v6876_v37, %v6690_v1 }
 0x40d   :  { %v6894_v55 = vperm.slane %v2355_v34, 0  ;;  %v6896_v23 = vperm.slane %v2355_v34, 1 }
 0x40f   :  { %v2393_v39 = vadd.f32 %v6894_v55, %v2356_v40  ;;  %v2395_v58 = vadd.f32 %v6894_v55, %v2358_v50  ;;  %v2394_v52 = vadd.f32 %v6896_v23, %v2357_v7  ;;  %v2396_v54 = vadd.f32 %v6896_v23, %v2359_v61 }
 0x410   :  { %v2397_v15 = vadd.f32 %v6894_v55, %v2360_v24  ;;  %v2399_v3 = vadd.f32 %v6894_v55, %v2362_v48  ;;  %v2398_v59 = vadd.f32 %v6896_v23, %v2361_v13  ;;  %v2400_v62 = vadd.f32 %v6896_v23, %v2363_v31 }
 0x411   :  { %v2425_v60 = vmax.f32 %v2393_v39, 0.0  ;;  %v2427_v18 = vmax.f32 %v2395_v58, 0.0  ;;  %v2426_v44 = vmax.f32 %v2394_v52, 0.0  ;;  %v2428_v12 = vmax.f32 %v2396_v54, 0.0 }
 0x412   :  { %v2409_v4 = vadd.f32 %v6894_v55, %v2372_v20  ;;  %v2429_v47 = vmax.f32 %v2397_v15, 0.0  ;;  %v2431_v29 = vmax.f32 %v2399_v3, 0.0  ;;  %v2411_v25 = vadd.f32 %v6894_v55, %v2374_v63 }
 0x413   :  { %v2457_v32 = vpack.c.bf16 %v2427_v18, %v2425_v60  ;;  %v2458_v21 = vpack.c.bf16 %v2428_v12, %v2426_v44  ;;  %v2430_v38 = vmax.f32 %v2398_v59, 0.0  ;;  %v2410_v0 = vadd.f32 %v6896_v23, %v2373_v35 }
 0x414   :  { %v2441_v5 = vmax.f32 %v2409_v4, 0.0  ;;  %v2412_v45 = vadd.f32 %v6896_v23, %v2375_v19  ;;  %v2432_v2 = vmax.f32 %v2400_v62, 0.0  ;;  %v2443_v34 = vmax.f32 %v2411_v25, 0.0 }
 0x415   :  { %2673 = vmatmul.bf16.vlgmr.msra.gmra.mxu2 %v2457_v32  ;;  %2722 = vmatmul.bf16.vlgmr.msra.gmra.mxu3 %v2458_v21  ;;  %v2413_v53 = vadd.f32 %v6894_v55, %v2376_v17  ;;  %v2415_v40 = vadd.f32 %v6894_v55, %v2378_v36  ;;  %v2442_v10 = vmax.f32 %v2410_v0, 0.0  ;;  %v2414_v7 = vadd.f32 %v6896_v23, %v2377_v6 }
 0x416   :  { %2771 = vmatmul.bf16.vlgmr.msrb.gmra.mxu0 %v2457_v32  ;;  %2820 = vmatmul.bf16.vlgmr.msrb.gmra.mxu1 %v2458_v21  ;;  %v2444_v50 = vmax.f32 %v2412_v45, 0.0  ;;  %v2416_v61 = vadd.f32 %v6896_v23, %v2379_v33  ;;  %v6950_v39 = vpack.c.bf16 %v2443_v34, %v2441_v5  ;;  %v2417_v52 = vadd.f32 %v6894_v55, %v2380_v41 }
 0x417   :  { %v2445_v1 = vmax.f32 %v2413_v53, 0.0  ;;  %v2447_v58 = vmax.f32 %v2415_v40, 0.0  ;;  %v2446_v60 = vmax.f32 %v2414_v7, 0.0  ;;  %v2419_v44 = vadd.f32 %v6894_v55, %v2382_v9 }
 0x418   :  { %v6953_v54 = vpack.c.bf16 %v2444_v50, %v2442_v10  ;;  %v2448_v18 = vmax.f32 %v2416_v61, 0.0  ;;  %v2449_v24 = vmax.f32 %v2417_v52, 0.0  ;;  %v2418_v48 = vadd.f32 %v6896_v23, %v2381_v49 }
 0x419   :  { %v6956_v12 = vpack.c.bf16 %v2447_v58, %v2445_v1  ;;  %v2420_v13 = vadd.f32 %v6896_v23, %v2383_v22  ;;  %v2451_v32 = vmax.f32 %v2419_v44, 0.0  ;;  %v2384_v21 = vmul.f32 %v6874_v28, %v6725_v26 }
 0x41a   :  { %v6960_v31 = vpack.c.bf16 %v2448_v18, %v2446_v60  ;;  %v2423_v20 = vadd.f32 %v6894_v55, %v6882_v46  ;;  %v2450_v63 = vmax.f32 %v2418_v48, 0.0  ;;  %v2385_v3 = vmul.f32 %v6876_v37, %v6702_v14 }
 0x41b   :  { %v2452_v15 = vmax.f32 %v2420_v13, 0.0  ;;  %v2387_v35 = vmul.f32 %v6876_v37, %v6728_v56  ;;  %v2469_v19 = vpack.c.bf16 %v2451_v32, %v2449_v24  ;;  %v2421_v59 = vadd.f32 %v6894_v55, %v2384_v21 }
 0x41c   :  { %v2455_v17 = vmax.f32 %v2423_v20, 0.0  ;;  %v2422_v62 = vadd.f32 %v6896_v23, %v2385_v3  ;;  %v2459_v6 = vpack.c.bf16 %v2431_v29, %v2429_v47  ;;  %v2460_v33 = vpack.c.bf16 %v2432_v2, %v2430_v38 }
 0x41d   :  { %v2470_v36 = vpack.c.bf16 %v2452_v15, %v2450_v63  ;;  %v2424_v26 = vadd.f32 %v6896_v23, %v2387_v35  ;;  %v2453_v46 = vmax.f32 %v2421_v59, 0.0  ;;  %v2364_v9 = vmul.f32 %v6874_v28, %v6416_v43 }
 0x41e   :  { %v2454_v4 = vmax.f32 %v2422_v62, 0.0  ;;  %v2366_v49 = vmul.f32 %v6874_v28, %v6615_v51  ;;  %v2365_v25 = vmul.f32 %v6876_v37, %v6405_v30  ;;  %v2367_v47 = vmul.f32 %v6876_v37, %v6578_v57  ;;  %v4300_v62 = vld [vmem:[%s7486_s10 + $0x78] sm:$0xff] }
 0x41f   :  { %v2456_v41 = vmax.f32 %v2424_v26, 0.0  ;;  %v2471_v14 = vpack.c.bf16 %v2455_v17, %v2453_v46  ;;  %v2401_v29 = vadd.f32 %v6894_v55, %v2364_v9  ;;  %v2368_v30 = vmul.f32 %v6874_v28, %v6629_v16  ;;  %3326 = vmatpush.bf16.msrb.mxu3 %v4300_v62 }
 0x420   :  { %v2403_v22 = vadd.f32 %v6894_v55, %v2366_v49  ;;  %v2402_v38 = vadd.f32 %v6896_v23, %v2365_v25  ;;  %v2404_v5 = vadd.f32 %v6896_v23, %v2367_v47  ;;  %v2370_v57 = vmul.f32 %v6874_v28, %v6643_v42  ;;  %v4299_v25 = vld [vmem:[%s7486_s10 + $0x70] sm:$0xff] }
 0x421   :  { %v2472_v56 = vpack.c.bf16 %v2456_v41, %v2454_v4  ;;  %v2433_v0 = vmax.f32 %v2401_v29, 0.0  ;;  %v2369_v53 = vmul.f32 %v6876_v37, %v6591_v27  ;;  %v2371_v40 = vmul.f32 %v6876_v37, %v6604_v11 }
 0x422   :  { %v2435_v45 = vmax.f32 %v2403_v22, 0.0  ;;  %v2434_v43 = vmax.f32 %v2402_v38, 0.0  ;;  %v2436_v2 = vmax.f32 %v2404_v5, 0.0  ;;  %v2405_v10 = vadd.f32 %v6894_v55, %v2368_v30 }
 0x423   :  { %v2407_v50 = vadd.f32 %v6894_v55, %v2370_v57  ;;  %v2406_v7 = vadd.f32 %v6896_v23, %v2369_v53  ;;  %v2408_v61 = vadd.f32 %v6896_v23, %v2371_v40  ;;  %3327 = vmatpush.bf16.msrb.mxu3 %v4299_v25 }
 0x424   :  { %v2461_v34 = vpack.c.bf16 %v2435_v45, %v2433_v0  ;;  %v2462_v51 = vpack.c.bf16 %v2436_v2, %v2434_v43  ;;  %v2437_v1 = vmax.f32 %v2405_v10, 0.0  ;;  %v4290_v45 = vld [vmem:[%s7486_s10 + $0x28] sm:$0xff] }
 0x425   :  { %2678 = vmatmul.bf16.gmra.mxu2 %v2459_v6  ;;  %2727 = vmatmul.bf16.gmra.mxu3 %v2460_v33  ;;  %v2439_v58 = vmax.f32 %v2407_v50, 0.0  ;;  %v2438_v16 = vmax.f32 %v2406_v7, 0.0  ;;  %v2440_v52 = vmax.f32 %v2408_v61, 0.0  ;;  %v4289_v50 = vld [vmem:[%s7486_s10 + $0x20] sm:$0xff] }
 0x426   :  { %2776 = vmatmul.bf16.gmra.mxu0 %v2459_v6  ;;  %2825 = vmatmul.bf16.gmra.mxu1 %v2460_v33 }
 0x427   :  { %v2463_v60 = vpack.c.bf16 %v2439_v58, %v2437_v1  ;;  %v2464_v42 = vpack.c.bf16 %v2440_v52, %v2438_v16  ;;  %v4297_v1 = vld [vmem:[%s7486_s10 + $0x60] sm:$0xff] }
 0x435   :  { %2683 = vmatmul.bf16.gmra.mxu2 %v2461_v34  ;;  %2732 = vmatmul.bf16.gmra.mxu3 %v2462_v51 }
 0x436   :  { %2781 = vmatmul.bf16.gmra.mxu0 %v2461_v34  ;;  %2830 = vmatmul.bf16.gmra.mxu1 %v2462_v51  ;;  %v4298_v34 = vld [vmem:[%s7486_s10 + $0x68] sm:$0xff] }
 0x437   :  { %3328 = vmatpush.bf16.msrb.mxu3 %v4298_v34 }
 0x43b   :  { %3329 = vmatpush.bf16.msrb.mxu3 %v4297_v1 }
 0x445   :  { %2688 = vmatmul.bf16.gmra.mxu2 %v2463_v60  ;;  %2737 = vmatmul.bf16.gmra.mxu3 %v2464_v42 }
 0x446   :  { %2786 = vmatmul.bf16.gmra.mxu0 %v2463_v60  ;;  %2835 = vmatmul.bf16.gmra.mxu1 %v2464_v42 }
 0x455   :  { %2693 = vmatmul.bf16.gmra.mxu2 %v6950_v39  ;;  %2742 = vmatmul.bf16.gmra.mxu3 %v6953_v54 }
 0x456   :  { %2791 = vmatmul.bf16.gmra.mxu0 %v6950_v39  ;;  %2840 = vmatmul.bf16.gmra.mxu1 %v6953_v54 }
 0x465   :  { %2698 = vmatmul.bf16.gmra.mxu2 %v6956_v12  ;;  %2747 = vmatmul.bf16.gmra.mxu3 %v6960_v31 }
 0x466   :  { %2796 = vmatmul.bf16.gmra.mxu0 %v6956_v12  ;;  %2845 = vmatmul.bf16.gmra.mxu1 %v6960_v31 }
 0x475   :  { %2703 = vmatmul.bf16.gmra.mxu2 %v2469_v19  ;;  %2752 = vmatmul.bf16.gmra.mxu3 %v2470_v36 }
 0x476   :  { %2801 = vmatmul.bf16.gmra.mxu0 %v2469_v19  ;;  %2850 = vmatmul.bf16.gmra.mxu1 %v2470_v36  ;;  %v4292_v19 = vld [vmem:[%s7486_s10 + $0x38] sm:$0xff] }
 0x477   :  { %3277 = vmatpush.bf16.msrb.mxu2 %v4292_v19 }
 0x485   :  { %2708 = vmatmul.bf16.gmra.mxu2 %v2471_v14  ;;  %2757 = vmatmul.bf16.gmra.mxu3 %v2472_v56 }
 0x486   :  { %2806 = vmatmul.bf16.gmra.mxu0 %v2471_v14  ;;  %2855 = vmatmul.bf16.gmra.mxu1 %v2472_v56  ;;  %v4291_v56 = vld [vmem:[%s7486_s10 + $0x30] sm:$0xff] }
 0x487   :  { %3278 = vmatpush.bf16.msrb.mxu2 %v4291_v56 }
 0x48b   :  { %3279 = vmatpush.bf16.msrb.mxu2 %v4290_v45 }
 0x48f   :  { %3280 = vmatpush.bf16.msrb.mxu2 %v4289_v50 }
 0x493   :  { %v2772_v27 = vpop.f32.mrf.mxu0  ;;  %v2821_v11 = vpop.f32.mrf.mxu1 }
 0x494   :  { %v7005_v28 = vadd.f32 %v2821_v11, %v2772_v27 }
 0x498   :  { %v2674_v37 = vpop.f32.mrf.mxu2  ;;  %v2723_v55 = vpop.f32.mrf.mxu3 }
 0x499   :  { %v7007_v23 = vadd.f32 %v2723_v55, %v2674_v37  ;;  %v2908_v55 = vmul.f32 %v7005_v28, %v7005_v28 }
 0x49b   :  { %v2774_v39 = vpop.f32.mrf.mxu0  ;;  %v2823_v54 = vpop.f32.mrf.mxu1 }
 0x49c   :  { %v7009_v18 = vadd.f32 %v2823_v54, %v2774_v39 }
 0x49e   :  { %v2910_v42 = vmul.f32 %v7009_v18, %v7009_v18  ;;  %v2884_v39 = vadd.f32 %v7009_v18, %v7005_v28 }
 0x4a0   :  { %v7011_v44 = vpop.f32.mrf.mxu2  ;;  %v7013_v12 = vpop.f32.mrf.mxu3 }
 0x4a1   :  { %v7087_v37 = vadd.f32 %v7013_v12, %v7011_v44 }
 0x4a3   :  { %v2777_v24 = vpop.f32.mrf.mxu0  ;;  %v2826_v48 = vpop.f32.mrf.mxu1 }
 0x4a4   :  { %v7015_v13 = vadd.f32 %v2826_v48, %v2777_v24 }
 0x4a6   :  { %v2912_v54 = vmul.f32 %v7015_v13, %v7015_v13 }
 0x4a8   :  { %v2679_v31 = vpop.f32.mrf.mxu2  ;;  %v2728_v32 = vpop.f32.mrf.mxu3 }
 0x4a9   :  { %v7017_v21 = vadd.f32 %v2728_v32, %v2679_v31  ;;  %v2960_v31 = vadd.f32 %v2910_v42, %v2908_v55  ;;  %v2885_v32 = vadd.f32 %v2884_v39, %v7015_v13 }
 0x4ab   :  { %v2779_v20 = vpop.f32.mrf.mxu0  ;;  %v2828_v63 = vpop.f32.mrf.mxu1  ;;  %v2961_v19 = vadd.f32 %v2960_v31, %v2912_v54 }
 0x4ac   :  { %v7019_v15 = vadd.f32 %v2828_v63, %v2779_v20  ;;  %v2909_v20 = vmul.f32 %v7087_v37, %v7087_v37 }
 0x4ae   :  { %v2914_v44 = vmul.f32 %v7019_v15, %v7019_v15 }
 0x4b0   :  { %v7021_v3 = vpop.f32.mrf.mxu2  ;;  %v7023_v35 = vpop.f32.mrf.mxu3 }
 0x4b1   :  { %v7108_v63 = vadd.f32 %v7023_v35, %v7021_v3 }
 0x4b3   :  { %v2782_v59 = vpop.f32.mrf.mxu0  ;;  %v2831_v17 = vpop.f32.mrf.mxu1  ;;  %v2913_v34 = vmul.f32 %v7108_v63, %v7108_v63 }
 0x4b4   :  { %v7028_v36 = vadd.f32 %v2831_v17, %v2782_v59  ;;  %v2886_v59 = vadd.f32 %v2885_v32, %v7019_v15 }
 0x4b6   :  { %v2916_v17 = vmul.f32 %v7028_v36, %v7028_v36  ;;  %v2887_v3 = vadd.f32 %v2886_v59, %v7028_v36 }
 0x4b8   :  { %v2684_v26 = vpop.f32.mrf.mxu2  ;;  %v2733_v6 = vpop.f32.mrf.mxu3 }
 0x4b9   :  { %v7033_v33 = vadd.f32 %v2733_v6, %v2684_v26  ;;  %v2907_v26 = vmul.f32 %v7007_v23, %v7007_v23  ;;  %v2863_v6 = vadd.f32 %v7087_v37, %v7007_v23 }
 0x4bb   :  { %v2784_v46 = vpop.f32.mrf.mxu0  ;;  %v2833_v4 = vpop.f32.mrf.mxu1  ;;  %v2864_v45 = vadd.f32 %v2863_v6, %v7017_v21  ;;  %v2915_v54 = vmul.f32 %v7033_v33, %v7033_v33 }
 0x4bc   :  { %v7102_v12 = vadd.f32 %v2833_v4, %v2784_v46  ;;  %v2911_v46 = vmul.f32 %v7017_v21, %v7017_v21  ;;  %v2962_v4 = vadd.f32 %v2961_v19, %v2914_v44 }
 0x4bd   :  { %v2865_v39 = vadd.f32 %v2864_v45, %v7108_v63 }
 0x4be   :  { %v2918_v35 = vmul.f32 %v7102_v12, %v7102_v12  ;;  %v2963_v1 = vadd.f32 %v2962_v4, %v2916_v17  ;;  %v2888_v42 = vadd.f32 %v2887_v3, %v7102_v12 }
 0x4bf   :  { %v2866_v19 = vadd.f32 %v2865_v39, %v7033_v33 }
 0x4c0   :  { %v7035_v41 = vpop.f32.mrf.mxu2  ;;  %v7037_v14 = vpop.f32.mrf.mxu3  ;;  %v2964_v32 = vadd.f32 %v2963_v1, %v2918_v35 }
 0x4c1   :  { %v7135_v50 = vadd.f32 %v7037_v14, %v7035_v41 }
 0x4c3   :  { %v2787_v9 = vpop.f32.mrf.mxu0  ;;  %v2836_v49 = vpop.f32.mrf.mxu1  ;;  %v2917_v59 = vmul.f32 %v7135_v50, %v7135_v50 }
 0x4c4   :  { %v7113_v62 = vadd.f32 %v2836_v49, %v2787_v9  ;;  %v2939_v49 = vadd.f32 %v2909_v20, %v2907_v26 }
 0x4c6   :  { %v2940_v55 = vadd.f32 %v2939_v49, %v2911_v46  ;;  %v2889_v44 = vadd.f32 %v2888_v42, %v7113_v62 }
 0x4c8   :  { %v7045_v47 = vpop.f32.mrf.mxu2  ;;  %v7047_v29 = vpop.f32.mrf.mxu3 }
 0x4c9   :  { %v7147_v31 = vadd.f32 %v7047_v29, %v7045_v47 }
 0x4cb   :  { %v2789_v22 = vpop.f32.mrf.mxu0  ;;  %v2838_v38 = vpop.f32.mrf.mxu1  ;;  %v2919_v46 = vmul.f32 %v7147_v31, %v7147_v31 }
 0x4cc   :  { %v7124_v56 = vadd.f32 %v2838_v38, %v2789_v22  ;;  %v2920_v22 = vmul.f32 %v7113_v62, %v7113_v62 }
 0x4ce   :  { %v2922_v20 = vmul.f32 %v7124_v56, %v7124_v56  ;;  %v2965_v29 = vadd.f32 %v2964_v32, %v2920_v22  ;;  %v2890_v17 = vadd.f32 %v2889_v44, %v7124_v56 }
 0x4d0   :  { %v7049_v5 = vpop.f32.mrf.mxu2  ;;  %v7051_v0 = vpop.f32.mrf.mxu3 }
 0x4d1   :  { %v7159_v47 = vadd.f32 %v7051_v0, %v7049_v5  ;;  %v2966_v5 = vadd.f32 %v2965_v29, %v2922_v20 }
 0x4d3   :  { %v2792_v43 = vpop.f32.mrf.mxu0  ;;  %v2841_v2 = vpop.f32.mrf.mxu1 }
 0x4d4   :  { %v7140_v38 = vadd.f32 %v2841_v2, %v2792_v43  ;;  %v2941_v2 = vadd.f32 %v2940_v55, %v2913_v34  ;;  %v2921_v34 = vmul.f32 %v7159_v47, %v7159_v47 }
 0x4d6   :  { %v2924_v26 = vmul.f32 %v7140_v38, %v7140_v38  ;;  %v2891_v0 = vadd.f32 %v2890_v17, %v7140_v38 }
 0x4d8   :  { %v7059_v51 = vpop.f32.mrf.mxu2  ;;  %v7061_v30 = vpop.f32.mrf.mxu3 }
 0x4d9   :  { %v7171_v4 = vadd.f32 %v7061_v30, %v7059_v51  ;;  %v2967_v30 = vadd.f32 %v2966_v5, %v2924_v26 }
 0x4db   :  { %v2794_v57 = vpop.f32.mrf.mxu0  ;;  %v2843_v53 = vpop.f32.mrf.mxu1  ;;  %v2923_v55 = vmul.f32 %v7171_v4, %v7171_v4 }
 0x4dc   :  { %v7152_v43 = vadd.f32 %v2843_v53, %v2794_v57  ;;  %v2942_v57 = vadd.f32 %v2941_v2, %v2915_v54  ;;  %v2867_v53 = vadd.f32 %v2866_v19, %v7135_v50 }
 0x4de   :  { %v2926_v3 = vmul.f32 %v7152_v43, %v7152_v43  ;;  %v2943_v49 = vadd.f32 %v2942_v57, %v2917_v59  ;;  %v2868_v45 = vadd.f32 %v2867_v53, %v7147_v31  ;;  %v2892_v1 = vadd.f32 %v2891_v0, %v7152_v43 }
 0x4e0   :  { %v7063_v40 = vpop.f32.mrf.mxu2  ;;  %v7065_v10 = vpop.f32.mrf.mxu3  ;;  %v2869_v22 = vadd.f32 %v2868_v45, %v7159_v47  ;;  %v2968_v54 = vadd.f32 %v2967_v30, %v2926_v3 }
 0x4e1   :  { %v7184_v51 = vadd.f32 %v7065_v10, %v7063_v40 }
 0x4e2   :  { %v2870_v20 = vadd.f32 %v2869_v22, %v7171_v4 }
 0x4e3   :  { %v2797_v7 = vpop.f32.mrf.mxu0  ;;  %v2846_v61 = vpop.f32.mrf.mxu1  ;;  %v2925_v2 = vmul.f32 %v7184_v51, %v7184_v51 }
 0x4e4   :  { %v7164_v6 = vadd.f32 %v2846_v61, %v2797_v7 }
 0x4e6   :  { %v2928_v42 = vmul.f32 %v7164_v6, %v7164_v6  ;;  %v2893_v32 = vadd.f32 %v2892_v1, %v7164_v6 }
 0x4e8   :  { %v7073_v58 = vpop.f32.mrf.mxu2  ;;  %v7075_v16 = vpop.f32.mrf.mxu3 }
 0x4e9   :  { %v7198_v40 = vadd.f32 %v7075_v16, %v7073_v58  ;;  %v2969_v16 = vadd.f32 %v2968_v54, %v2928_v42 }
 0x4eb   :  { %v7077_v52 = vpop.f32.mrf.mxu0  ;;  %v2848_v60 = vpop.f32.mrf.mxu1  ;;  %v2927_v17 = vmul.f32 %v7198_v40, %v7198_v40 }
 0x4ec   :  { %v7177_v35 = vadd.f32 %v2848_v60, %v7077_v52  ;;  %v2944_v60 = vadd.f32 %v2943_v49, %v2919_v46 }
 0x4ee   :  { %v2930_v44 = vmul.f32 %v7177_v35, %v7177_v35  ;;  %v2894_v19 = vadd.f32 %v2893_v32, %v7177_v35 }
 0x4f0   :  { %v7081_v27 = vpop.f32.mrf.mxu2  ;;  %v7083_v11 = vpop.f32.mrf.mxu3 }
 0x4f1   :  { %v7210_v58 = vadd.f32 %v7083_v11, %v7081_v27  ;;  %v2970_v27 = vadd.f32 %v2969_v16, %v2930_v44 }
 0x4f3   :  { %v7095_v24 = vpop.f32.mrf.mxu0  ;;  %v7097_v48 = vpop.f32.mrf.mxu1  ;;  %v2929_v3 = vmul.f32 %v7210_v58, %v7210_v58 }
 0x4f4   :  { %v7191_v52 = vadd.f32 %v7097_v48, %v7095_v24  ;;  %v2945_v48 = vadd.f32 %v2944_v60, %v2921_v34 }
 0x4f6   :  { %v2932_v59 = vmul.f32 %v7191_v52, %v7191_v52  ;;  %v2895_v11 = vadd.f32 %v2894_v19, %v7191_v52 }
 0x4f8   :  { %v7126_v25 = vpop.f32.mrf.mxu2  ;;  %v7128_v9 = vpop.f32.mrf.mxu3  ;;  %v2971_v45 = vadd.f32 %v2970_v27, %v2932_v59 }
 0x4f9   :  { %v7222_v26 = vadd.f32 %v7128_v9, %v7126_v25 }
 0x4fb   :  { %v2804_v41 = vpop.f32.mrf.mxu0  ;;  %v2853_v14 = vpop.f32.mrf.mxu1  ;;  %v2931_v1 = vmul.f32 %v7222_v26, %v7222_v26 }
 0x4fc   :  { %v7203_v24 = vadd.f32 %v2853_v14, %v2804_v41  ;;  %v2946_v41 = vadd.f32 %v2945_v48, %v2923_v55  ;;  %v2871_v14 = vadd.f32 %v2870_v20, %v7184_v51 }
 0x4fe   :  { %v2934_v57 = vmul.f32 %v7203_v24, %v7203_v24  ;;  %v2947_v5 = vadd.f32 %v2946_v41, %v2925_v2  ;;  %v2872_v0 = vadd.f32 %v2871_v14, %v7198_v40  ;;  %v2896_v25 = vadd.f32 %v2895_v11, %v7203_v24 }
 0x500   :  { %v2706_v7 = vpop.f32.mrf.mxu2  ;;  %v2755_v61 = vpop.f32.mrf.mxu3  ;;  %v2948_v34 = vadd.f32 %v2947_v5, %v2927_v17  ;;  %v2873_v30 = vadd.f32 %v2872_v0, %v7210_v58  ;;  %v2972_v55 = vadd.f32 %v2971_v45, %v2934_v57 }
 0x501   :  { %v7230_v49 = vadd.f32 %v2755_v61, %v2706_v7 }
 0x503   :  { %v2807_v10 = vpop.f32.mrf.mxu0  ;;  %v2856_v39 = vpop.f32.mrf.mxu1  ;;  %v2933_v54 = vmul.f32 %v7230_v49, %v7230_v49 }
 0x504   :  { %v7215_v29 = vadd.f32 %v2856_v39, %v2807_v10  ;;  %v2949_v10 = vadd.f32 %v2948_v34, %v2929_v3  ;;  %v2874_v39 = vadd.f32 %v2873_v30, %v7222_v26 }
 0x506   :  { %v2936_v9 = vmul.f32 %v7215_v29, %v7215_v29  ;;  %v2897_v7 = vadd.f32 %v2896_v25, %v7215_v29  ;;  %v2950_v20 = vadd.f32 %v2949_v10, %v2931_v1  ;;  %v2875_v2 = vadd.f32 %v2874_v39, %v7230_v49  ;;  %v4288_v1 = vld [vmem:[%s7486_s10 + $0x18] sm:$0xff] }
 0x507   :  { %3281 = vmatpush.bf16.msrb.mxu2 %v4288_v1 }
 0x508   :  { %v2709_v53 = vpop.f32.mrf.mxu2  ;;  %v2758_v46 = vpop.f32.mrf.mxu3  ;;  %v2973_v32 = vadd.f32 %v2972_v55, %v2936_v9  ;;  %v2951_v17 = vadd.f32 %v2950_v20, %v2933_v54 }
 0x509   :  { %v7238_v42 = vadd.f32 %v2758_v46, %v2709_v53 }
 0x50b   :  { %v2809_v60 = vpop.f32.mrf.mxu0  ;;  %v2858_v22 = vpop.f32.mrf.mxu1  ;;  %v2935_v16 = vmul.f32 %v7238_v42, %v7238_v42  ;;  %v2876_v27 = vadd.f32 %v2875_v2, %v7238_v42 }
 0x50c   :  { %v7241_v61 = vadd.f32 %v2858_v22, %v2809_v60 }
 0x50d   :  { %v2952_v46 = vadd.f32 %v2951_v17, %v2935_v16 }
 0x50e   :  { %v2898_v44 = vadd.f32 %v2897_v7, %v7241_v61  ;;  %v2938_v48 = vmul.f32 %v7241_v61, %v7241_v61 }
 0x510   :  { %v2899_v19 = vrot.slane %v2898_v44, 4  ;;  %v2974_v59 = vadd.f32 %v2973_v32, %v2938_v48  ;;  %v2711_v41 = vpop.f32.mrf.mxu2  ;;  %v2760_v14 = vpop.f32.mrf.mxu3 }
 0x511   :  { %v7253_v11 = vadd.f32 %v2760_v14, %v2711_v41 }
 0x512   :  { %v2900_v57 = vadd.f32 %v2899_v19, %v2898_v44  ;;  %v2975_v53 = vrot.slane %v2974_v59, 4 }
 0x513   :  { %v2877_v5 = vadd.f32 %v2876_v27, %v7253_v11  ;;  %v2937_v0 = vmul.f32 %v7253_v11, %v7253_v11 }
 0x514   :  { %v2901_v3 = vrot.slane %v2900_v57, 2  ;;  %v2976_v45 = vadd.f32 %v2975_v53, %v2974_v59 }
 0x515   :  { %v2878_v25 = vrot.slane %v2877_v5, 4  ;;  %v2953_v9 = vadd.f32 %v2952_v46, %v2937_v0 }
 0x516   :  { %v2902_v34 = vadd.f32 %v2901_v3, %v2900_v57  ;;  %v2977_v30 = vrot.slane %v2976_v45, 2 }
 0x517   :  { %v2879_v60 = vadd.f32 %v2878_v25, %v2877_v5  ;;  %v2954_v22 = vrot.slane %v2953_v9, 4  ;;  %v4296_v25 = vld [vmem:[%s7486_s10 + $0x58] sm:$0xff] }
 0x518   :  { %v2903_v55 = vrot.slane %v2902_v34, 1  ;;  %v2978_v7 = vadd.f32 %v2977_v30, %v2976_v45  ;;  %3330 = vmatpush.bf16.msrb.mxu3 %v4296_v25 }
 0x519   :  { %v2880_v10 = vrot.slane %v2879_v60, 2  ;;  %v2955_v39 = vadd.f32 %v2954_v22, %v2953_v9  ;;  %v4287_v9 = vld [vmem:[%s7486_s10 + $0x10] sm:$0xff]  ;;  %v4294_v22 = vld [vmem:[%s7486_s10 + $0x48] sm:$0xff] }
 0x51a   :  { %v2904_v54 = vadd.f32 %v2903_v55, %v2902_v34  ;;  %v2979_v32 = vrot.slane %v2978_v7, 1  ;;  %3282 = vmatpush.bf16.msrb.mxu2 %v4287_v9  ;;  %v4295_v34 = vld [vmem:[%s7486_s10 + $0x50] sm:$0xff]  ;;  %v4285_v55 = vld [vmem:[%s7486_s10] sm:$0xff] }
 0x51b   :  { %v2881_v44 = vadd.f32 %v2880_v10, %v2879_v60  ;;  %v2956_v48 = vrot.slane %v2955_v39, 2 }
 0x51c   :  { %v2906_v20 = vmul.f32 %v2904_v54, %v6095_v8  ;;  %v2980_v2 = vadd.f32 %v2979_v32, %v2978_v7  ;;  %3331 = vmatpush.bf16.msrb.mxu3 %v4295_v34  ;;  %v4293_v32 = vld [vmem:[%s7486_s10 + $0x40] sm:$0xff] }
 0x51d   :  { %v2882_v16 = vrot.slane %v2881_v44, 1  ;;  %v2957_v19 = vadd.f32 %v2956_v48, %v2955_v39 }
 0x51e   :  { %v2982_v59 = vmul.f32 %v2980_v2, %v6095_v8  ;;  %v2984_v41 = vmul.f32 %v2906_v20, %v2906_v20 }
 0x51f   :  { %v2883_v14 = vadd.f32 %v2882_v16, %v2881_v44  ;;  %v2958_v17 = vrot.slane %v2957_v19, 1 }
 0x520   :  { %v2986_v27 = vsub.f32 %v2982_v59, %v2984_v41  ;;  %3332 = vmatpush.bf16.msrb.mxu3 %v4294_v22 }
 0x521   :  { %v2905_v57 = vmul.f32 %v2883_v14, %v6095_v8  ;;  %v2959_v53 = vadd.f32 %v2958_v17, %v2957_v19  ;;  %v2861_v14 = vld [vmem:[%s7487_s8] sm:$0x3] }
 0x522   :  { %v2988_v46 = vadd.f32 1e-05, %v2986_v27 }
 0x523   :  { %v2981_v5 = vmul.f32 %v2959_v53, %v6095_v8  ;;  %v2983_v0 = vmul.f32 %v2905_v57, %v2905_v57  ;;  %v4286_v8 = vld [vmem:[%s7486_s10 + $0x8] sm:$0xff] }
 0x524   :  { %4313 = vrsqrt.f32 %v2988_v46  ;;  %3283 = vmatpush.bf16.msrb.mxu2 %v4286_v8  ;;  %vm3005_vm0 = vweird.f32 %v2988_v46  ;;  %3333 = vmatpush.bf16.msrb.mxu3 %v4293_v32 }
 0x525   :  { %v2985_v3 = vsub.f32 %v2981_v5, %v2983_v0 }
 0x527   :  { %v2987_v45 = vadd.f32 1e-05, %v2985_v3 }
 0x528   :  { %3284 = vmatpush.bf16.msrb.mxu2 %v4285_v55 }
 0x529   :  { %4315 = vrsqrt.f32 %v2987_v45  ;;  %vm2995_vm3 = vweird.f32 %v2987_v45 }
 0x52a   :  { %v4314_v30 = vpop.eup %4313 }
 0x52b   :  { %v3000_v1 = vmul.f32 %v4314_v30, %v2988_v46  ;;  %vm3006_vm15 = vweird.f32 %v4314_v30 }
 0x52c   :  { %vm3007_vm1 = vmor %vm3005_vm0, %vm3006_vm15 }
 0x52d   :  { %v3001_v60 = vmul.f32 %v4314_v30, %v3000_v1 }
 0x52f   :  { %v4316_v7 = vpop.eup %4315  ;;  %v3002_v10 = vmul.f32 0.5, %v3001_v60 }
 0x530   :  { %v2990_v39 = vmul.f32 %v4316_v7, %v2987_v45  ;;  %vm2996_vm2 = vweird.f32 %v4316_v7  ;;  %v2862_v45 = vld [vmem:[%s7488_s9] sm:$0x3] }
 0x531   :  { %v3003_v54 = vsub.f32 1.5, %v3002_v10  ;;  %vm2997_vm4 = vmor %vm2995_vm3, %vm2996_vm2 }
 0x532   :  { %v2991_v44 = vmul.f32 %v4316_v7, %v2990_v39 }
 0x533   :  { %v3004_v48 = vmul.f32 %v4314_v30, %v3003_v54 }
 0x534   :  { %v2992_v2 = vmul.f32 0.5, %v2991_v44 }
 0x535   :  { %v3008_v16 = vsel %vm3007_vm1, %v4314_v30, %v3004_v48 }
 0x536   :  { %v2993_v19 = vsub.f32 1.5, %v2992_v2  ;;  %v3011_v41 = vrot.slane %v3008_v16, 7 }
 0x538   :  { %v2994_v59 = vmul.f32 %v4316_v7, %v2993_v19 }
 0x53a   :  { %v2998_v17 = vsel %vm2997_vm4, %v4316_v7, %v2994_v59 }
 0x53b   :  { %v3012_v27 = vsel %vm1667_vm7, %v2998_v17, %v3011_v41 }
 0x53c   :  { %v3014_v53 = vmul.f32 %v3012_v27, %v2861_v14 }
 0x53e   :  { %v7290_v5 = vperm.slane %v3014_v53, 0  ;;  %v7292_v46 = vperm.slane %v3014_v53, 1 }
 0x540   :  { %v3021_v0 = vmul.f32 %v7292_v46, %v2906_v20  ;;  %v7297_v3 = vmul.f32 %v7290_v5, %v7253_v11  ;;  %v3020_v25 = vmul.f32 %v7290_v5, %v2905_v57  ;;  %v3028_v30 = vmul.f32 %v7290_v5, %v7007_v23 }
 0x541   :  { %v3030_v20 = vmul.f32 %v7290_v5, %v7087_v37  ;;  %v3029_v60 = vmul.f32 %v7292_v46, %v7005_v28  ;;  %v3031_v57 = vmul.f32 %v7292_v46, %v7009_v18  ;;  %v3032_v32 = vmul.f32 %v7290_v5, %v7017_v21 }
 0x542   :  { %v3024_v9 = vrot.slane %v3021_v0, 7  ;;  %v3034_v28 = vmul.f32 %v7290_v5, %v7108_v63  ;;  %v3033_v18 = vmul.f32 %v7292_v46, %v7015_v13  ;;  %v3035_v2 = vmul.f32 %v7292_v46, %v7019_v15 }
 0x543   :  { %v3044_v16 = vmul.f32 %v7290_v5, %v7171_v4  ;;  %v3046_v21 = vmul.f32 %v7290_v5, %v7184_v51  ;;  %v3045_v63 = vmul.f32 %v7292_v46, %v7140_v38  ;;  %v3047_v15 = vmul.f32 %v7292_v46, %v7152_v43 }
 0x544   :  { %v3025_v34 = vsel %vm1667_vm7, %v3020_v25, %v3024_v9  ;;  %v3048_v4 = vmul.f32 %v7290_v5, %v7198_v40  ;;  %v3050_v14 = vmul.f32 %v7290_v5, %v7210_v58  ;;  %v3049_v51 = vmul.f32 %v7292_v46, %v7164_v6 }
 0x545   :  { %v3027_v8 = vsub.f32 %v2862_v45, %v3025_v34  ;;  %v3051_v38 = vmul.f32 %v7292_v46, %v7177_v35  ;;  %v3052_v27 = vmul.f32 %v7290_v5, %v7222_v26  ;;  %v3054_v43 = vmul.f32 %v7290_v5, %v7230_v49 }
 0x546   :  { %v3053_v40 = vmul.f32 %v7292_v46, %v7191_v52  ;;  %v3055_v6 = vmul.f32 %v7292_v46, %v7203_v24 }
 0x547   :  { %v7308_v1 = vperm.slane %v3027_v8, 0  ;;  %v7310_v11 = vperm.slane %v3027_v8, 1 }
 0x549   :  { %v3065_v22 = vadd.f32 %v7308_v1, %v3028_v30  ;;  %v3067_v55 = vadd.f32 %v7308_v1, %v3030_v20  ;;  %v3066_v7 = vadd.f32 %v7310_v11, %v3029_v60  ;;  %v3068_v23 = vadd.f32 %v7310_v11, %v3031_v57 }
 0x54a   :  { %v3069_v19 = vadd.f32 %v7308_v1, %v3032_v32  ;;  %v3071_v59 = vadd.f32 %v7308_v1, %v3034_v28  ;;  %v3070_v13 = vadd.f32 %v7310_v11, %v3033_v18  ;;  %v3072_v41 = vadd.f32 %v7310_v11, %v3035_v2 }
 0x54b   :  { %v3097_v10 = vmax.f32 %v3065_v22, 0.0  ;;  %v3099_v37 = vmax.f32 %v3067_v55, 0.0  ;;  %v3098_v39 = vmax.f32 %v3066_v7, 0.0  ;;  %v3100_v54 = vmax.f32 %v3068_v23, 0.0 }
 0x54c   :  { %v3081_v17 = vadd.f32 %v7308_v1, %v3044_v16  ;;  %v3101_v53 = vmax.f32 %v3069_v19, 0.0  ;;  %v3103_v0 = vmax.f32 %v3071_v59, 0.0  ;;  %v3083_v58 = vadd.f32 %v7308_v1, %v3046_v21 }
 0x54d   :  { %v3129_v44 = vpack.c.bf16 %v3099_v37, %v3097_v10  ;;  %v3130_v48 = vpack.c.bf16 %v3100_v54, %v3098_v39  ;;  %v3102_v45 = vmax.f32 %v3070_v13, 0.0  ;;  %v3082_v25 = vadd.f32 %v7310_v11, %v3045_v63 }
 0x54e   :  { %v3113_v35 = vmax.f32 %v3081_v17, 0.0  ;;  %v3084_v9 = vadd.f32 %v7310_v11, %v3047_v15  ;;  %v3104_v26 = vmax.f32 %v3072_v41, 0.0  ;;  %v3115_v34 = vmax.f32 %v3083_v58, 0.0 }
 0x54f   :  { %3285 = vmatmul.bf16.vlgmr.msrb.gmra.mxu2 %v3129_v44  ;;  %3334 = vmatmul.bf16.vlgmr.msrb.gmra.mxu3 %v3130_v48  ;;  %v3085_v49 = vadd.f32 %v7308_v1, %v3048_v4  ;;  %v3087_v8 = vadd.f32 %v7308_v1, %v3050_v14  ;;  %v3114_v52 = vmax.f32 %v3082_v25, 0.0  ;;  %v3086_v20 = vadd.f32 %v7310_v11, %v3049_v51 }
 0x550   :  { %v3116_v30 = vmax.f32 %v3084_v9, 0.0  ;;  %v3088_v60 = vadd.f32 %v7310_v11, %v3051_v38  ;;  %v7364_v57 = vpack.c.bf16 %v3115_v34, %v3113_v35  ;;  %v3089_v55 = vadd.f32 %v7308_v1, %v3052_v27 }
 0x551   :  { %v3117_v24 = vmax.f32 %v3085_v49, 0.0  ;;  %v3119_v22 = vmax.f32 %v3087_v8, 0.0  ;;  %v3118_v23 = vmax.f32 %v3086_v20, 0.0  ;;  %v3091_v37 = vadd.f32 %v7308_v1, %v3054_v43 }
 0x552   :  { %v7367_v7 = vpack.c.bf16 %v3116_v30, %v3114_v52  ;;  %v3120_v10 = vmax.f32 %v3088_v60, 0.0  ;;  %v3121_v54 = vmax.f32 %v3089_v55, 0.0  ;;  %v3090_v32 = vadd.f32 %v7310_v11, %v3053_v40 }
 0x553   :  { %v3139_v39 = vpack.c.bf16 %v3119_v22, %v3117_v24  ;;  %v3092_v28 = vadd.f32 %v7310_v11, %v3055_v6  ;;  %v3123_v44 = vmax.f32 %v3091_v37, 0.0  ;;  %v3056_v48 = vmul.f32 %v7290_v5, %v7238_v42 }
 0x554   :  { %v3140_v18 = vpack.c.bf16 %v3120_v10, %v3118_v23  ;;  %v3095_v2 = vadd.f32 %v7308_v1, %v7297_v3  ;;  %v3122_v16 = vmax.f32 %v3090_v32, 0.0  ;;  %v3057_v59 = vmul.f32 %v7292_v46, %v7215_v29 }
 0x555   :  { %v3124_v19 = vmax.f32 %v3092_v28, 0.0  ;;  %v3059_v21 = vmul.f32 %v7292_v46, %v7241_v61  ;;  %v3141_v63 = vpack.c.bf16 %v3123_v44, %v3121_v54  ;;  %v3093_v13 = vadd.f32 %v7308_v1, %v3056_v48 }
 0x556   :  { %v3127_v15 = vmax.f32 %v3095_v2, 0.0  ;;  %v3094_v41 = vadd.f32 %v7310_v11, %v3057_v59  ;;  %v3131_v14 = vpack.c.bf16 %v3103_v0, %v3101_v53  ;;  %v3132_v51 = vpack.c.bf16 %v3104_v26, %v3102_v45 }
 0x557   :  { %v3142_v4 = vpack.c.bf16 %v3124_v19, %v3122_v16  ;;  %v3096_v42 = vadd.f32 %v7310_v11, %v3059_v21  ;;  %v3125_v3 = vmax.f32 %v3093_v13, 0.0  ;;  %v3036_v61 = vmul.f32 %v7290_v5, %v7033_v33 }
 0x558   :  { %v3126_v38 = vmax.f32 %v3094_v41, 0.0  ;;  %v3038_v43 = vmul.f32 %v7290_v5, %v7135_v50  ;;  %v3037_v40 = vmul.f32 %v7292_v46, %v7028_v36  ;;  %v3039_v53 = vmul.f32 %v7292_v46, %v7102_v12 }
 0x559   :  { %v3128_v17 = vmax.f32 %v3096_v42, 0.0  ;;  %v3143_v29 = vpack.c.bf16 %v3127_v15, %v3125_v3  ;;  %v3073_v0 = vadd.f32 %v7308_v1, %v3036_v61  ;;  %v3040_v36 = vmul.f32 %v7290_v5, %v7147_v31 }
 0x55a   :  { %v3075_v58 = vadd.f32 %v7308_v1, %v3038_v43  ;;  %v3074_v6 = vadd.f32 %v7310_v11, %v3037_v40  ;;  %v3076_v45 = vadd.f32 %v7310_v11, %v3039_v53  ;;  %v3042_v12 = vmul.f32 %v7290_v5, %v7159_v47 }
 0x55b   :  { %v3144_v27 = vpack.c.bf16 %v3128_v17, %v3126_v38  ;;  %v3105_v35 = vmax.f32 %v3073_v0, 0.0  ;;  %v3041_v34 = vmul.f32 %v7292_v46, %v7113_v62  ;;  %v3043_v49 = vmul.f32 %v7292_v46, %v7124_v56  ;;  %v7412_v62 = vld [vmem:[%s7489_s11] ss:$0 sm:$0xff] }
 0x55c   :  { %v3107_v25 = vmax.f32 %v3075_v58, 0.0  ;;  %v3106_v33 = vmax.f32 %v3074_v6, 0.0  ;;  %v3108_v9 = vmax.f32 %v3076_v45, 0.0  ;;  %v3077_v8 = vadd.f32 %v7308_v1, %v3040_v36 }
 0x55d   :  { %v3079_v52 = vadd.f32 %v7308_v1, %v3042_v12  ;;  %v3078_v30 = vadd.f32 %v7310_v11, %v3041_v34  ;;  %v3080_v20 = vadd.f32 %v7310_v11, %v3043_v49 }
 0x55e   :  { %v3133_v26 = vpack.c.bf16 %v3107_v25, %v3105_v35  ;;  %v3134_v50 = vpack.c.bf16 %v3108_v9, %v3106_v33  ;;  %v3109_v60 = vmax.f32 %v3077_v8, 0.0 }
 0x55f   :  { %3290 = vmatmul.bf16.gmra.mxu2 %v3131_v14  ;;  %3339 = vmatmul.bf16.gmra.mxu3 %v3132_v51  ;;  %v3111_v24 = vmax.f32 %v3079_v52, 0.0  ;;  %v3110_v31 = vmax.f32 %v3078_v30, 0.0  ;;  %v3112_v22 = vmax.f32 %v3080_v20, 0.0 }
 0x561   :  { %v3135_v55 = vpack.c.bf16 %v3111_v24, %v3109_v60  ;;  %v3136_v47 = vpack.c.bf16 %v3112_v22, %v3110_v31 }
 0x56f   :  { %3295 = vmatmul.bf16.gmra.mxu2 %v3133_v26  ;;  %3344 = vmatmul.bf16.gmra.mxu3 %v3134_v50 }
 0x57f   :  { %3300 = vmatmul.bf16.gmra.mxu2 %v3135_v55  ;;  %3349 = vmatmul.bf16.gmra.mxu3 %v3136_v47 }
 0x58f   :  { %3305 = vmatmul.bf16.gmra.mxu2 %v7364_v57  ;;  %3354 = vmatmul.bf16.gmra.mxu3 %v7367_v7 }
 0x59f   :  { %3310 = vmatmul.bf16.gmra.mxu2 %v3139_v39  ;;  %3359 = vmatmul.bf16.gmra.mxu3 %v3140_v18 }
 0x5af   :  { %3315 = vmatmul.bf16.gmra.mxu2 %v3141_v63  ;;  %3364 = vmatmul.bf16.gmra.mxu3 %v3142_v4 }
 0x5bf   :  { %3320 = vmatmul.bf16.gmra.mxu2 %v3143_v29  ;;  %3369 = vmatmul.bf16.gmra.mxu3 %v3144_v27 }
 0x5d2   :  { %v3286_v56 = vpop.f32.mrf.mxu2  ;;  %v3335_v5 = vpop.f32.mrf.mxu3 }
 0x5d3   :  { %v3287_v46 = vadd.f32 %v7412_v62, %v3286_v56 }
 0x5d5   :  { %v3336_v1 = vadd.f32 %v3335_v5, %v3287_v46 }
 0x5d7   :  { %3375 = vst [vmem:[%s7490_s12] sm:$0xff] %v3336_v1 }
 0x5da   :  { %v3288_v11 = vpop.f32.mrf.mxu2  ;;  %v3337_v57 = vpop.f32.mrf.mxu3 }
 0x5db   :  { %v3289_v7 = vadd.f32 %v7412_v62, %v3288_v11 }
 0x5dd   :  { %v3338_v23 = vadd.f32 %v3337_v57, %v3289_v7 }
 0x5df   :  { %3376 = vst [vmem:[%s7490_s12 + $0x8] sm:$0xff] %v3338_v23 }
 0x5e2   :  { %v3291_v10 = vpop.f32.mrf.mxu2  ;;  %v3340_v37 = vpop.f32.mrf.mxu3 }
 0x5e3   :  { %v3292_v39 = vadd.f32 %v7412_v62, %v3291_v10 }
 0x5e5   :  { %v3341_v54 = vadd.f32 %v3340_v37, %v3292_v39 }
 0x5e7   :  { %3377 = vst [vmem:[%s7490_s12 + $0x10] sm:$0xff] %v3341_v54 }
 0x5ea   :  { %v3293_v32 = vpop.f32.mrf.mxu2  ;;  %v3342_v28 = vpop.f32.mrf.mxu3 }
 0x5eb   :  { %v3294_v18 = vadd.f32 %v7412_v62, %v3293_v32 }
 0x5ed   :  { %v3343_v44 = vadd.f32 %v3342_v28, %v3294_v18 }
 0x5ef   :  { %3378 = vst [vmem:[%s7490_s12 + $0x18] sm:$0xff] %v3343_v44 }
 0x5f2   :  { %v3296_v48 = vpop.f32.mrf.mxu2  ;;  %v3345_v2 = vpop.f32.mrf.mxu3 }
 0x5f3   :  { %v3297_v16 = vadd.f32 %v7412_v62, %v3296_v48 }
 0x5f5   :  { %v3346_v19 = vadd.f32 %v3345_v2, %v3297_v16 }
 0x5f7   :  { %3379 = vst [vmem:[%s7490_s12 + $0x20] sm:$0xff] %v3346_v19 }
 0x5fa   :  { %v3298_v59 = vpop.f32.mrf.mxu2  ;;  %v3347_v21 = vpop.f32.mrf.mxu3 }
 0x5fb   :  { %v3299_v63 = vadd.f32 %v7412_v62, %v3298_v59 }
 0x5fd   :  { %v3348_v13 = vadd.f32 %v3347_v21, %v3299_v63 }
 0x5ff   :  { %3380 = vst [vmem:[%s7490_s12 + $0x28] sm:$0xff] %v3348_v13 }
 0x602   :  { %v3301_v15 = vpop.f32.mrf.mxu2  ;;  %v3350_v4 = vpop.f32.mrf.mxu3 }
 0x603   :  { %v3302_v41 = vadd.f32 %v7412_v62, %v3301_v15 }
 0x605   :  { %v3351_v42 = vadd.f32 %v3350_v4, %v3302_v41 }
 0x607   :  { %3381 = vst [vmem:[%s7490_s12 + $0x30] sm:$0xff] %v3351_v42 }
 0x60a   :  { %v3303_v14 = vpop.f32.mrf.mxu2  ;;  %v3352_v51 = vpop.f32.mrf.mxu3 }
 0x60b   :  { %v3304_v3 = vadd.f32 %v7412_v62, %v3303_v14 }
 0x60d   :  { %v3353_v38 = vadd.f32 %v3352_v51, %v3304_v3 }
 0x60f   :  { %3382 = vst [vmem:[%s7490_s12 + $0x38] sm:$0xff] %v3353_v38 }
 0x612   :  { %v3306_v17 = vpop.f32.mrf.mxu2  ;;  %v3355_v29 = vpop.f32.mrf.mxu3 }
 0x613   :  { %v3307_v27 = vadd.f32 %v7412_v62, %v3306_v17 }
 0x615   :  { %v3356_v61 = vadd.f32 %v3355_v29, %v3307_v27 }
 0x617   :  { %3383 = vst [vmem:[%s7490_s12 + $0x40] sm:$0xff] %v3356_v61 }
 0x61a   :  { %v3308_v43 = vpop.f32.mrf.mxu2  ;;  %v3357_v40 = vpop.f32.mrf.mxu3 }
 0x61b   :  { %v3309_v53 = vadd.f32 %v7412_v62, %v3308_v43 }
 0x61d   :  { %v3358_v0 = vadd.f32 %v3357_v40, %v3309_v53 }
 0x61f   :  { %3384 = vst [vmem:[%s7490_s12 + $0x48] sm:$0xff] %v3358_v0 }
 0x622   :  { %v3311_v58 = vpop.f32.mrf.mxu2  ;;  %v3360_v6 = vpop.f32.mrf.mxu3 }
 0x623   :  { %v3312_v45 = vadd.f32 %v7412_v62, %v3311_v58 }
 0x625   :  { %v3361_v35 = vadd.f32 %v3360_v6, %v3312_v45 }
 0x627   :  { %3385 = vst [vmem:[%s7490_s12 + $0x50] sm:$0xff] %v3361_v35 }
 0x62a   :  { %v3313_v25 = vpop.f32.mrf.mxu2  ;;  %v3362_v33 = vpop.f32.mrf.mxu3 }
 0x62b   :  { %v3314_v9 = vadd.f32 %v7412_v62, %v3313_v25 }
 0x62d   :  { %v3363_v26 = vadd.f32 %v3362_v33, %v3314_v9 }
 0x62f   :  { %3386 = vst [vmem:[%s7490_s12 + $0x58] sm:$0xff] %v3363_v26 }
 0x632   :  { %v3316_v50 = vpop.f32.mrf.mxu2  ;;  %v3365_v36 = vpop.f32.mrf.mxu3 }
 0x633   :  { %v3317_v12 = vadd.f32 %v7412_v62, %v3316_v50 }
 0x635   :  { %v3366_v34 = vadd.f32 %v3365_v36, %v3317_v12 }
 0x637   :  { %3387 = vst [vmem:[%s7490_s12 + $0x60] sm:$0xff] %v3366_v34 }
 0x63a   :  { %v3318_v49 = vpop.f32.mrf.mxu2  ;;  %v3367_v8 = vpop.f32.mrf.mxu3 }
 0x63b   :  { %v3319_v52 = vadd.f32 %v7412_v62, %v3318_v49 }
 0x63d   :  { %v3368_v30 = vadd.f32 %v3367_v8, %v3319_v52 }
 0x63f   :  { %3388 = vst [vmem:[%s7490_s12 + $0x68] sm:$0xff] %v3368_v30 }
 0x642   :  { %v3321_v20 = vpop.f32.mrf.mxu2  ;;  %v3370_v60 = vpop.f32.mrf.mxu3 }
 0x643   :  { %v3322_v24 = vadd.f32 %v7412_v62, %v3321_v20 }
 0x645   :  { %v3371_v31 = vadd.f32 %v3370_v60, %v3322_v24 }
 0x647   :  { %3389 = vst [vmem:[%s7490_s12 + $0x70] sm:$0xff] %v3371_v31 }
 0x64a   :  { %v3323_v22 = vpop.f32.mrf.mxu2  ;;  %v3372_v47 = vpop.f32.mrf.mxu3 }
 0x64b   :  { %v3324_v55 = vadd.f32 %v7412_v62, %v3323_v22 }
 0x64d   :  { %v3373_v56 = vadd.f32 %v3372_v47, %v3324_v55 }
 0x64f   :  { %3390 = vst [vmem:[%s7490_s12 + $0x78] sm:$0xff] %v3373_v56 }

</bundles_post_ra>
